<compile_context>
chip_gen: v5e
topology: v5e:2x2
jax: 0.10.0
libtpu: 0.0.40
codegen_flags: <defaults>
</compile_context>

<pallas_src>
import jax
import jax.numpy as jnp
from jax.experimental import pallas as pl
from jax.experimental.pallas import tpu as pltpu


def get_2d_padding(kernel_size, dilation=(1, 1)):
    return ((kernel_size[0] - 1) * dilation[0] // 2,
            (kernel_size[1] - 1) * dilation[1] // 2)


# ----------------------------------------------------------------------------
# Fused kernel: STFT (windowed DFT matmul) + full conv stack, VMEM resident.
#
# Internal layout of every feature map scratch: (freq_padded, time_padded, ch)
#   - channels on lanes, time on sublanes, freq on the outer dim.
# For each output frequency column `wo` of a layer we gather the KH*KW receptive
# field as lane-concatenated (Hout, Cin) segments and run ONE MXU matmul
# (Hout, KH*KW*Cin) @ (KH*KW*Cin, Cout), then fuse bias + LeakyReLU(0.2).
# ----------------------------------------------------------------------------
def _make_fused_kernel(layers, n_frames, fbins, slope):
    nl = len(layers)

    def conv_layer(L, in_pad, w_ref, b_ref, out_ref, nxt, nxt_pad):
        KH, KW = L["KH"], L["KW"]
        sh, sw = L["sh"], L["sw"]
        dh, dw = L["dh"], L["dw"]
        Hout = L["Hout"]
        w = w_ref[...]                      # (K, Cout) bf16, VMEM resident
        bias = b_ref[...]                   # (1, Cout) f32

        def body(wo, carry):
            col = wo * sw                   # input freq offset (dynamic)
            segs = []
            for kw in range(KW):
                c = col + kw * dw
                if sh == 1:                 # time stride 1 (always true here)
                    tile = in_pad[c]        # (Hp, Cin)
                    for kh in range(KH):
                        segs.append(tile[kh * dh:kh * dh + Hout, :])
                else:
                    for kh in range(KH):
                        segs.append(in_pad[c, pl.ds(kh * dh, Hout, stride=sh), :])
            # (Hout, KH*KW*Cin); column order (kw, kh, ci) matches weight layout.
            patch = jnp.concatenate(segs, axis=-1).astype(w.dtype)
            acc = jnp.dot(patch, w, preferred_element_type=jnp.float32) + bias
            if L["act"]:
                acc = jnp.where(acc >= 0.0, acc, slope * acc)   # LeakyReLU, f32
            out_ref[0, wo, :, :] = acc.astype(out_ref.dtype)
            if nxt_pad is not None:         # feed next layer's padded input
                nxt_pad[wo + nxt["pw"], nxt["ph"]:nxt["ph"] + Hout, :] = (
                    acc.astype(nxt_pad.dtype))
            return carry

        jax.lax.fori_loop(0, L["Wout"], body, None)

    def kernel(*refs):
        frames_ref, basis_ref = refs[0], refs[1]
        w_refs = refs[2:2 + nl]
        b_refs = refs[2 + nl:2 + 2 * nl]
        out_refs = refs[2 + 2 * nl:2 + 3 * nl]
        pad_refs = refs[2 + 3 * nl:2 + 4 * nl]

        # zero the padded scratches: borders must read as zero-padding
        for p in pad_refs:
            p[...] = jnp.zeros(p.shape, p.dtype)

        # ---- STFT: one windowed-DFT matmul, scattered into layer-0 input ----
        L0 = layers[0]
        spec = jnp.dot(frames_ref[0], basis_ref[...],
                       preferred_element_type=jnp.float32)   # (T, 2*F) f32
        for f in range(fbins):               # columns [re_f, im_f]
            pad_refs[0][f + L0["pw"], L0["ph"]:L0["ph"] + n_frames, :] = (
                spec[:, 2 * f:2 * f + 2].astype(pad_refs[0].dtype))

        # ---- conv stack (5 convs + conv_post), all feature maps in VMEM ----
        for l, L in enumerate(layers):
            nxt = layers[l + 1] if l + 1 < nl else None
            nxt_pad = pad_refs[l + 1] if l + 1 < nl else None
            conv_layer(L, pad_refs[l], w_refs[l], b_refs[l], out_refs[l],
                       nxt, nxt_pad)

    return kernel


# ----------------------------------------------------------------------------
# STFTDiscriminator wrapper (synthetic deterministic parameters)
# ----------------------------------------------------------------------------
class STFTDiscriminatorPallas:
    def __init__(self, key, filters=8, in_channels=1, out_channels=1,
                 n_fft=64, hop_length=16, win_length=64, max_filters=1024,
                 filters_scale=1, kernel_size=(3, 9), dilations=(1, 2, 4),
                 stride=(1, 2), normalized=True, slope=0.2):
        # TODO(synk): magnitude=True / log_magnitude branch not implemented
        # (module default magnitude=False path only; forward's squeeze(1)
        #  requires in_channels == 1).
        assert in_channels == 1
        assert win_length == n_fft, "win_length == n_fft assumed (matches defaults)"
        self.n_fft = n_fft
        self.hop_length = hop_length
        self.win_length = win_length
        self.normalized = normalized
        self.slope = slope
        self.fbins = n_fft // 2 + 1

        spec_channels = 2 * in_channels          # [real, imag]
        k0 = kernel_size[0]
        cfgs = [(spec_channels, filters, kernel_size, (1, 1), (1, 1),
                 get_2d_padding(kernel_size), True)]
        in_chs = min(filters, max_filters)
        for i, d in enumerate(dilations):
            out_chs = min(filters_scale ** i * filters, max_filters)
            cfgs.append((in_chs, out_chs, kernel_size, stride, (d, 1),
                         get_2d_padding(kernel_size, (d, 1)), True))
            in_chs = out_chs
        out_chs = min(filters_scale ** len(dilations) * filters, max_filters)
        cfgs.append((in_chs, out_chs, (k0, k0), (1, 1), (1, 1),
                     get_2d_padding((k0, k0)), True))
        cfgs.append((out_chs, out_channels, (k0, k0), (1, 1), (1, 1),
                     get_2d_padding((k0, k0)), False))       # conv_post (no act)
        self.conv_cfgs = cfgs

        # deterministic synthetic parameters (weight_norm is identity at init);
        # matmul-layout weights precomputed once (row order = (kw, kh, ci)).
        keys = jax.random.split(key, len(cfgs))
        self.wmats, self.biases = [], []
        for k, (cin, cout, ks, _, _, _, _) in zip(keys, cfgs):
            kw_, kb_ = jax.random.split(k)
            w = 0.1 * jax.random.normal(kw_, (cout, cin, ks[0], ks[1]),
                                        jnp.float32)
            b = 0.1 * jax.random.normal(kb_, (cout,), jnp.float32)
            wmat = jnp.transpose(w, (3, 2, 1, 0)).reshape(ks[1] * ks[0] * cin,
                                                          cout)
            self.wmats.append(wmat.astype(jnp.bfloat16))
            self.biases.append(b.reshape(1, cout).astype(jnp.float32))

        # windowed DFT basis, columns interleaved [re_f0, im_f0, re_f1, ...];
        # periodic hann window and 1/sqrt(sum(win^2)) normalization folded in.
        n = jnp.arange(n_fft, dtype=jnp.float32)
        window = 0.5 - 0.5 * jnp.cos(2.0 * jnp.pi * n / win_length)
        norm = jnp.sqrt(jnp.sum(window ** 2)) if normalized else jnp.float32(1.0)
        f = jnp.arange(self.fbins, dtype=jnp.float32)
        ang = 2.0 * jnp.pi * jnp.outer(n, f) / n_fft
        br = (window[:, None] * jnp.cos(ang)) / norm
        bi = (-window[:, None] * jnp.sin(ang)) / norm
        self.basis = jnp.stack([br, bi], axis=-1).reshape(
            n_fft, 2 * self.fbins).astype(jnp.bfloat16)

    def __call__(self, x):
        """x: (B, 1, T) audio.  Returns (z, fmap) in PyTorch NCHW layout."""
        B, cin, t_samples = x.shape
        assert cin == 1
        n_frames = (t_samples - self.n_fft) // self.hop_length + 1
        fbins = self.fbins

        # frame the raw audio (window folded into the DFT basis)
        idx = (jnp.arange(n_frames)[:, None] * self.hop_length
               + jnp.arange(self.n_fft)[None, :])
        frames = x[:, 0, :][:, idx].astype(jnp.bfloat16)      # (B, T, n_fft)

        # static per-layer geometry; internal layout is (freq, time, channels)
        layers = []
        H, W = n_frames, fbins                                # time, freq
        for (cin_l, cout_l, ks, st, dil, pad, act) in self.conv_cfgs:
            KH, KW = ks
            sh, sw = st
            dh, dw = dil
            ph, pw = pad
            Hout = (H + 2 * ph - dh * (KH - 1) - 1) // sh + 1
            Wout = (W + 2 * pw - dw * (KW - 1) - 1) // sw + 1
            layers.append(dict(KH=KH, KW=KW, sh=sh, sw=sw, dh=dh, dw=dw,
                               ph=ph, pw=pw, Hin=H, Win=W, Hout=Hout,
                               Wout=Wout, Cin=cin_l, Cout=cout_l, act=act))
            H, W = Hout, Wout

        kernel = _make_fused_kernel(layers, n_frames, fbins, self.slope)

        out_shape = [jax.ShapeDtypeStruct((B, L["Wout"], L["Hout"], L["Cout"]),
                                          jnp.float32) for L in layers]
        in_specs = (
            [pl.BlockSpec((1, n_frames, self.n_fft), lambda b: (b, 0, 0)),
             pl.BlockSpec((self.n_fft, 2 * fbins), lambda b: (0, 0))]
            + [pl.BlockSpec(wm.shape, lambda b: (0, 0)) for wm in self.wmats]
            + [pl.BlockSpec(bb.shape, lambda b: (0, 0)) for bb in self.biases])
        out_specs = [pl.BlockSpec((1, L["Wout"], L["Hout"], L["Cout"]),
                                  lambda b: (b, 0, 0, 0)) for L in layers]
        scratch_shapes = [pltpu.VMEM((L["Win"] + 2 * L["pw"],
                                      L["Hin"] + 2 * L["ph"], L["Cin"]),
                                     jnp.float32) for L in layers]

        outs = pl.pallas_call(
            kernel,
            out_shape=out_shape,
            grid_spec=pltpu.PrefetchScalarGridSpec(
                num_scalar_prefetch=0,
                grid=(B,),
                in_specs=in_specs,
                out_specs=out_specs,
                scratch_shapes=scratch_shapes),
            compiler_params=pltpu.CompilerParams(
                dimension_semantics=("parallel",),
                vmem_limit_bytes=32 * 1024 * 1024),
        )(frames, self.basis, *self.wmats, *self.biases)

        # internal (B, freq, time, C) -> PyTorch NCHW (B, C, time, freq)
        to_nchw = lambda t: jnp.transpose(t, (0, 3, 2, 1))
        fmap = [to_nchw(o) for o in outs[:-1]]
        z = to_nchw(outs[-1])
        return z, fmap


if __name__ == "__main__":
    key = jax.random.PRNGKey(0)
    k_param, k_in = jax.random.split(key)

    # small shapes consistent with the module: batch=2, 1 audio channel, 256 samples
    x = jax.random.normal(k_in, (2, 1, 256), jnp.float32)

    model = STFTDiscriminatorPallas(k_param, filters=8, n_fft=64,
                                    hop_length=16, win_length=64)
    z, fmap = model(x)
    jax.block_until_ready(z)
    for fm in fmap:
        jax.block_until_ready(fm)

    assert z.shape == (2, 1, 13, 5), z.shape
    expected = [(2, 8, 13, 33), (2, 8, 13, 17), (2, 8, 13, 9),
                (2, 8, 13, 5), (2, 8, 13, 5)]
    assert [tuple(f.shape) for f in fmap] == expected, [f.shape for f in fmap]
    print("KERNEL_OK")
</pallas_src>

<mosaic_0001>
module attributes {stable_mosaic.version = 11 : i64} {
  func.func @kernel(%arg0: i32, %arg1: memref<1x13x64xbf16, #tpu.memory_space<vmem>>, %arg2: memref<64x66xbf16, #tpu.memory_space<vmem>>, %arg3: memref<54x8xbf16, #tpu.memory_space<vmem>>, %arg4: memref<216x8xbf16, #tpu.memory_space<vmem>>, %arg5: memref<216x8xbf16, #tpu.memory_space<vmem>>, %arg6: memref<216x8xbf16, #tpu.memory_space<vmem>>, %arg7: memref<72x8xbf16, #tpu.memory_space<vmem>>, %arg8: memref<72x1xbf16, #tpu.memory_space<vmem>>, %arg9: memref<1x8xf32, #tpu.memory_space<vmem>>, %arg10: memref<1x8xf32, #tpu.memory_space<vmem>>, %arg11: memref<1x8xf32, #tpu.memory_space<vmem>>, %arg12: memref<1x8xf32, #tpu.memory_space<vmem>>, %arg13: memref<1x8xf32, #tpu.memory_space<vmem>>, %arg14: memref<1x1xf32, #tpu.memory_space<vmem>>, %arg15: memref<1x33x13x8xf32, #tpu.memory_space<vmem>>, %arg16: memref<1x17x13x8xf32, #tpu.memory_space<vmem>>, %arg17: memref<1x9x13x8xf32, #tpu.memory_space<vmem>>, %arg18: memref<1x5x13x8xf32, #tpu.memory_space<vmem>>, %arg19: memref<1x5x13x8xf32, #tpu.memory_space<vmem>>, %arg20: memref<1x5x13x1xf32, #tpu.memory_space<vmem>>, %arg21: memref<41x15x2xf32, #tpu.memory_space<vmem>>, %arg22: memref<41x15x8xf32, #tpu.memory_space<vmem>>, %arg23: memref<25x17x8xf32, #tpu.memory_space<vmem>>, %arg24: memref<17x21x8xf32, #tpu.memory_space<vmem>>, %arg25: memref<7x15x8xf32, #tpu.memory_space<vmem>>, %arg26: memref<7x15x8xf32, #tpu.memory_space<vmem>>) attributes {dimension_semantics = [#tpu.dimension_semantics<parallel>], iteration_bounds = array<i64: 2>, scalar_prefetch = 0 : i64, scratch_operands = 6 : i64, tpu.core_type = #tpu.core_type<tc>, window_params = [{transform_indices = @transform_0, window_bounds = array<i64: 1, 13, 64>}, {pipeline_mode = #tpu.pipeline_mode<synchronous>, transform_indices = @transform_1, window_bounds = array<i64: 64, 66>}, {pipeline_mode = #tpu.pipeline_mode<synchronous>, transform_indices = @transform_2, window_bounds = array<i64: 54, 8>}, {pipeline_mode = #tpu.pipeline_mode<synchronous>, transform_indices = @transform_3, window_bounds = array<i64: 216, 8>}, {pipeline_mode = #tpu.pipeline_mode<synchronous>, transform_indices = @transform_4, window_bounds = array<i64: 216, 8>}, {pipeline_mode = #tpu.pipeline_mode<synchronous>, transform_indices = @transform_5, window_bounds = array<i64: 216, 8>}, {pipeline_mode = #tpu.pipeline_mode<synchronous>, transform_indices = @transform_6, window_bounds = array<i64: 72, 8>}, {pipeline_mode = #tpu.pipeline_mode<synchronous>, transform_indices = @transform_7, window_bounds = array<i64: 72, 1>}, {pipeline_mode = #tpu.pipeline_mode<synchronous>, transform_indices = @transform_8, window_bounds = array<i64: 1, 8>}, {pipeline_mode = #tpu.pipeline_mode<synchronous>, transform_indices = @transform_9, window_bounds = array<i64: 1, 8>}, {pipeline_mode = #tpu.pipeline_mode<synchronous>, transform_indices = @transform_10, window_bounds = array<i64: 1, 8>}, {pipeline_mode = #tpu.pipeline_mode<synchronous>, transform_indices = @transform_11, window_bounds = array<i64: 1, 8>}, {pipeline_mode = #tpu.pipeline_mode<synchronous>, transform_indices = @transform_12, window_bounds = array<i64: 1, 8>}, {pipeline_mode = #tpu.pipeline_mode<synchronous>, transform_indices = @transform_13, window_bounds = array<i64: 1, 1>}, {transform_indices = @transform_14, window_bounds = array<i64: 1, 33, 13, 8>}, {transform_indices = @transform_15, window_bounds = array<i64: 1, 17, 13, 8>}, {transform_indices = @transform_16, window_bounds = array<i64: 1, 9, 13, 8>}, {transform_indices = @transform_17, window_bounds = array<i64: 1, 5, 13, 8>}, {transform_indices = @transform_18, window_bounds = array<i64: 1, 5, 13, 8>}, {transform_indices = @transform_19, window_bounds = array<i64: 1, 5, 13, 1>}]} {
    %cst = arith.constant 0.000000e+00 : f32
    %0 = vector.broadcast %cst : f32 to vector<41x15x2xf32>
    %c0 = arith.constant 0 : index
    %c0_0 = arith.constant 0 : index
    %c0_1 = arith.constant 0 : index
    %1 = vector.load %arg21[%c0, %c0_0, %c0_1] : memref<41x15x2xf32, #tpu.memory_space<vmem>>, vector<41x15x2xf32>
    tpu.vector_store %arg21[%c0, %c0_0, %c0_1], %0 {strides = array<i32>} : memref<41x15x2xf32, #tpu.memory_space<vmem>>, vector<41x15x2xf32>,
    %cst_2 = arith.constant 0.000000e+00 : f32
    %2 = vector.broadcast %cst_2 : f32 to vector<41x15x8xf32>
    %c0_3 = arith.constant 0 : index
    %c0_4 = arith.constant 0 : index
    %c0_5 = arith.constant 0 : index
    %3 = vector.load %arg22[%c0_3, %c0_4, %c0_5] : memref<41x15x8xf32, #tpu.memory_space<vmem>>, vector<41x15x8xf32>
    tpu.vector_store %arg22[%c0_3, %c0_4, %c0_5], %2 {strides = array<i32>} : memref<41x15x8xf32, #tpu.memory_space<vmem>>, vector<41x15x8xf32>,
    %cst_6 = arith.constant 0.000000e+00 : f32
    %4 = vector.broadcast %cst_6 : f32 to vector<25x17x8xf32>
    %c0_7 = arith.constant 0 : index
    %c0_8 = arith.constant 0 : index
    %c0_9 = arith.constant 0 : index
    %5 = vector.load %arg23[%c0_7, %c0_8, %c0_9] : memref<25x17x8xf32, #tpu.memory_space<vmem>>, vector<25x17x8xf32>
    tpu.vector_store %arg23[%c0_7, %c0_8, %c0_9], %4 {strides = array<i32>} : memref<25x17x8xf32, #tpu.memory_space<vmem>>, vector<25x17x8xf32>,
    %cst_10 = arith.constant 0.000000e+00 : f32
    %6 = vector.broadcast %cst_10 : f32 to vector<17x21x8xf32>
    %c0_11 = arith.constant 0 : index
    %c0_12 = arith.constant 0 : index
    %c0_13 = arith.constant 0 : index
    %7 = vector.load %arg24[%c0_11, %c0_12, %c0_13] : memref<17x21x8xf32, #tpu.memory_space<vmem>>, vector<17x21x8xf32>
    tpu.vector_store %arg24[%c0_11, %c0_12, %c0_13], %6 {strides = array<i32>} : memref<17x21x8xf32, #tpu.memory_space<vmem>>, vector<17x21x8xf32>,
    %cst_14 = arith.constant 0.000000e+00 : f32
    %8 = vector.broadcast %cst_14 : f32 to vector<7x15x8xf32>
    %c0_15 = arith.constant 0 : index
    %c0_16 = arith.constant 0 : index
    %c0_17 = arith.constant 0 : index
    %9 = vector.load %arg25[%c0_15, %c0_16, %c0_17] : memref<7x15x8xf32, #tpu.memory_space<vmem>>, vector<7x15x8xf32>
    tpu.vector_store %arg25[%c0_15, %c0_16, %c0_17], %8 {strides = array<i32>} : memref<7x15x8xf32, #tpu.memory_space<vmem>>, vector<7x15x8xf32>,
    %cst_18 = arith.constant 0.000000e+00 : f32
    %10 = vector.broadcast %cst_18 : f32 to vector<7x15x8xf32>
    %c0_19 = arith.constant 0 : index
    %c0_20 = arith.constant 0 : index
    %c0_21 = arith.constant 0 : index
    %11 = vector.load %arg26[%c0_19, %c0_20, %c0_21] : memref<7x15x8xf32, #tpu.memory_space<vmem>>, vector<7x15x8xf32>
    tpu.vector_store %arg26[%c0_19, %c0_20, %c0_21], %10 {strides = array<i32>} : memref<7x15x8xf32, #tpu.memory_space<vmem>>, vector<7x15x8xf32>,
    %c0_22 = arith.constant 0 : index
    %c0_23 = arith.constant 0 : index
    %c0_24 = arith.constant 0 : index
    %12 = vector.load %arg1[%c0_22, %c0_23, %c0_24] : memref<1x13x64xbf16, #tpu.memory_space<vmem>>, vector<1x13x64xbf16>
    %13 = vector.shape_cast %12 : vector<1x13x64xbf16> to vector<13x64xbf16>
    %c0_25 = arith.constant 0 : index
    %c0_26 = arith.constant 0 : index
    %14 = vector.load %arg2[%c0_25, %c0_26] : memref<64x66xbf16, #tpu.memory_space<vmem>>, vector<64x66xbf16>
    %cst_27 = arith.constant dense<0.000000e+00> : vector<13x66xf32>
    %15 = tpu.matmul %13, %14, %cst_27 {dimension_numbers = #tpu.dot_dimension_numbers<[1], [0], [0], [1], [0, 0, 1, 1], [], []>} : vector<13x64xbf16>, vector<64x66xbf16>, vector<13x66xf32> -> vector<13x66xf32>
    %16 = vector.extract_strided_slice %15 {offsets = [0, 0], sizes = [13, 2], strides = [1, 1]} : vector<13x66xf32> to vector<13x2xf32>
    %c4 = arith.constant 4 : index
    %c1 = arith.constant 1 : index
    %c0_28 = arith.constant 0 : index
    %17 = vector.load %arg21[%c4, %c1, %c0_28] : memref<41x15x2xf32, #tpu.memory_space<vmem>>, vector<1x13x2xf32>
    %18 = vector.shape_cast %17 : vector<1x13x2xf32> to vector<13x2xf32>
    %19 = vector.shape_cast %16 : vector<13x2xf32> to vector<1x13x2xf32>
    tpu.vector_store %arg21[%c4, %c1, %c0_28], %19 {strides = array<i32>} : memref<41x15x2xf32, #tpu.memory_space<vmem>>, vector<1x13x2xf32>,
    %20 = vector.extract_strided_slice %15 {offsets = [0, 2], sizes = [13, 2], strides = [1, 1]} : vector<13x66xf32> to vector<13x2xf32>
    %c5 = arith.constant 5 : index
    %c1_29 = arith.constant 1 : index
    %c0_30 = arith.constant 0 : index
    %21 = vector.load %arg21[%c5, %c1_29, %c0_30] : memref<41x15x2xf32, #tpu.memory_space<vmem>>, vector<1x13x2xf32>
    %22 = vector.shape_cast %21 : vector<1x13x2xf32> to vector<13x2xf32>
    %23 = vector.shape_cast %20 : vector<13x2xf32> to vector<1x13x2xf32>
    tpu.vector_store %arg21[%c5, %c1_29, %c0_30], %23 {strides = array<i32>} : memref<41x15x2xf32, #tpu.memory_space<vmem>>, vector<1x13x2xf32>,
    %24 = vector.extract_strided_slice %15 {offsets = [0, 4], sizes = [13, 2], strides = [1, 1]} : vector<13x66xf32> to vector<13x2xf32>
    %c6 = arith.constant 6 : index
    %c1_31 = arith.constant 1 : index
    %c0_32 = arith.constant 0 : index
    %25 = vector.load %arg21[%c6, %c1_31, %c0_32] : memref<41x15x2xf32, #tpu.memory_space<vmem>>, vector<1x13x2xf32>
    %26 = vector.shape_cast %25 : vector<1x13x2xf32> to vector<13x2xf32>
    %27 = vector.shape_cast %24 : vector<13x2xf32> to vector<1x13x2xf32>
    tpu.vector_store %arg21[%c6, %c1_31, %c0_32], %27 {strides = array<i32>} : memref<41x15x2xf32, #tpu.memory_space<vmem>>, vector<1x13x2xf32>,
    %28 = vector.extract_strided_slice %15 {offsets = [0, 6], sizes = [13, 2], strides = [1, 1]} : vector<13x66xf32> to vector<13x2xf32>
    %c7 = arith.constant 7 : index
    %c1_33 = arith.constant 1 : index
    %c0_34 = arith.constant 0 : index
    %29 = vector.load %arg21[%c7, %c1_33, %c0_34] : memref<41x15x2xf32, #tpu.memory_space<vmem>>, vector<1x13x2xf32>
    %30 = vector.shape_cast %29 : vector<1x13x2xf32> to vector<13x2xf32>
    %31 = vector.shape_cast %28 : vector<13x2xf32> to vector<1x13x2xf32>
    tpu.vector_store %arg21[%c7, %c1_33, %c0_34], %31 {strides = array<i32>} : memref<41x15x2xf32, #tpu.memory_space<vmem>>, vector<1x13x2xf32>,
    %32 = vector.extract_strided_slice %15 {offsets = [0, 8], sizes = [13, 2], strides = [1, 1]} : vector<13x66xf32> to vector<13x2xf32>
    %c8 = arith.constant 8 : index
    %c1_35 = arith.constant 1 : index
    %c0_36 = arith.constant 0 : index
    %33 = vector.load %arg21[%c8, %c1_35, %c0_36] : memref<41x15x2xf32, #tpu.memory_space<vmem>>, vector<1x13x2xf32>
    %34 = vector.shape_cast %33 : vector<1x13x2xf32> to vector<13x2xf32>
    %35 = vector.shape_cast %32 : vector<13x2xf32> to vector<1x13x2xf32>
    tpu.vector_store %arg21[%c8, %c1_35, %c0_36], %35 {strides = array<i32>} : memref<41x15x2xf32, #tpu.memory_space<vmem>>, vector<1x13x2xf32>,
    %36 = vector.extract_strided_slice %15 {offsets = [0, 10], sizes = [13, 2], strides = [1, 1]} : vector<13x66xf32> to vector<13x2xf32>
    %c9 = arith.constant 9 : index
    %c1_37 = arith.constant 1 : index
    %c0_38 = arith.constant 0 : index
    %37 = vector.load %arg21[%c9, %c1_37, %c0_38] : memref<41x15x2xf32, #tpu.memory_space<vmem>>, vector<1x13x2xf32>
    %38 = vector.shape_cast %37 : vector<1x13x2xf32> to vector<13x2xf32>
    %39 = vector.shape_cast %36 : vector<13x2xf32> to vector<1x13x2xf32>
    tpu.vector_store %arg21[%c9, %c1_37, %c0_38], %39 {strides = array<i32>} : memref<41x15x2xf32, #tpu.memory_space<vmem>>, vector<1x13x2xf32>,
    %40 = vector.extract_strided_slice %15 {offsets = [0, 12], sizes = [13, 2], strides = [1, 1]} : vector<13x66xf32> to vector<13x2xf32>
    %c10 = arith.constant 10 : index
    %c1_39 = arith.constant 1 : index
    %c0_40 = arith.constant 0 : index
    %41 = vector.load %arg21[%c10, %c1_39, %c0_40] : memref<41x15x2xf32, #tpu.memory_space<vmem>>, vector<1x13x2xf32>
    %42 = vector.shape_cast %41 : vector<1x13x2xf32> to vector<13x2xf32>
    %43 = vector.shape_cast %40 : vector<13x2xf32> to vector<1x13x2xf32>
    tpu.vector_store %arg21[%c10, %c1_39, %c0_40], %43 {strides = array<i32>} : memref<41x15x2xf32, #tpu.memory_space<vmem>>, vector<1x13x2xf32>,
    %44 = vector.extract_strided_slice %15 {offsets = [0, 14], sizes = [13, 2], strides = [1, 1]} : vector<13x66xf32> to vector<13x2xf32>
    %c11 = arith.constant 11 : index
    %c1_41 = arith.constant 1 : index
    %c0_42 = arith.constant 0 : index
    %45 = vector.load %arg21[%c11, %c1_41, %c0_42] : memref<41x15x2xf32, #tpu.memory_space<vmem>>, vector<1x13x2xf32>
    %46 = vector.shape_cast %45 : vector<1x13x2xf32> to vector<13x2xf32>
    %47 = vector.shape_cast %44 : vector<13x2xf32> to vector<1x13x2xf32>
    tpu.vector_store %arg21[%c11, %c1_41, %c0_42], %47 {strides = array<i32>} : memref<41x15x2xf32, #tpu.memory_space<vmem>>, vector<1x13x2xf32>,
    %48 = vector.extract_strided_slice %15 {offsets = [0, 16], sizes = [13, 2], strides = [1, 1]} : vector<13x66xf32> to vector<13x2xf32>
    %c12 = arith.constant 12 : index
    %c1_43 = arith.constant 1 : index
    %c0_44 = arith.constant 0 : index
    %49 = vector.load %arg21[%c12, %c1_43, %c0_44] : memref<41x15x2xf32, #tpu.memory_space<vmem>>, vector<1x13x2xf32>
    %50 = vector.shape_cast %49 : vector<1x13x2xf32> to vector<13x2xf32>
    %51 = vector.shape_cast %48 : vector<13x2xf32> to vector<1x13x2xf32>
    tpu.vector_store %arg21[%c12, %c1_43, %c0_44], %51 {strides = array<i32>} : memref<41x15x2xf32, #tpu.memory_space<vmem>>, vector<1x13x2xf32>,
    %52 = vector.extract_strided_slice %15 {offsets = [0, 18], sizes = [13, 2], strides = [1, 1]} : vector<13x66xf32> to vector<13x2xf32>
    %c13 = arith.constant 13 : index
    %c1_45 = arith.constant 1 : index
    %c0_46 = arith.constant 0 : index
    %53 = vector.load %arg21[%c13, %c1_45, %c0_46] : memref<41x15x2xf32, #tpu.memory_space<vmem>>, vector<1x13x2xf32>
    %54 = vector.shape_cast %53 : vector<1x13x2xf32> to vector<13x2xf32>
    %55 = vector.shape_cast %52 : vector<13x2xf32> to vector<1x13x2xf32>
    tpu.vector_store %arg21[%c13, %c1_45, %c0_46], %55 {strides = array<i32>} : memref<41x15x2xf32, #tpu.memory_space<vmem>>, vector<1x13x2xf32>,
    %56 = vector.extract_strided_slice %15 {offsets = [0, 20], sizes = [13, 2], strides = [1, 1]} : vector<13x66xf32> to vector<13x2xf32>
    %c14 = arith.constant 14 : index
    %c1_47 = arith.constant 1 : index
    %c0_48 = arith.constant 0 : index
    %57 = vector.load %arg21[%c14, %c1_47, %c0_48] : memref<41x15x2xf32, #tpu.memory_space<vmem>>, vector<1x13x2xf32>
    %58 = vector.shape_cast %57 : vector<1x13x2xf32> to vector<13x2xf32>
    %59 = vector.shape_cast %56 : vector<13x2xf32> to vector<1x13x2xf32>
    tpu.vector_store %arg21[%c14, %c1_47, %c0_48], %59 {strides = array<i32>} : memref<41x15x2xf32, #tpu.memory_space<vmem>>, vector<1x13x2xf32>,
    %60 = vector.extract_strided_slice %15 {offsets = [0, 22], sizes = [13, 2], strides = [1, 1]} : vector<13x66xf32> to vector<13x2xf32>
    %c15 = arith.constant 15 : index
    %c1_49 = arith.constant 1 : index
    %c0_50 = arith.constant 0 : index
    %61 = vector.load %arg21[%c15, %c1_49, %c0_50] : memref<41x15x2xf32, #tpu.memory_space<vmem>>, vector<1x13x2xf32>
    %62 = vector.shape_cast %61 : vector<1x13x2xf32> to vector<13x2xf32>
    %63 = vector.shape_cast %60 : vector<13x2xf32> to vector<1x13x2xf32>
    tpu.vector_store %arg21[%c15, %c1_49, %c0_50], %63 {strides = array<i32>} : memref<41x15x2xf32, #tpu.memory_space<vmem>>, vector<1x13x2xf32>,
    %64 = vector.extract_strided_slice %15 {offsets = [0, 24], sizes = [13, 2], strides = [1, 1]} : vector<13x66xf32> to vector<13x2xf32>
    %c16 = arith.constant 16 : index
    %c1_51 = arith.constant 1 : index
    %c0_52 = arith.constant 0 : index
    %65 = vector.load %arg21[%c16, %c1_51, %c0_52] : memref<41x15x2xf32, #tpu.memory_space<vmem>>, vector<1x13x2xf32>
    %66 = vector.shape_cast %65 : vector<1x13x2xf32> to vector<13x2xf32>
    %67 = vector.shape_cast %64 : vector<13x2xf32> to vector<1x13x2xf32>
    tpu.vector_store %arg21[%c16, %c1_51, %c0_52], %67 {strides = array<i32>} : memref<41x15x2xf32, #tpu.memory_space<vmem>>, vector<1x13x2xf32>,
    %68 = vector.extract_strided_slice %15 {offsets = [0, 26], sizes = [13, 2], strides = [1, 1]} : vector<13x66xf32> to vector<13x2xf32>
    %c17 = arith.constant 17 : index
    %c1_53 = arith.constant 1 : index
    %c0_54 = arith.constant 0 : index
    %69 = vector.load %arg21[%c17, %c1_53, %c0_54] : memref<41x15x2xf32, #tpu.memory_space<vmem>>, vector<1x13x2xf32>
    %70 = vector.shape_cast %69 : vector<1x13x2xf32> to vector<13x2xf32>
    %71 = vector.shape_cast %68 : vector<13x2xf32> to vector<1x13x2xf32>
    tpu.vector_store %arg21[%c17, %c1_53, %c0_54], %71 {strides = array<i32>} : memref<41x15x2xf32, #tpu.memory_space<vmem>>, vector<1x13x2xf32>,
    %72 = vector.extract_strided_slice %15 {offsets = [0, 28], sizes = [13, 2], strides = [1, 1]} : vector<13x66xf32> to vector<13x2xf32>
    %c18 = arith.constant 18 : index
    %c1_55 = arith.constant 1 : index
    %c0_56 = arith.constant 0 : index
    %73 = vector.load %arg21[%c18, %c1_55, %c0_56] : memref<41x15x2xf32, #tpu.memory_space<vmem>>, vector<1x13x2xf32>
    %74 = vector.shape_cast %73 : vector<1x13x2xf32> to vector<13x2xf32>
    %75 = vector.shape_cast %72 : vector<13x2xf32> to vector<1x13x2xf32>
    tpu.vector_store %arg21[%c18, %c1_55, %c0_56], %75 {strides = array<i32>} : memref<41x15x2xf32, #tpu.memory_space<vmem>>, vector<1x13x2xf32>,
    %76 = vector.extract_strided_slice %15 {offsets = [0, 30], sizes = [13, 2], strides = [1, 1]} : vector<13x66xf32> to vector<13x2xf32>
    %c19 = arith.constant 19 : index
    %c1_57 = arith.constant 1 : index
    %c0_58 = arith.constant 0 : index
    %77 = vector.load %arg21[%c19, %c1_57, %c0_58] : memref<41x15x2xf32, #tpu.memory_space<vmem>>, vector<1x13x2xf32>
    %78 = vector.shape_cast %77 : vector<1x13x2xf32> to vector<13x2xf32>
    %79 = vector.shape_cast %76 : vector<13x2xf32> to vector<1x13x2xf32>
    tpu.vector_store %arg21[%c19, %c1_57, %c0_58], %79 {strides = array<i32>} : memref<41x15x2xf32, #tpu.memory_space<vmem>>, vector<1x13x2xf32>,
    %80 = vector.extract_strided_slice %15 {offsets = [0, 32], sizes = [13, 2], strides = [1, 1]} : vector<13x66xf32> to vector<13x2xf32>
    %c20 = arith.constant 20 : index
    %c1_59 = arith.constant 1 : index
    %c0_60 = arith.constant 0 : index
    %81 = vector.load %arg21[%c20, %c1_59, %c0_60] : memref<41x15x2xf32, #tpu.memory_space<vmem>>, vector<1x13x2xf32>
    %82 = vector.shape_cast %81 : vector<1x13x2xf32> to vector<13x2xf32>
    %83 = vector.shape_cast %80 : vector<13x2xf32> to vector<1x13x2xf32>
    tpu.vector_store %arg21[%c20, %c1_59, %c0_60], %83 {strides = array<i32>} : memref<41x15x2xf32, #tpu.memory_space<vmem>>, vector<1x13x2xf32>,
    %84 = vector.extract_strided_slice %15 {offsets = [0, 34], sizes = [13, 2], strides = [1, 1]} : vector<13x66xf32> to vector<13x2xf32>
    %c21 = arith.constant 21 : index
    %c1_61 = arith.constant 1 : index
    %c0_62 = arith.constant 0 : index
    %85 = vector.load %arg21[%c21, %c1_61, %c0_62] : memref<41x15x2xf32, #tpu.memory_space<vmem>>, vector<1x13x2xf32>
    %86 = vector.shape_cast %85 : vector<1x13x2xf32> to vector<13x2xf32>
    %87 = vector.shape_cast %84 : vector<13x2xf32> to vector<1x13x2xf32>
    tpu.vector_store %arg21[%c21, %c1_61, %c0_62], %87 {strides = array<i32>} : memref<41x15x2xf32, #tpu.memory_space<vmem>>, vector<1x13x2xf32>,
    %88 = vector.extract_strided_slice %15 {offsets = [0, 36], sizes = [13, 2], strides = [1, 1]} : vector<13x66xf32> to vector<13x2xf32>
    %c22 = arith.constant 22 : index
    %c1_63 = arith.constant 1 : index
    %c0_64 = arith.constant 0 : index
    %89 = vector.load %arg21[%c22, %c1_63, %c0_64] : memref<41x15x2xf32, #tpu.memory_space<vmem>>, vector<1x13x2xf32>
    %90 = vector.shape_cast %89 : vector<1x13x2xf32> to vector<13x2xf32>
    %91 = vector.shape_cast %88 : vector<13x2xf32> to vector<1x13x2xf32>
    tpu.vector_store %arg21[%c22, %c1_63, %c0_64], %91 {strides = array<i32>} : memref<41x15x2xf32, #tpu.memory_space<vmem>>, vector<1x13x2xf32>,
    %92 = vector.extract_strided_slice %15 {offsets = [0, 38], sizes = [13, 2], strides = [1, 1]} : vector<13x66xf32> to vector<13x2xf32>
    %c23 = arith.constant 23 : index
    %c1_65 = arith.constant 1 : index
    %c0_66 = arith.constant 0 : index
    %93 = vector.load %arg21[%c23, %c1_65, %c0_66] : memref<41x15x2xf32, #tpu.memory_space<vmem>>, vector<1x13x2xf32>
    %94 = vector.shape_cast %93 : vector<1x13x2xf32> to vector<13x2xf32>
    %95 = vector.shape_cast %92 : vector<13x2xf32> to vector<1x13x2xf32>
    tpu.vector_store %arg21[%c23, %c1_65, %c0_66], %95 {strides = array<i32>} : memref<41x15x2xf32, #tpu.memory_space<vmem>>, vector<1x13x2xf32>,
    %96 = vector.extract_strided_slice %15 {offsets = [0, 40], sizes = [13, 2], strides = [1, 1]} : vector<13x66xf32> to vector<13x2xf32>
    %c24 = arith.constant 24 : index
    %c1_67 = arith.constant 1 : index
    %c0_68 = arith.constant 0 : index
    %97 = vector.load %arg21[%c24, %c1_67, %c0_68] : memref<41x15x2xf32, #tpu.memory_space<vmem>>, vector<1x13x2xf32>
    %98 = vector.shape_cast %97 : vector<1x13x2xf32> to vector<13x2xf32>
    %99 = vector.shape_cast %96 : vector<13x2xf32> to vector<1x13x2xf32>
    tpu.vector_store %arg21[%c24, %c1_67, %c0_68], %99 {strides = array<i32>} : memref<41x15x2xf32, #tpu.memory_space<vmem>>, vector<1x13x2xf32>,
    %100 = vector.extract_strided_slice %15 {offsets = [0, 42], sizes = [13, 2], strides = [1, 1]} : vector<13x66xf32> to vector<13x2xf32>
    %c25 = arith.constant 25 : index
    %c1_69 = arith.constant 1 : index
    %c0_70 = arith.constant 0 : index
    %101 = vector.load %arg21[%c25, %c1_69, %c0_70] : memref<41x15x2xf32, #tpu.memory_space<vmem>>, vector<1x13x2xf32>
    %102 = vector.shape_cast %101 : vector<1x13x2xf32> to vector<13x2xf32>
    %103 = vector.shape_cast %100 : vector<13x2xf32> to vector<1x13x2xf32>
    tpu.vector_store %arg21[%c25, %c1_69, %c0_70], %103 {strides = array<i32>} : memref<41x15x2xf32, #tpu.memory_space<vmem>>, vector<1x13x2xf32>,
    %104 = vector.extract_strided_slice %15 {offsets = [0, 44], sizes = [13, 2], strides = [1, 1]} : vector<13x66xf32> to vector<13x2xf32>
    %c26 = arith.constant 26 : index
    %c1_71 = arith.constant 1 : index
    %c0_72 = arith.constant 0 : index
    %105 = vector.load %arg21[%c26, %c1_71, %c0_72] : memref<41x15x2xf32, #tpu.memory_space<vmem>>, vector<1x13x2xf32>
    %106 = vector.shape_cast %105 : vector<1x13x2xf32> to vector<13x2xf32>
    %107 = vector.shape_cast %104 : vector<13x2xf32> to vector<1x13x2xf32>
    tpu.vector_store %arg21[%c26, %c1_71, %c0_72], %107 {strides = array<i32>} : memref<41x15x2xf32, #tpu.memory_space<vmem>>, vector<1x13x2xf32>,
    %108 = vector.extract_strided_slice %15 {offsets = [0, 46], sizes = [13, 2], strides = [1, 1]} : vector<13x66xf32> to vector<13x2xf32>
    %c27 = arith.constant 27 : index
    %c1_73 = arith.constant 1 : index
    %c0_74 = arith.constant 0 : index
    %109 = vector.load %arg21[%c27, %c1_73, %c0_74] : memref<41x15x2xf32, #tpu.memory_space<vmem>>, vector<1x13x2xf32>
    %110 = vector.shape_cast %109 : vector<1x13x2xf32> to vector<13x2xf32>
    %111 = vector.shape_cast %108 : vector<13x2xf32> to vector<1x13x2xf32>
    tpu.vector_store %arg21[%c27, %c1_73, %c0_74], %111 {strides = array<i32>} : memref<41x15x2xf32, #tpu.memory_space<vmem>>, vector<1x13x2xf32>,
    %112 = vector.extract_strided_slice %15 {offsets = [0, 48], sizes = [13, 2], strides = [1, 1]} : vector<13x66xf32> to vector<13x2xf32>
    %c28 = arith.constant 28 : index
    %c1_75 = arith.constant 1 : index
    %c0_76 = arith.constant 0 : index
    %113 = vector.load %arg21[%c28, %c1_75, %c0_76] : memref<41x15x2xf32, #tpu.memory_space<vmem>>, vector<1x13x2xf32>
    %114 = vector.shape_cast %113 : vector<1x13x2xf32> to vector<13x2xf32>
    %115 = vector.shape_cast %112 : vector<13x2xf32> to vector<1x13x2xf32>
    tpu.vector_store %arg21[%c28, %c1_75, %c0_76], %115 {strides = array<i32>} : memref<41x15x2xf32, #tpu.memory_space<vmem>>, vector<1x13x2xf32>,
    %116 = vector.extract_strided_slice %15 {offsets = [0, 50], sizes = [13, 2], strides = [1, 1]} : vector<13x66xf32> to vector<13x2xf32>
    %c29 = arith.constant 29 : index
    %c1_77 = arith.constant 1 : index
    %c0_78 = arith.constant 0 : index
    %117 = vector.load %arg21[%c29, %c1_77, %c0_78] : memref<41x15x2xf32, #tpu.memory_space<vmem>>, vector<1x13x2xf32>
    %118 = vector.shape_cast %117 : vector<1x13x2xf32> to vector<13x2xf32>
    %119 = vector.shape_cast %116 : vector<13x2xf32> to vector<1x13x2xf32>
    tpu.vector_store %arg21[%c29, %c1_77, %c0_78], %119 {strides = array<i32>} : memref<41x15x2xf32, #tpu.memory_space<vmem>>, vector<1x13x2xf32>,
    %120 = vector.extract_strided_slice %15 {offsets = [0, 52], sizes = [13, 2], strides = [1, 1]} : vector<13x66xf32> to vector<13x2xf32>
    %c30 = arith.constant 30 : index
    %c1_79 = arith.constant 1 : index
    %c0_80 = arith.constant 0 : index
    %121 = vector.load %arg21[%c30, %c1_79, %c0_80] : memref<41x15x2xf32, #tpu.memory_space<vmem>>, vector<1x13x2xf32>
    %122 = vector.shape_cast %121 : vector<1x13x2xf32> to vector<13x2xf32>
    %123 = vector.shape_cast %120 : vector<13x2xf32> to vector<1x13x2xf32>
    tpu.vector_store %arg21[%c30, %c1_79, %c0_80], %123 {strides = array<i32>} : memref<41x15x2xf32, #tpu.memory_space<vmem>>, vector<1x13x2xf32>,
    %124 = vector.extract_strided_slice %15 {offsets = [0, 54], sizes = [13, 2], strides = [1, 1]} : vector<13x66xf32> to vector<13x2xf32>
    %c31 = arith.constant 31 : index
    %c1_81 = arith.constant 1 : index
    %c0_82 = arith.constant 0 : index
    %125 = vector.load %arg21[%c31, %c1_81, %c0_82] : memref<41x15x2xf32, #tpu.memory_space<vmem>>, vector<1x13x2xf32>
    %126 = vector.shape_cast %125 : vector<1x13x2xf32> to vector<13x2xf32>
    %127 = vector.shape_cast %124 : vector<13x2xf32> to vector<1x13x2xf32>
    tpu.vector_store %arg21[%c31, %c1_81, %c0_82], %127 {strides = array<i32>} : memref<41x15x2xf32, #tpu.memory_space<vmem>>, vector<1x13x2xf32>,
    %128 = vector.extract_strided_slice %15 {offsets = [0, 56], sizes = [13, 2], strides = [1, 1]} : vector<13x66xf32> to vector<13x2xf32>
    %c32 = arith.constant 32 : index
    %c1_83 = arith.constant 1 : index
    %c0_84 = arith.constant 0 : index
    %129 = vector.load %arg21[%c32, %c1_83, %c0_84] : memref<41x15x2xf32, #tpu.memory_space<vmem>>, vector<1x13x2xf32>
    %130 = vector.shape_cast %129 : vector<1x13x2xf32> to vector<13x2xf32>
    %131 = vector.shape_cast %128 : vector<13x2xf32> to vector<1x13x2xf32>
    tpu.vector_store %arg21[%c32, %c1_83, %c0_84], %131 {strides = array<i32>} : memref<41x15x2xf32, #tpu.memory_space<vmem>>, vector<1x13x2xf32>,
    %132 = vector.extract_strided_slice %15 {offsets = [0, 58], sizes = [13, 2], strides = [1, 1]} : vector<13x66xf32> to vector<13x2xf32>
    %c33 = arith.constant 33 : index
    %c1_85 = arith.constant 1 : index
    %c0_86 = arith.constant 0 : index
    %133 = vector.load %arg21[%c33, %c1_85, %c0_86] : memref<41x15x2xf32, #tpu.memory_space<vmem>>, vector<1x13x2xf32>
    %134 = vector.shape_cast %133 : vector<1x13x2xf32> to vector<13x2xf32>
    %135 = vector.shape_cast %132 : vector<13x2xf32> to vector<1x13x2xf32>
    tpu.vector_store %arg21[%c33, %c1_85, %c0_86], %135 {strides = array<i32>} : memref<41x15x2xf32, #tpu.memory_space<vmem>>, vector<1x13x2xf32>,
    %136 = vector.extract_strided_slice %15 {offsets = [0, 60], sizes = [13, 2], strides = [1, 1]} : vector<13x66xf32> to vector<13x2xf32>
    %c34 = arith.constant 34 : index
    %c1_87 = arith.constant 1 : index
    %c0_88 = arith.constant 0 : index
    %137 = vector.load %arg21[%c34, %c1_87, %c0_88] : memref<41x15x2xf32, #tpu.memory_space<vmem>>, vector<1x13x2xf32>
    %138 = vector.shape_cast %137 : vector<1x13x2xf32> to vector<13x2xf32>
    %139 = vector.shape_cast %136 : vector<13x2xf32> to vector<1x13x2xf32>
    tpu.vector_store %arg21[%c34, %c1_87, %c0_88], %139 {strides = array<i32>} : memref<41x15x2xf32, #tpu.memory_space<vmem>>, vector<1x13x2xf32>,
    %140 = vector.extract_strided_slice %15 {offsets = [0, 62], sizes = [13, 2], strides = [1, 1]} : vector<13x66xf32> to vector<13x2xf32>
    %c35 = arith.constant 35 : index
    %c1_89 = arith.constant 1 : index
    %c0_90 = arith.constant 0 : index
    %141 = vector.load %arg21[%c35, %c1_89, %c0_90] : memref<41x15x2xf32, #tpu.memory_space<vmem>>, vector<1x13x2xf32>
    %142 = vector.shape_cast %141 : vector<1x13x2xf32> to vector<13x2xf32>
    %143 = vector.shape_cast %140 : vector<13x2xf32> to vector<1x13x2xf32>
    tpu.vector_store %arg21[%c35, %c1_89, %c0_90], %143 {strides = array<i32>} : memref<41x15x2xf32, #tpu.memory_space<vmem>>, vector<1x13x2xf32>,
    %144 = vector.extract_strided_slice %15 {offsets = [0, 64], sizes = [13, 2], strides = [1, 1]} : vector<13x66xf32> to vector<13x2xf32>
    %c36 = arith.constant 36 : index
    %c1_91 = arith.constant 1 : index
    %c0_92 = arith.constant 0 : index
    %145 = vector.load %arg21[%c36, %c1_91, %c0_92] : memref<41x15x2xf32, #tpu.memory_space<vmem>>, vector<1x13x2xf32>
    %146 = vector.shape_cast %145 : vector<1x13x2xf32> to vector<13x2xf32>
    %147 = vector.shape_cast %144 : vector<13x2xf32> to vector<1x13x2xf32>
    tpu.vector_store %arg21[%c36, %c1_91, %c0_92], %147 {strides = array<i32>} : memref<41x15x2xf32, #tpu.memory_space<vmem>>, vector<1x13x2xf32>,
    %c0_93 = arith.constant 0 : index
    %c0_94 = arith.constant 0 : index
    %148 = vector.load %arg3[%c0_93, %c0_94] : memref<54x8xbf16, #tpu.memory_space<vmem>>, vector<54x8xbf16>
    %c0_95 = arith.constant 0 : index
    %c0_96 = arith.constant 0 : index
    %149 = vector.load %arg9[%c0_95, %c0_96] : memref<1x8xf32, #tpu.memory_space<vmem>>, vector<1x8xf32>
    %c0_i32 = arith.constant 0 : i32
    %c33_i32 = arith.constant 33 : i32
    %150 = arith.addi %c0_i32, %c33_i32 : i32
    %c1_i32 = arith.constant 1 : i32
    scf.for %arg27 = %c0_i32 to %150 step %c1_i32  : i32 {
      %c1_i32_135 = arith.constant 1 : i32
      %166 = arith.muli %arg27, %c1_i32_135 : i32
      %c0_i32_136 = arith.constant 0 : i32
      %167 = arith.addi %166, %c0_i32_136 : i32
      %168 = arith.index_cast %167 : i32 to index
      %c0_137 = arith.constant 0 : index
      %c0_138 = arith.constant 0 : index
      %169 = vector.load %arg21[%168, %c0_137, %c0_138] : memref<41x15x2xf32, #tpu.memory_space<vmem>>, vector<1x15x2xf32>
      %170 = vector.shape_cast %169 : vector<1x15x2xf32> to vector<15x2xf32>
      %171 = vector.extract_strided_slice %170 {offsets = [0, 0], sizes = [13, 2], strides = [1, 1]} : vector<15x2xf32> to vector<13x2xf32>
      %172 = vector.extract_strided_slice %170 {offsets = [1, 0], sizes = [13, 2], strides = [1, 1]} : vector<15x2xf32> to vector<13x2xf32>
      %173 = vector.extract_strided_slice %170 {offsets = [2, 0], sizes = [13, 2], strides = [1, 1]} : vector<15x2xf32> to vector<13x2xf32>
      %c1_i32_139 = arith.constant 1 : i32
      %174 = arith.addi %166, %c1_i32_139 : i32
      %175 = arith.index_cast %174 : i32 to index
      %c0_140 = arith.constant 0 : index
      %c0_141 = arith.constant 0 : index
      %176 = vector.load %arg21[%175, %c0_140, %c0_141] : memref<41x15x2xf32, #tpu.memory_space<vmem>>, vector<1x15x2xf32>
      %177 = vector.shape_cast %176 : vector<1x15x2xf32> to vector<15x2xf32>
      %178 = vector.extract_strided_slice %177 {offsets = [0, 0], sizes = [13, 2], strides = [1, 1]} : vector<15x2xf32> to vector<13x2xf32>
      %179 = vector.extract_strided_slice %177 {offsets = [1, 0], sizes = [13, 2], strides = [1, 1]} : vector<15x2xf32> to vector<13x2xf32>
      %180 = vector.extract_strided_slice %177 {offsets = [2, 0], sizes = [13, 2], strides = [1, 1]} : vector<15x2xf32> to vector<13x2xf32>
      %c2_i32 = arith.constant 2 : i32
      %181 = arith.addi %166, %c2_i32 : i32
      %182 = arith.index_cast %181 : i32 to index
      %c0_142 = arith.constant 0 : index
      %c0_143 = arith.constant 0 : index
      %183 = vector.load %arg21[%182, %c0_142, %c0_143] : memref<41x15x2xf32, #tpu.memory_space<vmem>>, vector<1x15x2xf32>
      %184 = vector.shape_cast %183 : vector<1x15x2xf32> to vector<15x2xf32>
      %185 = vector.extract_strided_slice %184 {offsets = [0, 0], sizes = [13, 2], strides = [1, 1]} : vector<15x2xf32> to vector<13x2xf32>
      %186 = vector.extract_strided_slice %184 {offsets = [1, 0], sizes = [13, 2], strides = [1, 1]} : vector<15x2xf32> to vector<13x2xf32>
      %187 = vector.extract_strided_slice %184 {offsets = [2, 0], sizes = [13, 2], strides = [1, 1]} : vector<15x2xf32> to vector<13x2xf32>
      %c3_i32 = arith.constant 3 : i32
      %188 = arith.addi %166, %c3_i32 : i32
      %189 = arith.index_cast %188 : i32 to index
      %c0_144 = arith.constant 0 : index
      %c0_145 = arith.constant 0 : index
      %190 = vector.load %arg21[%189, %c0_144, %c0_145] : memref<41x15x2xf32, #tpu.memory_space<vmem>>, vector<1x15x2xf32>
      %191 = vector.shape_cast %190 : vector<1x15x2xf32> to vector<15x2xf32>
      %192 = vector.extract_strided_slice %191 {offsets = [0, 0], sizes = [13, 2], strides = [1, 1]} : vector<15x2xf32> to vector<13x2xf32>
      %193 = vector.extract_strided_slice %191 {offsets = [1, 0], sizes = [13, 2], strides = [1, 1]} : vector<15x2xf32> to vector<13x2xf32>
      %194 = vector.extract_strided_slice %191 {offsets = [2, 0], sizes = [13, 2], strides = [1, 1]} : vector<15x2xf32> to vector<13x2xf32>
      %c4_i32 = arith.constant 4 : i32
      %195 = arith.addi %166, %c4_i32 : i32
      %196 = arith.index_cast %195 : i32 to index
      %c0_146 = arith.constant 0 : index
      %c0_147 = arith.constant 0 : index
      %197 = vector.load %arg21[%196, %c0_146, %c0_147] : memref<41x15x2xf32, #tpu.memory_space<vmem>>, vector<1x15x2xf32>
      %198 = vector.shape_cast %197 : vector<1x15x2xf32> to vector<15x2xf32>
      %199 = vector.extract_strided_slice %198 {offsets = [0, 0], sizes = [13, 2], strides = [1, 1]} : vector<15x2xf32> to vector<13x2xf32>
      %200 = vector.extract_strided_slice %198 {offsets = [1, 0], sizes = [13, 2], strides = [1, 1]} : vector<15x2xf32> to vector<13x2xf32>
      %201 = vector.extract_strided_slice %198 {offsets = [2, 0], sizes = [13, 2], strides = [1, 1]} : vector<15x2xf32> to vector<13x2xf32>
      %c5_i32_148 = arith.constant 5 : i32
      %202 = arith.addi %166, %c5_i32_148 : i32
      %203 = arith.index_cast %202 : i32 to index
      %c0_149 = arith.constant 0 : index
      %c0_150 = arith.constant 0 : index
      %204 = vector.load %arg21[%203, %c0_149, %c0_150] : memref<41x15x2xf32, #tpu.memory_space<vmem>>, vector<1x15x2xf32>
      %205 = vector.shape_cast %204 : vector<1x15x2xf32> to vector<15x2xf32>
      %206 = vector.extract_strided_slice %205 {offsets = [0, 0], sizes = [13, 2], strides = [1, 1]} : vector<15x2xf32> to vector<13x2xf32>
      %207 = vector.extract_strided_slice %205 {offsets = [1, 0], sizes = [13, 2], strides = [1, 1]} : vector<15x2xf32> to vector<13x2xf32>
      %208 = vector.extract_strided_slice %205 {offsets = [2, 0], sizes = [13, 2], strides = [1, 1]} : vector<15x2xf32> to vector<13x2xf32>
      %c6_i32 = arith.constant 6 : i32
      %209 = arith.addi %166, %c6_i32 : i32
      %210 = arith.index_cast %209 : i32 to index
      %c0_151 = arith.constant 0 : index
      %c0_152 = arith.constant 0 : index
      %211 = vector.load %arg21[%210, %c0_151, %c0_152] : memref<41x15x2xf32, #tpu.memory_space<vmem>>, vector<1x15x2xf32>
      %212 = vector.shape_cast %211 : vector<1x15x2xf32> to vector<15x2xf32>
      %213 = vector.extract_strided_slice %212 {offsets = [0, 0], sizes = [13, 2], strides = [1, 1]} : vector<15x2xf32> to vector<13x2xf32>
      %214 = vector.extract_strided_slice %212 {offsets = [1, 0], sizes = [13, 2], strides = [1, 1]} : vector<15x2xf32> to vector<13x2xf32>
      %215 = vector.extract_strided_slice %212 {offsets = [2, 0], sizes = [13, 2], strides = [1, 1]} : vector<15x2xf32> to vector<13x2xf32>
      %c7_i32 = arith.constant 7 : i32
      %216 = arith.addi %166, %c7_i32 : i32
      %217 = arith.index_cast %216 : i32 to index
      %c0_153 = arith.constant 0 : index
      %c0_154 = arith.constant 0 : index
      %218 = vector.load %arg21[%217, %c0_153, %c0_154] : memref<41x15x2xf32, #tpu.memory_space<vmem>>, vector<1x15x2xf32>
      %219 = vector.shape_cast %218 : vector<1x15x2xf32> to vector<15x2xf32>
      %220 = vector.extract_strided_slice %219 {offsets = [0, 0], sizes = [13, 2], strides = [1, 1]} : vector<15x2xf32> to vector<13x2xf32>
      %221 = vector.extract_strided_slice %219 {offsets = [1, 0], sizes = [13, 2], strides = [1, 1]} : vector<15x2xf32> to vector<13x2xf32>
      %222 = vector.extract_strided_slice %219 {offsets = [2, 0], sizes = [13, 2], strides = [1, 1]} : vector<15x2xf32> to vector<13x2xf32>
      %c8_i32 = arith.constant 8 : i32
      %223 = arith.addi %166, %c8_i32 : i32
      %224 = arith.index_cast %223 : i32 to index
      %c0_155 = arith.constant 0 : index
      %c0_156 = arith.constant 0 : index
      %225 = vector.load %arg21[%224, %c0_155, %c0_156] : memref<41x15x2xf32, #tpu.memory_space<vmem>>, vector<1x15x2xf32>
      %226 = vector.shape_cast %225 : vector<1x15x2xf32> to vector<15x2xf32>
      %227 = vector.extract_strided_slice %226 {offsets = [0, 0], sizes = [13, 2], strides = [1, 1]} : vector<15x2xf32> to vector<13x2xf32>
      %228 = vector.extract_strided_slice %226 {offsets = [1, 0], sizes = [13, 2], strides = [1, 1]} : vector<15x2xf32> to vector<13x2xf32>
      %229 = vector.extract_strided_slice %226 {offsets = [2, 0], sizes = [13, 2], strides = [1, 1]} : vector<15x2xf32> to vector<13x2xf32>
      %230 = tpu.concatenate %171, %172, %173, %178, %179, %180, %185, %186, %187, %192, %193, %194, %199, %200, %201, %206 in 1 : vector<13x2xf32>, vector<13x2xf32>, vector<13x2xf32>, vector<13x2xf32>, vector<13x2xf32>, vector<13x2xf32>, vector<13x2xf32>, vector<13x2xf32>, vector<13x2xf32>, vector<13x2xf32>, vector<13x2xf32>, vector<13x2xf32>, vector<13x2xf32>, vector<13x2xf32>, vector<13x2xf32>, vector<13x2xf32> -> vector<13x32xf32>
      %231 = tpu.concatenate %207, %208, %213, %214, %215, %220, %221, %222, %227, %228, %229 in 1 : vector<13x2xf32>, vector<13x2xf32>, vector<13x2xf32>, vector<13x2xf32>, vector<13x2xf32>, vector<13x2xf32>, vector<13x2xf32>, vector<13x2xf32>, vector<13x2xf32>, vector<13x2xf32>, vector<13x2xf32> -> vector<13x22xf32>
      %232 = tpu.concatenate %230, %231 in 1 : vector<13x32xf32>, vector<13x22xf32> -> vector<13x54xf32>
      %233 = arith.truncf %232 : vector<13x54xf32> to vector<13x54xbf16>
      %cst_157 = arith.constant dense<0.000000e+00> : vector<13x8xf32>
      %234 = tpu.matmul %233, %148, %cst_157 {dimension_numbers = #tpu.dot_dimension_numbers<[1], [0], [0], [1], [0, 0, 1, 1], [], []>} : vector<13x54xbf16>, vector<54x8xbf16>, vector<13x8xf32> -> vector<13x8xf32>
      %235 = vector.broadcast %149 : vector<1x8xf32> to vector<13x8xf32>
      %236 = arith.addf %234, %235 : vector<13x8xf32>
      %cst_158 = arith.constant 0.000000e+00 : f32
      %237 = vector.broadcast %cst_158 : f32 to vector<13x8xf32>
      %238 = arith.cmpf oge, %236, %237 : vector<13x8xf32>
      %cst_159 = arith.constant 2.000000e-01 : f32
      %239 = vector.broadcast %cst_159 : f32 to vector<13x8xf32>
      %240 = arith.mulf %239, %236 : vector<13x8xf32>
      %241 = arith.select %238, %236, %240 : vector<13x8xi1>, vector<13x8xf32>
      %c0_160 = arith.constant 0 : index
      %242 = arith.index_cast %arg27 : i32 to index
      %c0_161 = arith.constant 0 : index
      %c0_162 = arith.constant 0 : index
      %243 = vector.load %arg15[%c0_160, %242, %c0_161, %c0_162] : memref<1x33x13x8xf32, #tpu.memory_space<vmem>>, vector<1x1x13x8xf32>
      %244 = vector.shape_cast %243 : vector<1x1x13x8xf32> to vector<13x8xf32>
      %245 = vector.shape_cast %241 : vector<13x8xf32> to vector<1x1x13x8xf32>
      tpu.vector_store %arg15[%c0_160, %242, %c0_161, %c0_162], %245 {strides = array<i32>} : memref<1x33x13x8xf32, #tpu.memory_space<vmem>>, vector<1x1x13x8xf32>,
      %c4_i32_163 = arith.constant 4 : i32
      %246 = arith.addi %arg27, %c4_i32_163 : i32
      %247 = arith.index_cast %246 : i32 to index
      %c1_164 = arith.constant 1 : index
      %c0_165 = arith.constant 0 : index
      %248 = vector.load %arg22[%247, %c1_164, %c0_165] : memref<41x15x8xf32, #tpu.memory_space<vmem>>, vector<1x13x8xf32>
      %249 = vector.shape_cast %248 : vector<1x13x8xf32> to vector<13x8xf32>
      %250 = vector.shape_cast %241 : vector<13x8xf32> to vector<1x13x8xf32>
      tpu.vector_store %arg22[%247, %c1_164, %c0_165], %250 {strides = array<i32>} : memref<41x15x8xf32, #tpu.memory_space<vmem>>, vector<1x13x8xf32>,
    }
    %c33_i32_97 = arith.constant 33 : i32
    %c0_98 = arith.constant 0 : index
    %c0_99 = arith.constant 0 : index
    %151 = vector.load %arg4[%c0_98, %c0_99] : memref<216x8xbf16, #tpu.memory_space<vmem>>, vector<216x8xbf16>
    %c0_100 = arith.constant 0 : index
    %c0_101 = arith.constant 0 : index
    %152 = vector.load %arg10[%c0_100, %c0_101] : memref<1x8xf32, #tpu.memory_space<vmem>>, vector<1x8xf32>
    %c0_i32_102 = arith.constant 0 : i32
    %c17_i32 = arith.constant 17 : i32
    %153 = arith.addi %c0_i32_102, %c17_i32 : i32
    %c1_i32_103 = arith.constant 1 : i32
    scf.for %arg27 = %c0_i32_102 to %153 step %c1_i32_103  : i32 {
      %c2_i32 = arith.constant 2 : i32
      %166 = arith.muli %arg27, %c2_i32 : i32
      %c0_i32_135 = arith.constant 0 : i32
      %167 = arith.addi %166, %c0_i32_135 : i32
      %168 = arith.index_cast %167 : i32 to index
      %c0_136 = arith.constant 0 : index
      %c0_137 = arith.constant 0 : index
      %169 = vector.load %arg22[%168, %c0_136, %c0_137] : memref<41x15x8xf32, #tpu.memory_space<vmem>>, vector<1x15x8xf32>
      %170 = vector.shape_cast %169 : vector<1x15x8xf32> to vector<15x8xf32>
      %171 = vector.extract_strided_slice %170 {offsets = [0, 0], sizes = [13, 8], strides = [1, 1]} : vector<15x8xf32> to vector<13x8xf32>
      %172 = vector.extract_strided_slice %170 {offsets = [1, 0], sizes = [13, 8], strides = [1, 1]} : vector<15x8xf32> to vector<13x8xf32>
      %173 = vector.extract_strided_slice %170 {offsets = [2, 0], sizes = [13, 8], strides = [1, 1]} : vector<15x8xf32> to vector<13x8xf32>
      %c1_i32_138 = arith.constant 1 : i32
      %174 = arith.addi %166, %c1_i32_138 : i32
      %175 = arith.index_cast %174 : i32 to index
      %c0_139 = arith.constant 0 : index
      %c0_140 = arith.constant 0 : index
      %176 = vector.load %arg22[%175, %c0_139, %c0_140] : memref<41x15x8xf32, #tpu.memory_space<vmem>>, vector<1x15x8xf32>
      %177 = vector.shape_cast %176 : vector<1x15x8xf32> to vector<15x8xf32>
      %178 = vector.extract_strided_slice %177 {offsets = [0, 0], sizes = [13, 8], strides = [1, 1]} : vector<15x8xf32> to vector<13x8xf32>
      %179 = vector.extract_strided_slice %177 {offsets = [1, 0], sizes = [13, 8], strides = [1, 1]} : vector<15x8xf32> to vector<13x8xf32>
      %180 = vector.extract_strided_slice %177 {offsets = [2, 0], sizes = [13, 8], strides = [1, 1]} : vector<15x8xf32> to vector<13x8xf32>
      %c2_i32_141 = arith.constant 2 : i32
      %181 = arith.addi %166, %c2_i32_141 : i32
      %182 = arith.index_cast %181 : i32 to index
      %c0_142 = arith.constant 0 : index
      %c0_143 = arith.constant 0 : index
      %183 = vector.load %arg22[%182, %c0_142, %c0_143] : memref<41x15x8xf32, #tpu.memory_space<vmem>>, vector<1x15x8xf32>
      %184 = vector.shape_cast %183 : vector<1x15x8xf32> to vector<15x8xf32>
      %185 = vector.extract_strided_slice %184 {offsets = [0, 0], sizes = [13, 8], strides = [1, 1]} : vector<15x8xf32> to vector<13x8xf32>
      %186 = vector.extract_strided_slice %184 {offsets = [1, 0], sizes = [13, 8], strides = [1, 1]} : vector<15x8xf32> to vector<13x8xf32>
      %187 = vector.extract_strided_slice %184 {offsets = [2, 0], sizes = [13, 8], strides = [1, 1]} : vector<15x8xf32> to vector<13x8xf32>
      %c3_i32 = arith.constant 3 : i32
      %188 = arith.addi %166, %c3_i32 : i32
      %189 = arith.index_cast %188 : i32 to index
      %c0_144 = arith.constant 0 : index
      %c0_145 = arith.constant 0 : index
      %190 = vector.load %arg22[%189, %c0_144, %c0_145] : memref<41x15x8xf32, #tpu.memory_space<vmem>>, vector<1x15x8xf32>
      %191 = vector.shape_cast %190 : vector<1x15x8xf32> to vector<15x8xf32>
      %192 = vector.extract_strided_slice %191 {offsets = [0, 0], sizes = [13, 8], strides = [1, 1]} : vector<15x8xf32> to vector<13x8xf32>
      %193 = vector.extract_strided_slice %191 {offsets = [1, 0], sizes = [13, 8], strides = [1, 1]} : vector<15x8xf32> to vector<13x8xf32>
      %194 = vector.extract_strided_slice %191 {offsets = [2, 0], sizes = [13, 8], strides = [1, 1]} : vector<15x8xf32> to vector<13x8xf32>
      %c4_i32 = arith.constant 4 : i32
      %195 = arith.addi %166, %c4_i32 : i32
      %196 = arith.index_cast %195 : i32 to index
      %c0_146 = arith.constant 0 : index
      %c0_147 = arith.constant 0 : index
      %197 = vector.load %arg22[%196, %c0_146, %c0_147] : memref<41x15x8xf32, #tpu.memory_space<vmem>>, vector<1x15x8xf32>
      %198 = vector.shape_cast %197 : vector<1x15x8xf32> to vector<15x8xf32>
      %199 = vector.extract_strided_slice %198 {offsets = [0, 0], sizes = [13, 8], strides = [1, 1]} : vector<15x8xf32> to vector<13x8xf32>
      %200 = vector.extract_strided_slice %198 {offsets = [1, 0], sizes = [13, 8], strides = [1, 1]} : vector<15x8xf32> to vector<13x8xf32>
      %201 = vector.extract_strided_slice %198 {offsets = [2, 0], sizes = [13, 8], strides = [1, 1]} : vector<15x8xf32> to vector<13x8xf32>
      %c5_i32_148 = arith.constant 5 : i32
      %202 = arith.addi %166, %c5_i32_148 : i32
      %203 = arith.index_cast %202 : i32 to index
      %c0_149 = arith.constant 0 : index
      %c0_150 = arith.constant 0 : index
      %204 = vector.load %arg22[%203, %c0_149, %c0_150] : memref<41x15x8xf32, #tpu.memory_space<vmem>>, vector<1x15x8xf32>
      %205 = vector.shape_cast %204 : vector<1x15x8xf32> to vector<15x8xf32>
      %206 = vector.extract_strided_slice %205 {offsets = [0, 0], sizes = [13, 8], strides = [1, 1]} : vector<15x8xf32> to vector<13x8xf32>
      %207 = vector.extract_strided_slice %205 {offsets = [1, 0], sizes = [13, 8], strides = [1, 1]} : vector<15x8xf32> to vector<13x8xf32>
      %208 = vector.extract_strided_slice %205 {offsets = [2, 0], sizes = [13, 8], strides = [1, 1]} : vector<15x8xf32> to vector<13x8xf32>
      %c6_i32 = arith.constant 6 : i32
      %209 = arith.addi %166, %c6_i32 : i32
      %210 = arith.index_cast %209 : i32 to index
      %c0_151 = arith.constant 0 : index
      %c0_152 = arith.constant 0 : index
      %211 = vector.load %arg22[%210, %c0_151, %c0_152] : memref<41x15x8xf32, #tpu.memory_space<vmem>>, vector<1x15x8xf32>
      %212 = vector.shape_cast %211 : vector<1x15x8xf32> to vector<15x8xf32>
      %213 = vector.extract_strided_slice %212 {offsets = [0, 0], sizes = [13, 8], strides = [1, 1]} : vector<15x8xf32> to vector<13x8xf32>
      %214 = vector.extract_strided_slice %212 {offsets = [1, 0], sizes = [13, 8], strides = [1, 1]} : vector<15x8xf32> to vector<13x8xf32>
      %215 = vector.extract_strided_slice %212 {offsets = [2, 0], sizes = [13, 8], strides = [1, 1]} : vector<15x8xf32> to vector<13x8xf32>
      %c7_i32 = arith.constant 7 : i32
      %216 = arith.addi %166, %c7_i32 : i32
      %217 = arith.index_cast %216 : i32 to index
      %c0_153 = arith.constant 0 : index
      %c0_154 = arith.constant 0 : index
      %218 = vector.load %arg22[%217, %c0_153, %c0_154] : memref<41x15x8xf32, #tpu.memory_space<vmem>>, vector<1x15x8xf32>
      %219 = vector.shape_cast %218 : vector<1x15x8xf32> to vector<15x8xf32>
      %220 = vector.extract_strided_slice %219 {offsets = [0, 0], sizes = [13, 8], strides = [1, 1]} : vector<15x8xf32> to vector<13x8xf32>
      %221 = vector.extract_strided_slice %219 {offsets = [1, 0], sizes = [13, 8], strides = [1, 1]} : vector<15x8xf32> to vector<13x8xf32>
      %222 = vector.extract_strided_slice %219 {offsets = [2, 0], sizes = [13, 8], strides = [1, 1]} : vector<15x8xf32> to vector<13x8xf32>
      %c8_i32 = arith.constant 8 : i32
      %223 = arith.addi %166, %c8_i32 : i32
      %224 = arith.index_cast %223 : i32 to index
      %c0_155 = arith.constant 0 : index
      %c0_156 = arith.constant 0 : index
      %225 = vector.load %arg22[%224, %c0_155, %c0_156] : memref<41x15x8xf32, #tpu.memory_space<vmem>>, vector<1x15x8xf32>
      %226 = vector.shape_cast %225 : vector<1x15x8xf32> to vector<15x8xf32>
      %227 = vector.extract_strided_slice %226 {offsets = [0, 0], sizes = [13, 8], strides = [1, 1]} : vector<15x8xf32> to vector<13x8xf32>
      %228 = vector.extract_strided_slice %226 {offsets = [1, 0], sizes = [13, 8], strides = [1, 1]} : vector<15x8xf32> to vector<13x8xf32>
      %229 = vector.extract_strided_slice %226 {offsets = [2, 0], sizes = [13, 8], strides = [1, 1]} : vector<15x8xf32> to vector<13x8xf32>
      %230 = tpu.concatenate %171, %172, %173, %178, %179, %180, %185, %186, %187, %192, %193, %194, %199, %200, %201, %206 in 1 : vector<13x8xf32>, vector<13x8xf32>, vector<13x8xf32>, vector<13x8xf32>, vector<13x8xf32>, vector<13x8xf32>, vector<13x8xf32>, vector<13x8xf32>, vector<13x8xf32>, vector<13x8xf32>, vector<13x8xf32>, vector<13x8xf32>, vector<13x8xf32>, vector<13x8xf32>, vector<13x8xf32>, vector<13x8xf32> -> vector<13x128xf32>
      %231 = tpu.concatenate %207, %208, %213, %214, %215, %220, %221, %222, %227, %228, %229 in 1 : vector<13x8xf32>, vector<13x8xf32>, vector<13x8xf32>, vector<13x8xf32>, vector<13x8xf32>, vector<13x8xf32>, vector<13x8xf32>, vector<13x8xf32>, vector<13x8xf32>, vector<13x8xf32>, vector<13x8xf32> -> vector<13x88xf32>
      %232 = tpu.concatenate %230, %231 in 1 : vector<13x128xf32>, vector<13x88xf32> -> vector<13x216xf32>
      %233 = arith.truncf %232 : vector<13x216xf32> to vector<13x216xbf16>
      %cst_157 = arith.constant dense<0.000000e+00> : vector<13x8xf32>
      %234 = tpu.matmul %233, %151, %cst_157 {dimension_numbers = #tpu.dot_dimension_numbers<[1], [0], [0], [1], [0, 0, 1, 1], [], []>} : vector<13x216xbf16>, vector<216x8xbf16>, vector<13x8xf32> -> vector<13x8xf32>
      %235 = vector.broadcast %152 : vector<1x8xf32> to vector<13x8xf32>
      %236 = arith.addf %234, %235 : vector<13x8xf32>
      %cst_158 = arith.constant 0.000000e+00 : f32
      %237 = vector.broadcast %cst_158 : f32 to vector<13x8xf32>
      %238 = arith.cmpf oge, %236, %237 : vector<13x8xf32>
      %cst_159 = arith.constant 2.000000e-01 : f32
      %239 = vector.broadcast %cst_159 : f32 to vector<13x8xf32>
      %240 = arith.mulf %239, %236 : vector<13x8xf32>
      %241 = arith.select %238, %236, %240 : vector<13x8xi1>, vector<13x8xf32>
      %c0_160 = arith.constant 0 : index
      %242 = arith.index_cast %arg27 : i32 to index
      %c0_161 = arith.constant 0 : index
      %c0_162 = arith.constant 0 : index
      %243 = vector.load %arg16[%c0_160, %242, %c0_161, %c0_162] : memref<1x17x13x8xf32, #tpu.memory_space<vmem>>, vector<1x1x13x8xf32>
      %244 = vector.shape_cast %243 : vector<1x1x13x8xf32> to vector<13x8xf32>
      %245 = vector.shape_cast %241 : vector<13x8xf32> to vector<1x1x13x8xf32>
      tpu.vector_store %arg16[%c0_160, %242, %c0_161, %c0_162], %245 {strides = array<i32>} : memref<1x17x13x8xf32, #tpu.memory_space<vmem>>, vector<1x1x13x8xf32>,
      %c4_i32_163 = arith.constant 4 : i32
      %246 = arith.addi %arg27, %c4_i32_163 : i32
      %247 = arith.index_cast %246 : i32 to index
      %c2 = arith.constant 2 : index
      %c0_164 = arith.constant 0 : index
      %248 = vector.load %arg23[%247, %c2, %c0_164] : memref<25x17x8xf32, #tpu.memory_space<vmem>>, vector<1x13x8xf32>
      %249 = vector.shape_cast %248 : vector<1x13x8xf32> to vector<13x8xf32>
      %250 = vector.shape_cast %241 : vector<13x8xf32> to vector<1x13x8xf32>
      tpu.vector_store %arg23[%247, %c2, %c0_164], %250 {strides = array<i32>} : memref<25x17x8xf32, #tpu.memory_space<vmem>>, vector<1x13x8xf32>,
    }
    %c17_i32_104 = arith.constant 17 : i32
    %c0_105 = arith.constant 0 : index
    %c0_106 = arith.constant 0 : index
    %154 = vector.load %arg5[%c0_105, %c0_106] : memref<216x8xbf16, #tpu.memory_space<vmem>>, vector<216x8xbf16>
    %c0_107 = arith.constant 0 : index
    %c0_108 = arith.constant 0 : index
    %155 = vector.load %arg11[%c0_107, %c0_108] : memref<1x8xf32, #tpu.memory_space<vmem>>, vector<1x8xf32>
    %c0_i32_109 = arith.constant 0 : i32
    %c9_i32 = arith.constant 9 : i32
    %156 = arith.addi %c0_i32_109, %c9_i32 : i32
    %c1_i32_110 = arith.constant 1 : i32
    scf.for %arg27 = %c0_i32_109 to %156 step %c1_i32_110  : i32 {
      %c2_i32 = arith.constant 2 : i32
      %166 = arith.muli %arg27, %c2_i32 : i32
      %c0_i32_135 = arith.constant 0 : i32
      %167 = arith.addi %166, %c0_i32_135 : i32
      %168 = arith.index_cast %167 : i32 to index
      %c0_136 = arith.constant 0 : index
      %c0_137 = arith.constant 0 : index
      %169 = vector.load %arg23[%168, %c0_136, %c0_137] : memref<25x17x8xf32, #tpu.memory_space<vmem>>, vector<1x17x8xf32>
      %170 = vector.shape_cast %169 : vector<1x17x8xf32> to vector<17x8xf32>
      %171 = vector.extract_strided_slice %170 {offsets = [0, 0], sizes = [13, 8], strides = [1, 1]} : vector<17x8xf32> to vector<13x8xf32>
      %172 = vector.extract_strided_slice %170 {offsets = [2, 0], sizes = [13, 8], strides = [1, 1]} : vector<17x8xf32> to vector<13x8xf32>
      %173 = vector.extract_strided_slice %170 {offsets = [4, 0], sizes = [13, 8], strides = [1, 1]} : vector<17x8xf32> to vector<13x8xf32>
      %c1_i32_138 = arith.constant 1 : i32
      %174 = arith.addi %166, %c1_i32_138 : i32
      %175 = arith.index_cast %174 : i32 to index
      %c0_139 = arith.constant 0 : index
      %c0_140 = arith.constant 0 : index
      %176 = vector.load %arg23[%175, %c0_139, %c0_140] : memref<25x17x8xf32, #tpu.memory_space<vmem>>, vector<1x17x8xf32>
      %177 = vector.shape_cast %176 : vector<1x17x8xf32> to vector<17x8xf32>
      %178 = vector.extract_strided_slice %177 {offsets = [0, 0], sizes = [13, 8], strides = [1, 1]} : vector<17x8xf32> to vector<13x8xf32>
      %179 = vector.extract_strided_slice %177 {offsets = [2, 0], sizes = [13, 8], strides = [1, 1]} : vector<17x8xf32> to vector<13x8xf32>
      %180 = vector.extract_strided_slice %177 {offsets = [4, 0], sizes = [13, 8], strides = [1, 1]} : vector<17x8xf32> to vector<13x8xf32>
      %c2_i32_141 = arith.constant 2 : i32
      %181 = arith.addi %166, %c2_i32_141 : i32
      %182 = arith.index_cast %181 : i32 to index
      %c0_142 = arith.constant 0 : index
      %c0_143 = arith.constant 0 : index
      %183 = vector.load %arg23[%182, %c0_142, %c0_143] : memref<25x17x8xf32, #tpu.memory_space<vmem>>, vector<1x17x8xf32>
      %184 = vector.shape_cast %183 : vector<1x17x8xf32> to vector<17x8xf32>
      %185 = vector.extract_strided_slice %184 {offsets = [0, 0], sizes = [13, 8], strides = [1, 1]} : vector<17x8xf32> to vector<13x8xf32>
      %186 = vector.extract_strided_slice %184 {offsets = [2, 0], sizes = [13, 8], strides = [1, 1]} : vector<17x8xf32> to vector<13x8xf32>
      %187 = vector.extract_strided_slice %184 {offsets = [4, 0], sizes = [13, 8], strides = [1, 1]} : vector<17x8xf32> to vector<13x8xf32>
      %c3_i32 = arith.constant 3 : i32
      %188 = arith.addi %166, %c3_i32 : i32
      %189 = arith.index_cast %188 : i32 to index
      %c0_144 = arith.constant 0 : index
      %c0_145 = arith.constant 0 : index
      %190 = vector.load %arg23[%189, %c0_144, %c0_145] : memref<25x17x8xf32, #tpu.memory_space<vmem>>, vector<1x17x8xf32>
      %191 = vector.shape_cast %190 : vector<1x17x8xf32> to vector<17x8xf32>
      %192 = vector.extract_strided_slice %191 {offsets = [0, 0], sizes = [13, 8], strides = [1, 1]} : vector<17x8xf32> to vector<13x8xf32>
      %193 = vector.extract_strided_slice %191 {offsets = [2, 0], sizes = [13, 8], strides = [1, 1]} : vector<17x8xf32> to vector<13x8xf32>
      %194 = vector.extract_strided_slice %191 {offsets = [4, 0], sizes = [13, 8], strides = [1, 1]} : vector<17x8xf32> to vector<13x8xf32>
      %c4_i32 = arith.constant 4 : i32
      %195 = arith.addi %166, %c4_i32 : i32
      %196 = arith.index_cast %195 : i32 to index
      %c0_146 = arith.constant 0 : index
      %c0_147 = arith.constant 0 : index
      %197 = vector.load %arg23[%196, %c0_146, %c0_147] : memref<25x17x8xf32, #tpu.memory_space<vmem>>, vector<1x17x8xf32>
      %198 = vector.shape_cast %197 : vector<1x17x8xf32> to vector<17x8xf32>
      %199 = vector.extract_strided_slice %198 {offsets = [0, 0], sizes = [13, 8], strides = [1, 1]} : vector<17x8xf32> to vector<13x8xf32>
      %200 = vector.extract_strided_slice %198 {offsets = [2, 0], sizes = [13, 8], strides = [1, 1]} : vector<17x8xf32> to vector<13x8xf32>
      %201 = vector.extract_strided_slice %198 {offsets = [4, 0], sizes = [13, 8], strides = [1, 1]} : vector<17x8xf32> to vector<13x8xf32>
      %c5_i32_148 = arith.constant 5 : i32
      %202 = arith.addi %166, %c5_i32_148 : i32
      %203 = arith.index_cast %202 : i32 to index
      %c0_149 = arith.constant 0 : index
      %c0_150 = arith.constant 0 : index
      %204 = vector.load %arg23[%203, %c0_149, %c0_150] : memref<25x17x8xf32, #tpu.memory_space<vmem>>, vector<1x17x8xf32>
      %205 = vector.shape_cast %204 : vector<1x17x8xf32> to vector<17x8xf32>
      %206 = vector.extract_strided_slice %205 {offsets = [0, 0], sizes = [13, 8], strides = [1, 1]} : vector<17x8xf32> to vector<13x8xf32>
      %207 = vector.extract_strided_slice %205 {offsets = [2, 0], sizes = [13, 8], strides = [1, 1]} : vector<17x8xf32> to vector<13x8xf32>
      %208 = vector.extract_strided_slice %205 {offsets = [4, 0], sizes = [13, 8], strides = [1, 1]} : vector<17x8xf32> to vector<13x8xf32>
      %c6_i32 = arith.constant 6 : i32
      %209 = arith.addi %166, %c6_i32 : i32
      %210 = arith.index_cast %209 : i32 to index
      %c0_151 = arith.constant 0 : index
      %c0_152 = arith.constant 0 : index
      %211 = vector.load %arg23[%210, %c0_151, %c0_152] : memref<25x17x8xf32, #tpu.memory_space<vmem>>, vector<1x17x8xf32>
      %212 = vector.shape_cast %211 : vector<1x17x8xf32> to vector<17x8xf32>
      %213 = vector.extract_strided_slice %212 {offsets = [0, 0], sizes = [13, 8], strides = [1, 1]} : vector<17x8xf32> to vector<13x8xf32>
      %214 = vector.extract_strided_slice %212 {offsets = [2, 0], sizes = [13, 8], strides = [1, 1]} : vector<17x8xf32> to vector<13x8xf32>
      %215 = vector.extract_strided_slice %212 {offsets = [4, 0], sizes = [13, 8], strides = [1, 1]} : vector<17x8xf32> to vector<13x8xf32>
      %c7_i32 = arith.constant 7 : i32
      %216 = arith.addi %166, %c7_i32 : i32
      %217 = arith.index_cast %216 : i32 to index
      %c0_153 = arith.constant 0 : index
      %c0_154 = arith.constant 0 : index
      %218 = vector.load %arg23[%217, %c0_153, %c0_154] : memref<25x17x8xf32, #tpu.memory_space<vmem>>, vector<1x17x8xf32>
      %219 = vector.shape_cast %218 : vector<1x17x8xf32> to vector<17x8xf32>
      %220 = vector.extract_strided_slice %219 {offsets = [0, 0], sizes = [13, 8], strides = [1, 1]} : vector<17x8xf32> to vector<13x8xf32>
      %221 = vector.extract_strided_slice %219 {offsets = [2, 0], sizes = [13, 8], strides = [1, 1]} : vector<17x8xf32> to vector<13x8xf32>
      %222 = vector.extract_strided_slice %219 {offsets = [4, 0], sizes = [13, 8], strides = [1, 1]} : vector<17x8xf32> to vector<13x8xf32>
      %c8_i32 = arith.constant 8 : i32
      %223 = arith.addi %166, %c8_i32 : i32
      %224 = arith.index_cast %223 : i32 to index
      %c0_155 = arith.constant 0 : index
      %c0_156 = arith.constant 0 : index
      %225 = vector.load %arg23[%224, %c0_155, %c0_156] : memref<25x17x8xf32, #tpu.memory_space<vmem>>, vector<1x17x8xf32>
      %226 = vector.shape_cast %225 : vector<1x17x8xf32> to vector<17x8xf32>
      %227 = vector.extract_strided_slice %226 {offsets = [0, 0], sizes = [13, 8], strides = [1, 1]} : vector<17x8xf32> to vector<13x8xf32>
      %228 = vector.extract_strided_slice %226 {offsets = [2, 0], sizes = [13, 8], strides = [1, 1]} : vector<17x8xf32> to vector<13x8xf32>
      %229 = vector.extract_strided_slice %226 {offsets = [4, 0], sizes = [13, 8], strides = [1, 1]} : vector<17x8xf32> to vector<13x8xf32>
      %230 = tpu.concatenate %171, %172, %173, %178, %179, %180, %185, %186, %187, %192, %193, %194, %199, %200, %201, %206 in 1 : vector<13x8xf32>, vector<13x8xf32>, vector<13x8xf32>, vector<13x8xf32>, vector<13x8xf32>, vector<13x8xf32>, vector<13x8xf32>, vector<13x8xf32>, vector<13x8xf32>, vector<13x8xf32>, vector<13x8xf32>, vector<13x8xf32>, vector<13x8xf32>, vector<13x8xf32>, vector<13x8xf32>, vector<13x8xf32> -> vector<13x128xf32>
      %231 = tpu.concatenate %207, %208, %213, %214, %215, %220, %221, %222, %227, %228, %229 in 1 : vector<13x8xf32>, vector<13x8xf32>, vector<13x8xf32>, vector<13x8xf32>, vector<13x8xf32>, vector<13x8xf32>, vector<13x8xf32>, vector<13x8xf32>, vector<13x8xf32>, vector<13x8xf32>, vector<13x8xf32> -> vector<13x88xf32>
      %232 = tpu.concatenate %230, %231 in 1 : vector<13x128xf32>, vector<13x88xf32> -> vector<13x216xf32>
      %233 = arith.truncf %232 : vector<13x216xf32> to vector<13x216xbf16>
      %cst_157 = arith.constant dense<0.000000e+00> : vector<13x8xf32>
      %234 = tpu.matmul %233, %154, %cst_157 {dimension_numbers = #tpu.dot_dimension_numbers<[1], [0], [0], [1], [0, 0, 1, 1], [], []>} : vector<13x216xbf16>, vector<216x8xbf16>, vector<13x8xf32> -> vector<13x8xf32>
      %235 = vector.broadcast %155 : vector<1x8xf32> to vector<13x8xf32>
      %236 = arith.addf %234, %235 : vector<13x8xf32>
      %cst_158 = arith.constant 0.000000e+00 : f32
      %237 = vector.broadcast %cst_158 : f32 to vector<13x8xf32>
      %238 = arith.cmpf oge, %236, %237 : vector<13x8xf32>
      %cst_159 = arith.constant 2.000000e-01 : f32
      %239 = vector.broadcast %cst_159 : f32 to vector<13x8xf32>
      %240 = arith.mulf %239, %236 : vector<13x8xf32>
      %241 = arith.select %238, %236, %240 : vector<13x8xi1>, vector<13x8xf32>
      %c0_160 = arith.constant 0 : index
      %242 = arith.index_cast %arg27 : i32 to index
      %c0_161 = arith.constant 0 : index
      %c0_162 = arith.constant 0 : index
      %243 = vector.load %arg17[%c0_160, %242, %c0_161, %c0_162] : memref<1x9x13x8xf32, #tpu.memory_space<vmem>>, vector<1x1x13x8xf32>
      %244 = vector.shape_cast %243 : vector<1x1x13x8xf32> to vector<13x8xf32>
      %245 = vector.shape_cast %241 : vector<13x8xf32> to vector<1x1x13x8xf32>
      tpu.vector_store %arg17[%c0_160, %242, %c0_161, %c0_162], %245 {strides = array<i32>} : memref<1x9x13x8xf32, #tpu.memory_space<vmem>>, vector<1x1x13x8xf32>,
      %c4_i32_163 = arith.constant 4 : i32
      %246 = arith.addi %arg27, %c4_i32_163 : i32
      %247 = arith.index_cast %246 : i32 to index
      %c4_164 = arith.constant 4 : index
      %c0_165 = arith.constant 0 : index
      %248 = vector.load %arg24[%247, %c4_164, %c0_165] : memref<17x21x8xf32, #tpu.memory_space<vmem>>, vector<1x13x8xf32>
      %249 = vector.shape_cast %248 : vector<1x13x8xf32> to vector<13x8xf32>
      %250 = vector.shape_cast %241 : vector<13x8xf32> to vector<1x13x8xf32>
      tpu.vector_store %arg24[%247, %c4_164, %c0_165], %250 {strides = array<i32>} : memref<17x21x8xf32, #tpu.memory_space<vmem>>, vector<1x13x8xf32>,
    }
    %c9_i32_111 = arith.constant 9 : i32
    %c0_112 = arith.constant 0 : index
    %c0_113 = arith.constant 0 : index
    %157 = vector.load %arg6[%c0_112, %c0_113] : memref<216x8xbf16, #tpu.memory_space<vmem>>, vector<216x8xbf16>
    %c0_114 = arith.constant 0 : index
    %c0_115 = arith.constant 0 : index
    %158 = vector.load %arg12[%c0_114, %c0_115] : memref<1x8xf32, #tpu.memory_space<vmem>>, vector<1x8xf32>
    %c0_i32_116 = arith.constant 0 : i32
    %c5_i32 = arith.constant 5 : i32
    %159 = arith.addi %c0_i32_116, %c5_i32 : i32
    %c1_i32_117 = arith.constant 1 : i32
    scf.for %arg27 = %c0_i32_116 to %159 step %c1_i32_117  : i32 {
      %c2_i32 = arith.constant 2 : i32
      %166 = arith.muli %arg27, %c2_i32 : i32
      %c0_i32_135 = arith.constant 0 : i32
      %167 = arith.addi %166, %c0_i32_135 : i32
      %168 = arith.index_cast %167 : i32 to index
      %c0_136 = arith.constant 0 : index
      %c0_137 = arith.constant 0 : index
      %169 = vector.load %arg24[%168, %c0_136, %c0_137] : memref<17x21x8xf32, #tpu.memory_space<vmem>>, vector<1x21x8xf32>
      %170 = vector.shape_cast %169 : vector<1x21x8xf32> to vector<21x8xf32>
      %171 = vector.extract_strided_slice %170 {offsets = [0, 0], sizes = [13, 8], strides = [1, 1]} : vector<21x8xf32> to vector<13x8xf32>
      %172 = vector.extract_strided_slice %170 {offsets = [4, 0], sizes = [13, 8], strides = [1, 1]} : vector<21x8xf32> to vector<13x8xf32>
      %173 = vector.extract_strided_slice %170 {offsets = [8, 0], sizes = [13, 8], strides = [1, 1]} : vector<21x8xf32> to vector<13x8xf32>
      %c1_i32_138 = arith.constant 1 : i32
      %174 = arith.addi %166, %c1_i32_138 : i32
      %175 = arith.index_cast %174 : i32 to index
      %c0_139 = arith.constant 0 : index
      %c0_140 = arith.constant 0 : index
      %176 = vector.load %arg24[%175, %c0_139, %c0_140] : memref<17x21x8xf32, #tpu.memory_space<vmem>>, vector<1x21x8xf32>
      %177 = vector.shape_cast %176 : vector<1x21x8xf32> to vector<21x8xf32>
      %178 = vector.extract_strided_slice %177 {offsets = [0, 0], sizes = [13, 8], strides = [1, 1]} : vector<21x8xf32> to vector<13x8xf32>
      %179 = vector.extract_strided_slice %177 {offsets = [4, 0], sizes = [13, 8], strides = [1, 1]} : vector<21x8xf32> to vector<13x8xf32>
      %180 = vector.extract_strided_slice %177 {offsets = [8, 0], sizes = [13, 8], strides = [1, 1]} : vector<21x8xf32> to vector<13x8xf32>
      %c2_i32_141 = arith.constant 2 : i32
      %181 = arith.addi %166, %c2_i32_141 : i32
      %182 = arith.index_cast %181 : i32 to index
      %c0_142 = arith.constant 0 : index
      %c0_143 = arith.constant 0 : index
      %183 = vector.load %arg24[%182, %c0_142, %c0_143] : memref<17x21x8xf32, #tpu.memory_space<vmem>>, vector<1x21x8xf32>
      %184 = vector.shape_cast %183 : vector<1x21x8xf32> to vector<21x8xf32>
      %185 = vector.extract_strided_slice %184 {offsets = [0, 0], sizes = [13, 8], strides = [1, 1]} : vector<21x8xf32> to vector<13x8xf32>
      %186 = vector.extract_strided_slice %184 {offsets = [4, 0], sizes = [13, 8], strides = [1, 1]} : vector<21x8xf32> to vector<13x8xf32>
      %187 = vector.extract_strided_slice %184 {offsets = [8, 0], sizes = [13, 8], strides = [1, 1]} : vector<21x8xf32> to vector<13x8xf32>
      %c3_i32 = arith.constant 3 : i32
      %188 = arith.addi %166, %c3_i32 : i32
      %189 = arith.index_cast %188 : i32 to index
      %c0_144 = arith.constant 0 : index
      %c0_145 = arith.constant 0 : index
      %190 = vector.load %arg24[%189, %c0_144, %c0_145] : memref<17x21x8xf32, #tpu.memory_space<vmem>>, vector<1x21x8xf32>
      %191 = vector.shape_cast %190 : vector<1x21x8xf32> to vector<21x8xf32>
      %192 = vector.extract_strided_slice %191 {offsets = [0, 0], sizes = [13, 8], strides = [1, 1]} : vector<21x8xf32> to vector<13x8xf32>
      %193 = vector.extract_strided_slice %191 {offsets = [4, 0], sizes = [13, 8], strides = [1, 1]} : vector<21x8xf32> to vector<13x8xf32>
      %194 = vector.extract_strided_slice %191 {offsets = [8, 0], sizes = [13, 8], strides = [1, 1]} : vector<21x8xf32> to vector<13x8xf32>
      %c4_i32 = arith.constant 4 : i32
      %195 = arith.addi %166, %c4_i32 : i32
      %196 = arith.index_cast %195 : i32 to index
      %c0_146 = arith.constant 0 : index
      %c0_147 = arith.constant 0 : index
      %197 = vector.load %arg24[%196, %c0_146, %c0_147] : memref<17x21x8xf32, #tpu.memory_space<vmem>>, vector<1x21x8xf32>
      %198 = vector.shape_cast %197 : vector<1x21x8xf32> to vector<21x8xf32>
      %199 = vector.extract_strided_slice %198 {offsets = [0, 0], sizes = [13, 8], strides = [1, 1]} : vector<21x8xf32> to vector<13x8xf32>
      %200 = vector.extract_strided_slice %198 {offsets = [4, 0], sizes = [13, 8], strides = [1, 1]} : vector<21x8xf32> to vector<13x8xf32>
      %201 = vector.extract_strided_slice %198 {offsets = [8, 0], sizes = [13, 8], strides = [1, 1]} : vector<21x8xf32> to vector<13x8xf32>
      %c5_i32_148 = arith.constant 5 : i32
      %202 = arith.addi %166, %c5_i32_148 : i32
      %203 = arith.index_cast %202 : i32 to index
      %c0_149 = arith.constant 0 : index
      %c0_150 = arith.constant 0 : index
      %204 = vector.load %arg24[%203, %c0_149, %c0_150] : memref<17x21x8xf32, #tpu.memory_space<vmem>>, vector<1x21x8xf32>
      %205 = vector.shape_cast %204 : vector<1x21x8xf32> to vector<21x8xf32>
      %206 = vector.extract_strided_slice %205 {offsets = [0, 0], sizes = [13, 8], strides = [1, 1]} : vector<21x8xf32> to vector<13x8xf32>
      %207 = vector.extract_strided_slice %205 {offsets = [4, 0], sizes = [13, 8], strides = [1, 1]} : vector<21x8xf32> to vector<13x8xf32>
      %208 = vector.extract_strided_slice %205 {offsets = [8, 0], sizes = [13, 8], strides = [1, 1]} : vector<21x8xf32> to vector<13x8xf32>
      %c6_i32 = arith.constant 6 : i32
      %209 = arith.addi %166, %c6_i32 : i32
      %210 = arith.index_cast %209 : i32 to index
      %c0_151 = arith.constant 0 : index
      %c0_152 = arith.constant 0 : index
      %211 = vector.load %arg24[%210, %c0_151, %c0_152] : memref<17x21x8xf32, #tpu.memory_space<vmem>>, vector<1x21x8xf32>
      %212 = vector.shape_cast %211 : vector<1x21x8xf32> to vector<21x8xf32>
      %213 = vector.extract_strided_slice %212 {offsets = [0, 0], sizes = [13, 8], strides = [1, 1]} : vector<21x8xf32> to vector<13x8xf32>
      %214 = vector.extract_strided_slice %212 {offsets = [4, 0], sizes = [13, 8], strides = [1, 1]} : vector<21x8xf32> to vector<13x8xf32>
      %215 = vector.extract_strided_slice %212 {offsets = [8, 0], sizes = [13, 8], strides = [1, 1]} : vector<21x8xf32> to vector<13x8xf32>
      %c7_i32 = arith.constant 7 : i32
      %216 = arith.addi %166, %c7_i32 : i32
      %217 = arith.index_cast %216 : i32 to index
      %c0_153 = arith.constant 0 : index
      %c0_154 = arith.constant 0 : index
      %218 = vector.load %arg24[%217, %c0_153, %c0_154] : memref<17x21x8xf32, #tpu.memory_space<vmem>>, vector<1x21x8xf32>
      %219 = vector.shape_cast %218 : vector<1x21x8xf32> to vector<21x8xf32>
      %220 = vector.extract_strided_slice %219 {offsets = [0, 0], sizes = [13, 8], strides = [1, 1]} : vector<21x8xf32> to vector<13x8xf32>
      %221 = vector.extract_strided_slice %219 {offsets = [4, 0], sizes = [13, 8], strides = [1, 1]} : vector<21x8xf32> to vector<13x8xf32>
      %222 = vector.extract_strided_slice %219 {offsets = [8, 0], sizes = [13, 8], strides = [1, 1]} : vector<21x8xf32> to vector<13x8xf32>
      %c8_i32 = arith.constant 8 : i32
      %223 = arith.addi %166, %c8_i32 : i32
      %224 = arith.index_cast %223 : i32 to index
      %c0_155 = arith.constant 0 : index
      %c0_156 = arith.constant 0 : index
      %225 = vector.load %arg24[%224, %c0_155, %c0_156] : memref<17x21x8xf32, #tpu.memory_space<vmem>>, vector<1x21x8xf32>
      %226 = vector.shape_cast %225 : vector<1x21x8xf32> to vector<21x8xf32>
      %227 = vector.extract_strided_slice %226 {offsets = [0, 0], sizes = [13, 8], strides = [1, 1]} : vector<21x8xf32> to vector<13x8xf32>
      %228 = vector.extract_strided_slice %226 {offsets = [4, 0], sizes = [13, 8], strides = [1, 1]} : vector<21x8xf32> to vector<13x8xf32>
      %229 = vector.extract_strided_slice %226 {offsets = [8, 0], sizes = [13, 8], strides = [1, 1]} : vector<21x8xf32> to vector<13x8xf32>
      %230 = tpu.concatenate %171, %172, %173, %178, %179, %180, %185, %186, %187, %192, %193, %194, %199, %200, %201, %206 in 1 : vector<13x8xf32>, vector<13x8xf32>, vector<13x8xf32>, vector<13x8xf32>, vector<13x8xf32>, vector<13x8xf32>, vector<13x8xf32>, vector<13x8xf32>, vector<13x8xf32>, vector<13x8xf32>, vector<13x8xf32>, vector<13x8xf32>, vector<13x8xf32>, vector<13x8xf32>, vector<13x8xf32>, vector<13x8xf32> -> vector<13x128xf32>
      %231 = tpu.concatenate %207, %208, %213, %214, %215, %220, %221, %222, %227, %228, %229 in 1 : vector<13x8xf32>, vector<13x8xf32>, vector<13x8xf32>, vector<13x8xf32>, vector<13x8xf32>, vector<13x8xf32>, vector<13x8xf32>, vector<13x8xf32>, vector<13x8xf32>, vector<13x8xf32>, vector<13x8xf32> -> vector<13x88xf32>
      %232 = tpu.concatenate %230, %231 in 1 : vector<13x128xf32>, vector<13x88xf32> -> vector<13x216xf32>
      %233 = arith.truncf %232 : vector<13x216xf32> to vector<13x216xbf16>
      %cst_157 = arith.constant dense<0.000000e+00> : vector<13x8xf32>
      %234 = tpu.matmul %233, %157, %cst_157 {dimension_numbers = #tpu.dot_dimension_numbers<[1], [0], [0], [1], [0, 0, 1, 1], [], []>} : vector<13x216xbf16>, vector<216x8xbf16>, vector<13x8xf32> -> vector<13x8xf32>
      %235 = vector.broadcast %158 : vector<1x8xf32> to vector<13x8xf32>
      %236 = arith.addf %234, %235 : vector<13x8xf32>
      %cst_158 = arith.constant 0.000000e+00 : f32
      %237 = vector.broadcast %cst_158 : f32 to vector<13x8xf32>
      %238 = arith.cmpf oge, %236, %237 : vector<13x8xf32>
      %cst_159 = arith.constant 2.000000e-01 : f32
      %239 = vector.broadcast %cst_159 : f32 to vector<13x8xf32>
      %240 = arith.mulf %239, %236 : vector<13x8xf32>
      %241 = arith.select %238, %236, %240 : vector<13x8xi1>, vector<13x8xf32>
      %c0_160 = arith.constant 0 : index
      %242 = arith.index_cast %arg27 : i32 to index
      %c0_161 = arith.constant 0 : index
      %c0_162 = arith.constant 0 : index
      %243 = vector.load %arg18[%c0_160, %242, %c0_161, %c0_162] : memref<1x5x13x8xf32, #tpu.memory_space<vmem>>, vector<1x1x13x8xf32>
      %244 = vector.shape_cast %243 : vector<1x1x13x8xf32> to vector<13x8xf32>
      %245 = vector.shape_cast %241 : vector<13x8xf32> to vector<1x1x13x8xf32>
      tpu.vector_store %arg18[%c0_160, %242, %c0_161, %c0_162], %245 {strides = array<i32>} : memref<1x5x13x8xf32, #tpu.memory_space<vmem>>, vector<1x1x13x8xf32>,
      %c1_i32_163 = arith.constant 1 : i32
      %246 = arith.addi %arg27, %c1_i32_163 : i32
      %247 = arith.index_cast %246 : i32 to index
      %c1_164 = arith.constant 1 : index
      %c0_165 = arith.constant 0 : index
      %248 = vector.load %arg25[%247, %c1_164, %c0_165] : memref<7x15x8xf32, #tpu.memory_space<vmem>>, vector<1x13x8xf32>
      %249 = vector.shape_cast %248 : vector<1x13x8xf32> to vector<13x8xf32>
      %250 = vector.shape_cast %241 : vector<13x8xf32> to vector<1x13x8xf32>
      tpu.vector_store %arg25[%247, %c1_164, %c0_165], %250 {strides = array<i32>} : memref<7x15x8xf32, #tpu.memory_space<vmem>>, vector<1x13x8xf32>,
    }
    %c5_i32_118 = arith.constant 5 : i32
    %c0_119 = arith.constant 0 : index
    %c0_120 = arith.constant 0 : index
    %160 = vector.load %arg7[%c0_119, %c0_120] : memref<72x8xbf16, #tpu.memory_space<vmem>>, vector<72x8xbf16>
    %c0_121 = arith.constant 0 : index
    %c0_122 = arith.constant 0 : index
    %161 = vector.load %arg13[%c0_121, %c0_122] : memref<1x8xf32, #tpu.memory_space<vmem>>, vector<1x8xf32>
    %c0_i32_123 = arith.constant 0 : i32
    %c5_i32_124 = arith.constant 5 : i32
    %162 = arith.addi %c0_i32_123, %c5_i32_124 : i32
    %c1_i32_125 = arith.constant 1 : i32
    scf.for %arg27 = %c0_i32_123 to %162 step %c1_i32_125  : i32 {
      %c1_i32_135 = arith.constant 1 : i32
      %166 = arith.muli %arg27, %c1_i32_135 : i32
      %c0_i32_136 = arith.constant 0 : i32
      %167 = arith.addi %166, %c0_i32_136 : i32
      %168 = arith.index_cast %167 : i32 to index
      %c0_137 = arith.constant 0 : index
      %c0_138 = arith.constant 0 : index
      %169 = vector.load %arg25[%168, %c0_137, %c0_138] : memref<7x15x8xf32, #tpu.memory_space<vmem>>, vector<1x15x8xf32>
      %170 = vector.shape_cast %169 : vector<1x15x8xf32> to vector<15x8xf32>
      %171 = vector.extract_strided_slice %170 {offsets = [0, 0], sizes = [13, 8], strides = [1, 1]} : vector<15x8xf32> to vector<13x8xf32>
      %172 = vector.extract_strided_slice %170 {offsets = [1, 0], sizes = [13, 8], strides = [1, 1]} : vector<15x8xf32> to vector<13x8xf32>
      %173 = vector.extract_strided_slice %170 {offsets = [2, 0], sizes = [13, 8], strides = [1, 1]} : vector<15x8xf32> to vector<13x8xf32>
      %c1_i32_139 = arith.constant 1 : i32
      %174 = arith.addi %166, %c1_i32_139 : i32
      %175 = arith.index_cast %174 : i32 to index
      %c0_140 = arith.constant 0 : index
      %c0_141 = arith.constant 0 : index
      %176 = vector.load %arg25[%175, %c0_140, %c0_141] : memref<7x15x8xf32, #tpu.memory_space<vmem>>, vector<1x15x8xf32>
      %177 = vector.shape_cast %176 : vector<1x15x8xf32> to vector<15x8xf32>
      %178 = vector.extract_strided_slice %177 {offsets = [0, 0], sizes = [13, 8], strides = [1, 1]} : vector<15x8xf32> to vector<13x8xf32>
      %179 = vector.extract_strided_slice %177 {offsets = [1, 0], sizes = [13, 8], strides = [1, 1]} : vector<15x8xf32> to vector<13x8xf32>
      %180 = vector.extract_strided_slice %177 {offsets = [2, 0], sizes = [13, 8], strides = [1, 1]} : vector<15x8xf32> to vector<13x8xf32>
      %c2_i32 = arith.constant 2 : i32
      %181 = arith.addi %166, %c2_i32 : i32
      %182 = arith.index_cast %181 : i32 to index
      %c0_142 = arith.constant 0 : index
      %c0_143 = arith.constant 0 : index
      %183 = vector.load %arg25[%182, %c0_142, %c0_143] : memref<7x15x8xf32, #tpu.memory_space<vmem>>, vector<1x15x8xf32>
      %184 = vector.shape_cast %183 : vector<1x15x8xf32> to vector<15x8xf32>
      %185 = vector.extract_strided_slice %184 {offsets = [0, 0], sizes = [13, 8], strides = [1, 1]} : vector<15x8xf32> to vector<13x8xf32>
      %186 = vector.extract_strided_slice %184 {offsets = [1, 0], sizes = [13, 8], strides = [1, 1]} : vector<15x8xf32> to vector<13x8xf32>
      %187 = vector.extract_strided_slice %184 {offsets = [2, 0], sizes = [13, 8], strides = [1, 1]} : vector<15x8xf32> to vector<13x8xf32>
      %188 = tpu.concatenate %171, %172, %173, %178, %179, %180, %185, %186, %187 in 1 : vector<13x8xf32>, vector<13x8xf32>, vector<13x8xf32>, vector<13x8xf32>, vector<13x8xf32>, vector<13x8xf32>, vector<13x8xf32>, vector<13x8xf32>, vector<13x8xf32> -> vector<13x72xf32>
      %189 = arith.truncf %188 : vector<13x72xf32> to vector<13x72xbf16>
      %cst_144 = arith.constant dense<0.000000e+00> : vector<13x8xf32>
      %190 = tpu.matmul %189, %160, %cst_144 {dimension_numbers = #tpu.dot_dimension_numbers<[1], [0], [0], [1], [0, 0, 1, 1], [], []>} : vector<13x72xbf16>, vector<72x8xbf16>, vector<13x8xf32> -> vector<13x8xf32>
      %191 = vector.broadcast %161 : vector<1x8xf32> to vector<13x8xf32>
      %192 = arith.addf %190, %191 : vector<13x8xf32>
      %cst_145 = arith.constant 0.000000e+00 : f32
      %193 = vector.broadcast %cst_145 : f32 to vector<13x8xf32>
      %194 = arith.cmpf oge, %192, %193 : vector<13x8xf32>
      %cst_146 = arith.constant 2.000000e-01 : f32
      %195 = vector.broadcast %cst_146 : f32 to vector<13x8xf32>
      %196 = arith.mulf %195, %192 : vector<13x8xf32>
      %197 = arith.select %194, %192, %196 : vector<13x8xi1>, vector<13x8xf32>
      %c0_147 = arith.constant 0 : index
      %198 = arith.index_cast %arg27 : i32 to index
      %c0_148 = arith.constant 0 : index
      %c0_149 = arith.constant 0 : index
      %199 = vector.load %arg19[%c0_147, %198, %c0_148, %c0_149] : memref<1x5x13x8xf32, #tpu.memory_space<vmem>>, vector<1x1x13x8xf32>
      %200 = vector.shape_cast %199 : vector<1x1x13x8xf32> to vector<13x8xf32>
      %201 = vector.shape_cast %197 : vector<13x8xf32> to vector<1x1x13x8xf32>
      tpu.vector_store %arg19[%c0_147, %198, %c0_148, %c0_149], %201 {strides = array<i32>} : memref<1x5x13x8xf32, #tpu.memory_space<vmem>>, vector<1x1x13x8xf32>,
      %c1_i32_150 = arith.constant 1 : i32
      %202 = arith.addi %arg27, %c1_i32_150 : i32
      %203 = arith.index_cast %202 : i32 to index
      %c1_151 = arith.constant 1 : index
      %c0_152 = arith.constant 0 : index
      %204 = vector.load %arg26[%203, %c1_151, %c0_152] : memref<7x15x8xf32, #tpu.memory_space<vmem>>, vector<1x13x8xf32>
      %205 = vector.shape_cast %204 : vector<1x13x8xf32> to vector<13x8xf32>
      %206 = vector.shape_cast %197 : vector<13x8xf32> to vector<1x13x8xf32>
      tpu.vector_store %arg26[%203, %c1_151, %c0_152], %206 {strides = array<i32>} : memref<7x15x8xf32, #tpu.memory_space<vmem>>, vector<1x13x8xf32>,
    }
    %c5_i32_126 = arith.constant 5 : i32
    %c0_127 = arith.constant 0 : index
    %c0_128 = arith.constant 0 : index
    %163 = vector.load %arg8[%c0_127, %c0_128] : memref<72x1xbf16, #tpu.memory_space<vmem>>, vector<72x1xbf16>
    %c0_129 = arith.constant 0 : index
    %c0_130 = arith.constant 0 : index
    %164 = vector.load %arg14[%c0_129, %c0_130] : memref<1x1xf32, #tpu.memory_space<vmem>>, vector<1x1xf32>
    %c0_i32_131 = arith.constant 0 : i32
    %c5_i32_132 = arith.constant 5 : i32
    %165 = arith.addi %c0_i32_131, %c5_i32_132 : i32
    %c1_i32_133 = arith.constant 1 : i32
    scf.for %arg27 = %c0_i32_131 to %165 step %c1_i32_133  : i32 {
      %c1_i32_135 = arith.constant 1 : i32
      %166 = arith.muli %arg27, %c1_i32_135 : i32
      %c0_i32_136 = arith.constant 0 : i32
      %167 = arith.addi %166, %c0_i32_136 : i32
      %168 = arith.index_cast %167 : i32 to index
      %c0_137 = arith.constant 0 : index
      %c0_138 = arith.constant 0 : index
      %169 = vector.load %arg26[%168, %c0_137, %c0_138] : memref<7x15x8xf32, #tpu.memory_space<vmem>>, vector<1x15x8xf32>
      %170 = vector.shape_cast %169 : vector<1x15x8xf32> to vector<15x8xf32>
      %171 = vector.extract_strided_slice %170 {offsets = [0, 0], sizes = [13, 8], strides = [1, 1]} : vector<15x8xf32> to vector<13x8xf32>
      %172 = vector.extract_strided_slice %170 {offsets = [1, 0], sizes = [13, 8], strides = [1, 1]} : vector<15x8xf32> to vector<13x8xf32>
      %173 = vector.extract_strided_slice %170 {offsets = [2, 0], sizes = [13, 8], strides = [1, 1]} : vector<15x8xf32> to vector<13x8xf32>
      %c1_i32_139 = arith.constant 1 : i32
      %174 = arith.addi %166, %c1_i32_139 : i32
      %175 = arith.index_cast %174 : i32 to index
      %c0_140 = arith.constant 0 : index
      %c0_141 = arith.constant 0 : index
      %176 = vector.load %arg26[%175, %c0_140, %c0_141] : memref<7x15x8xf32, #tpu.memory_space<vmem>>, vector<1x15x8xf32>
      %177 = vector.shape_cast %176 : vector<1x15x8xf32> to vector<15x8xf32>
      %178 = vector.extract_strided_slice %177 {offsets = [0, 0], sizes = [13, 8], strides = [1, 1]} : vector<15x8xf32> to vector<13x8xf32>
      %179 = vector.extract_strided_slice %177 {offsets = [1, 0], sizes = [13, 8], strides = [1, 1]} : vector<15x8xf32> to vector<13x8xf32>
      %180 = vector.extract_strided_slice %177 {offsets = [2, 0], sizes = [13, 8], strides = [1, 1]} : vector<15x8xf32> to vector<13x8xf32>
      %c2_i32 = arith.constant 2 : i32
      %181 = arith.addi %166, %c2_i32 : i32
      %182 = arith.index_cast %181 : i32 to index
      %c0_142 = arith.constant 0 : index
      %c0_143 = arith.constant 0 : index
      %183 = vector.load %arg26[%182, %c0_142, %c0_143] : memref<7x15x8xf32, #tpu.memory_space<vmem>>, vector<1x15x8xf32>
      %184 = vector.shape_cast %183 : vector<1x15x8xf32> to vector<15x8xf32>
      %185 = vector.extract_strided_slice %184 {offsets = [0, 0], sizes = [13, 8], strides = [1, 1]} : vector<15x8xf32> to vector<13x8xf32>
      %186 = vector.extract_strided_slice %184 {offsets = [1, 0], sizes = [13, 8], strides = [1, 1]} : vector<15x8xf32> to vector<13x8xf32>
      %187 = vector.extract_strided_slice %184 {offsets = [2, 0], sizes = [13, 8], strides = [1, 1]} : vector<15x8xf32> to vector<13x8xf32>
      %188 = tpu.concatenate %171, %172, %173, %178, %179, %180, %185, %186, %187 in 1 : vector<13x8xf32>, vector<13x8xf32>, vector<13x8xf32>, vector<13x8xf32>, vector<13x8xf32>, vector<13x8xf32>, vector<13x8xf32>, vector<13x8xf32>, vector<13x8xf32> -> vector<13x72xf32>
      %189 = arith.truncf %188 : vector<13x72xf32> to vector<13x72xbf16>
      %cst_144 = arith.constant dense<0.000000e+00> : vector<13x1xf32>
      %190 = tpu.matmul %189, %163, %cst_144 {dimension_numbers = #tpu.dot_dimension_numbers<[1], [0], [0], [1], [0, 0, 1, 1], [], []>} : vector<13x72xbf16>, vector<72x1xbf16>, vector<13x1xf32> -> vector<13x1xf32>
      %191 = vector.broadcast %164 : vector<1x1xf32> to vector<13x1xf32>
      %192 = arith.addf %190, %191 : vector<13x1xf32>
      %c0_145 = arith.constant 0 : index
      %193 = arith.index_cast %arg27 : i32 to index
      %c0_146 = arith.constant 0 : index
      %c0_147 = arith.constant 0 : index
      %194 = vector.load %arg20[%c0_145, %193, %c0_146, %c0_147] : memref<1x5x13x1xf32, #tpu.memory_space<vmem>>, vector<1x1x13x1xf32>
      %195 = vector.shape_cast %194 : vector<1x1x13x1xf32> to vector<13x1xf32>
      %196 = vector.shape_cast %192 : vector<13x1xf32> to vector<1x1x13x1xf32>
      tpu.vector_store %arg20[%c0_145, %193, %c0_146, %c0_147], %196 {strides = array<i32>} : memref<1x5x13x1xf32, #tpu.memory_space<vmem>>, vector<1x1x13x1xf32>,
    }
    %c5_i32_134 = arith.constant 5 : i32
    return
  }
  func.func @transform_0(%arg0: i32) -> (i32, i32, i32) {
    %c0_i32 = arith.constant 0 : i32
    %c0_i32_0 = arith.constant 0 : i32
    %c0_i32_1 = arith.constant 0 : i32
    return %arg0, %c0_i32, %c0_i32_0 : i32, i32, i32
  }
  func.func @transform_1(%arg0: i32) -> (i32, i32) {
    %c0_i32 = arith.constant 0 : i32
    %c0_i32_0 = arith.constant 0 : i32
    %c0_i32_1 = arith.constant 0 : i32
    return %c0_i32, %c0_i32_0 : i32, i32
  }
  func.func @transform_2(%arg0: i32) -> (i32, i32) {
    %c0_i32 = arith.constant 0 : i32
    %c0_i32_0 = arith.constant 0 : i32
    %c0_i32_1 = arith.constant 0 : i32
    return %c0_i32, %c0_i32_0 : i32, i32
  }
  func.func @transform_3(%arg0: i32) -> (i32, i32) {
    %c0_i32 = arith.constant 0 : i32
    %c0_i32_0 = arith.constant 0 : i32
    %c0_i32_1 = arith.constant 0 : i32
    return %c0_i32, %c0_i32_0 : i32, i32
  }
  func.func @transform_4(%arg0: i32) -> (i32, i32) {
    %c0_i32 = arith.constant 0 : i32
    %c0_i32_0 = arith.constant 0 : i32
    %c0_i32_1 = arith.constant 0 : i32
    return %c0_i32, %c0_i32_0 : i32, i32
  }
  func.func @transform_5(%arg0: i32) -> (i32, i32) {
    %c0_i32 = arith.constant 0 : i32
    %c0_i32_0 = arith.constant 0 : i32
    %c0_i32_1 = arith.constant 0 : i32
    return %c0_i32, %c0_i32_0 : i32, i32
  }
  func.func @transform_6(%arg0: i32) -> (i32, i32) {
    %c0_i32 = arith.constant 0 : i32
    %c0_i32_0 = arith.constant 0 : i32
    %c0_i32_1 = arith.constant 0 : i32
    return %c0_i32, %c0_i32_0 : i32, i32
  }
  func.func @transform_7(%arg0: i32) -> (i32, i32) {
    %c0_i32 = arith.constant 0 : i32
    %c0_i32_0 = arith.constant 0 : i32
    %c0_i32_1 = arith.constant 0 : i32
    return %c0_i32, %c0_i32_0 : i32, i32
  }
  func.func @transform_8(%arg0: i32) -> (i32, i32) {
    %c0_i32 = arith.constant 0 : i32
    %c0_i32_0 = arith.constant 0 : i32
    %c0_i32_1 = arith.constant 0 : i32
    return %c0_i32, %c0_i32_0 : i32, i32
  }
  func.func @transform_9(%arg0: i32) -> (i32, i32) {
    %c0_i32 = arith.constant 0 : i32
    %c0_i32_0 = arith.constant 0 : i32
    %c0_i32_1 = arith.constant 0 : i32
    return %c0_i32, %c0_i32_0 : i32, i32
  }
  func.func @transform_10(%arg0: i32) -> (i32, i32) {
    %c0_i32 = arith.constant 0 : i32
    %c0_i32_0 = arith.constant 0 : i32
    %c0_i32_1 = arith.constant 0 : i32
    return %c0_i32, %c0_i32_0 : i32, i32
  }
  func.func @transform_11(%arg0: i32) -> (i32, i32) {
    %c0_i32 = arith.constant 0 : i32
    %c0_i32_0 = arith.constant 0 : i32
    %c0_i32_1 = arith.constant 0 : i32
    return %c0_i32, %c0_i32_0 : i32, i32
  }
  func.func @transform_12(%arg0: i32) -> (i32, i32) {
    %c0_i32 = arith.constant 0 : i32
    %c0_i32_0 = arith.constant 0 : i32
    %c0_i32_1 = arith.constant 0 : i32
    return %c0_i32, %c0_i32_0 : i32, i32
  }
  func.func @transform_13(%arg0: i32) -> (i32, i32) {
    %c0_i32 = arith.constant 0 : i32
    %c0_i32_0 = arith.constant 0 : i32
    %c0_i32_1 = arith.constant 0 : i32
    return %c0_i32, %c0_i32_0 : i32, i32
  }
  func.func @transform_14(%arg0: i32) -> (i32, i32, i32, i32) {
    %c0_i32 = arith.constant 0 : i32
    %c0_i32_0 = arith.constant 0 : i32
    %c0_i32_1 = arith.constant 0 : i32
    %c0_i32_2 = arith.constant 0 : i32
    return %arg0, %c0_i32, %c0_i32_0, %c0_i32_1 : i32, i32, i32, i32
  }
  func.func @transform_15(%arg0: i32) -> (i32, i32, i32, i32) {
    %c0_i32 = arith.constant 0 : i32
    %c0_i32_0 = arith.constant 0 : i32
    %c0_i32_1 = arith.constant 0 : i32
    %c0_i32_2 = arith.constant 0 : i32
    return %arg0, %c0_i32, %c0_i32_0, %c0_i32_1 : i32, i32, i32, i32
  }
  func.func @transform_16(%arg0: i32) -> (i32, i32, i32, i32) {
    %c0_i32 = arith.constant 0 : i32
    %c0_i32_0 = arith.constant 0 : i32
    %c0_i32_1 = arith.constant 0 : i32
    %c0_i32_2 = arith.constant 0 : i32
    return %arg0, %c0_i32, %c0_i32_0, %c0_i32_1 : i32, i32, i32, i32
  }
  func.func @transform_17(%arg0: i32) -> (i32, i32, i32, i32) {
    %c0_i32 = arith.constant 0 : i32
    %c0_i32_0 = arith.constant 0 : i32
    %c0_i32_1 = arith.constant 0 : i32
    %c0_i32_2 = arith.constant 0 : i32
    return %arg0, %c0_i32, %c0_i32_0, %c0_i32_1 : i32, i32, i32, i32
  }
  func.func @transform_18(%arg0: i32) -> (i32, i32, i32, i32) {
    %c0_i32 = arith.constant 0 : i32
    %c0_i32_0 = arith.constant 0 : i32
    %c0_i32_1 = arith.constant 0 : i32
    %c0_i32_2 = arith.constant 0 : i32
    return %arg0, %c0_i32, %c0_i32_0, %c0_i32_1 : i32, i32, i32, i32
  }
  func.func @transform_19(%arg0: i32) -> (i32, i32, i32, i32) {
    %c0_i32 = arith.constant 0 : i32
    %c0_i32_0 = arith.constant 0 : i32
    %c0_i32_1 = arith.constant 0 : i32
    %c0_i32_2 = arith.constant 0 : i32
    return %arg0, %c0_i32, %c0_i32_0, %c0_i32_1 : i32, i32, i32, i32
  }
}

</mosaic_0001>

<bundles_post_ra>
// kernel: tpu_custom_call.1
= control target key start
LH: loop header
LB: loop body
LE: loop exit
PB: predicated region body
PF: predicated region fallthrough
CT: control target
= control target key end

     0   :  { %s5664_s20 = smov 0   ;;  %s8187_s0 = inlined_call_operand.vmem [shape: bf16[2,13,64], index: 0, kind: input, shape index: {}]   ;;  %s8188_s1 = inlined_call_operand.vmem [shape: bf16[64,66], index: 1, kind: input, shape index: {}]   ;;  %s8189_s2 = inlined_call_operand.vmem [shape: bf16[54,8], index: 2, kind: input, shape index: {}]   ;;  %s8190_s3 = inlined_call_operand.vmem [shape: bf16[216,8], index: 3, kind: input, shape index: {}]   ;;  %s8191_s4 = inlined_call_operand.vmem [shape: bf16[216,8], index: 4, kind: input, shape index: {}]   ;;  %s8192_s5 = inlined_call_operand.vmem [shape: bf16[216,8], index: 5, kind: input, shape index: {}]   ;;  %s8193_s6 = inlined_call_operand.vmem [shape: bf16[72,8], index: 6, kind: input, shape index: {}]   ;;  %s8194_s7 = inlined_call_operand.vmem [shape: bf16[72,1], index: 7, kind: input, shape index: {}]   ;;  %s8195_s8 = inlined_call_operand.vmem [shape: f32[1,8], index: 8, kind: input, shape index: {}]   ;;  %s8196_s9 = inlined_call_operand.vmem [shape: f32[1,8], index: 9, kind: input, shape index: {}]   ;;  %s8197_s10 = inlined_call_operand.vmem [shape: f32[1,8], index: 10, kind: input, shape index: {}]   ;;  %s8198_s11 = inlined_call_operand.vmem [shape: f32[1,8], index: 11, kind: input, shape index: {}]   ;;  %s8199_s12 = inlined_call_operand.vmem [shape: f32[1,8], index: 12, kind: input, shape index: {}]   ;;  %s8200_s13 = inlined_call_operand.<no memory space> [shape: f32[1,1], index: 13, kind: input, shape index: {}]   ;;  %s8201_s14 = inlined_call_operand.vmem [shape: f32[2,33,13,8], index: 14, kind: output, shape index: {0}]   ;;  %s8202_s15 = inlined_call_operand.vmem [shape: f32[2,17,13,8], index: 15, kind: output, shape index: {1}]   ;;  %s8203_s16 = inlined_call_operand.vmem [shape: f32[2,9,13,8], index: 16, kind: output, shape index: {2}]   ;;  %s8204_s17 = inlined_call_operand.vmem [shape: f32[2,5,13,8], index: 17, kind: output, shape index: {3}]   ;;  %s8205_s18 = inlined_call_operand.vmem [shape: f32[2,5,13,8], index: 18, kind: output, shape index: {4}]   ;;  %s8206_s19 = inlined_call_operand.vmem [shape: f32[2,5,13,1], index: 19, kind: output, shape index: {5}]  }
   0x1   :  { %8239 = sst [smem:[#allocation12_spill]] %s8187_s0  ;;  %v25_v0 = vstv %s8200_s13 }
   0x2   :  { %8240 = sst [smem:[#allocation13_spill]] %s8188_s1  ;;  %26 = vst [vmem:[#allocation8] sm:$0x1] %v25_v0 }
   0x3   :  { %8241 = sst [smem:[#allocation14_spill]] %s8189_s2 }
   0x4   :  { %8242 = sst [smem:[#allocation15_spill]] %s8190_s3 }
   0x5   :  { %8243 = sst [smem:[#allocation16_spill]] %s8193_s6 }
   0x6   :  { %8244 = sst [smem:[#allocation17_spill]] %s8194_s7 }
   0x7   :  { %8245 = sst [smem:[#allocation18_spill]] %s8199_s12 }
   0x8 LB: > { %8246 = sst [smem:[#allocation9_spill]] %s5425_s20  ;;  %s4160_s21 = sadd.s32 4294967295, %s5425_s20   ;;  %s5425_s20 = sphi %s5664_s20, %s32_s20  }
   0x9   : > { %p4164_p0 = scmp.ge.s32.totalorder %s5425_s20, 1  ;;  %p550_p1 = scmp.lt.s32.totalorder %s5425_s20, 3 }
   0xb   : > { %p551_p2 = pnand %p4164_p0, %p550_p1 }
   0xd   : > { %554 = sbr.rel (%p551_p2) target bundleno = 2487 (0x9b7), region = 76 }
  0x12   : > { %s8247_s2 = sld [smem:[#allocation13_spill]]  ;;  %p631_p3 = scmp.lt.s32.totalorder %s4160_s21, 1  ;;  %vm8232_vm0 = vcmask 523264   ;;  %vm667_vm1 = vcmask 15360   ;;  %v5451_v8 = vmov 0.0   ;;  %vm669_vm2 = vcmask 14336  }
  0x13   : > { %s8248_s29 = sld [smem:[#allocation12_spill]]  ;;  %668 = vst.msk [vmem:[#allocation2] sm:$0xff] %vm667_vm1, %v5451_v8  ;;  %vm751_vm3 = vcmask 64512   ;;  %vm753_vm4 = vcmask 63488   ;;  %s5453_s3 = smov 124   ;;  %vm837_vm5 = vcmask 57344  }
  0x14   : > { %s8355_s21 = smov (!%p631_p3, %s4160_s21), 1  ;;  %670 = vst.msk [vmem:[#allocation2 + $0x8] sm:$0x7f] %vm669_vm2, %v5451_v8  ;;  %s5454_s26 = smov 126   ;;  %vm8238_vm6 = vcmask 61440   ;;  %vm1050_vm7 = vcmask 12288  }
  0x15   : > { %s4575_s24 = sshll.u32 %s8355_s21, 3  ;;  %s4640_s25 = smul.u32 528, %s8355_s21  ;;  %671 = vst.msk [vmem:[#allocation2 + $0x10] sm:$0xff] %vm667_vm1, %v5451_v8 }
  0x16   : > { %s4641_s30 = smul.u32 272, %s8355_s21  ;;  %672 = vst.msk [vmem:[#allocation2 + $0x18] sm:$0x7f] %vm669_vm2, %v5451_v8  ;;  %s5455_s27 = smov 118  }
  0x17   : > { %s5687_s20 = scalar_lea.vmem %s8201_s14, %s4640_s25  ;;  %s4642_s13 = smul.u32 144, %s8355_s21  ;;  %673 = vst.msk [vmem:[#allocation2 + $0x20] sm:$0xff] %vm667_vm1, %v5451_v8 }
  0x18   : > { %v4580_v1 = vld [vmem:[%s8247_s2 + $0x18] sm:$0xff]  ;;  %v4579_v2 = vld [vmem:[%s8247_s2 + $0x10] sm:$0xff]  ;;  %v4578_v3 = vld [vmem:[%s8247_s2 + $0x8] sm:$0xff]  ;;  %s5692_s12 = scalar_lea.vmem %s8202_s15, %s4641_s30  ;;  %s5694_s6 = smul.u32 80, %s8355_s21  ;;  %674 = vst.msk [vmem:[#allocation2 + $0x28] sm:$0x7f] %vm669_vm2, %v5451_v8 }
  0x19   : > { %1038 = vmatpush.bf16.msra.mxu0 %v4580_v1  ;;  %s635_s0 = scalar_lea.vmem %s8248_s29, %s4575_s24  ;;  %s5699_s24 = scalar_lea.vmem %s8203_s16, %s4642_s13  ;;  %v4577_v4 = vld [vmem:[%s8247_s2] sm:$0xff]  ;;  %675 = vst.msk [vmem:[#allocation2 + $0x30] sm:$0xff] %vm667_vm1, %v5451_v8 }
  0x1a   : > { %v4175_v5 = vld [vmem:[%s635_s0] sm:$0xf]  ;;  %v4576_v6 = vld [vmem:[%s635_s0] sm:$0x70]  ;;  %676 = vst.msk [vmem:[#allocation2 + $0x38] sm:$0x7f] %vm669_vm2, %v5451_v8 }
  0x1b   : > { %v4176_v7 = vor.u32 %v4576_v6, %v4175_v5  ;;  %677 = vst.msk [vmem:[#allocation2 + $0x40] sm:$0xff] %vm667_vm1, %v5451_v8  ;;  %s5452_s0 = smov 122   ;;  %s5456_s25 = smov 116  }
  0x1c   : > { %678 = vst.msk [vmem:[#allocation2 + $0x48] sm:$0x7f] %vm669_vm2, %v5451_v8  ;;  %s5457_s28 = smov 120   ;;  %s5458_s29 = smov 112  }
  0x1d   : > { %1039 = vmatpush.bf16.msra.mxu0 %v4579_v2  ;;  %743 = vst.msk [vmem:[#allocation2 + $0x250] sm:$0xff] %vm667_vm1, %v5451_v8  ;;  %s5459_s30 = smov 110   ;;  %s5460_s21 = smov 114  }
  0x1e   : > { %744 = vst.msk [vmem:[#allocation2 + $0x258] sm:$0x7f] %vm669_vm2, %v5451_v8  ;;  %s8213_s22 = smov 106   ;;  %s5462_s23 = smov 104  }
  0x1f   : > { %745 = vst.msk [vmem:[#allocation2 + $0x260] sm:$0xff] %vm667_vm1, %v5451_v8  ;;  %s5463_s13 = smov 108   ;;  %s8214_s1 = smov 100  }
  0x20   : > { %746 = vst.msk [vmem:[#allocation2 + $0x268] sm:$0x7f] %vm669_vm2, %v5451_v8  ;;  %s8216_s7 = smov 98  }
  0x21   : > { %1040 = vmatpush.bf16.msra.mxu0 %v4578_v3  ;;  %747 = vst.msk [vmem:[#allocation2 + $0x270] sm:$0xff] %vm667_vm1, %v5451_v8 }
  0x22   : > { %748 = vst.msk [vmem:[#allocation2 + $0x278] sm:$0x7f] %vm669_vm2, %v5451_v8 }
  0x23   : > { %749 = vst.msk [vmem:[#allocation2 + $0x280] sm:$0xff] %vm667_vm1, %v5451_v8 }
  0x24   : > { %750 = vst.msk [vmem:[#allocation2 + $0x288] sm:$0x7f] %vm669_vm2, %v5451_v8 }
  0x25   : > { %1041 = vmatpush.bf16.msra.mxu0 %v4577_v4  ;;  %752 = vst.msk [vmem:[#allocation3] sm:$0xff] %vm751_vm3, %v5451_v8 }
  0x26   : > { %754 = vst.msk [vmem:[#allocation3 + $0x8] sm:$0x7f] %vm753_vm4, %v5451_v8 }
  0x27   : > { %755 = vst.msk [vmem:[#allocation3 + $0x10] sm:$0xff] %vm751_vm3, %v5451_v8 }
  0x28   : > { %4193 = vmatmul.msk.bf16.vlgmr.msra.gmra.mxu0 %vm8232_vm0, %v4176_v7  ;;  %756 = vst.msk [vmem:[#allocation3 + $0x18] sm:$0x7f] %vm753_vm4, %v5451_v8 }
  0x29   : > { %757 = vst.msk [vmem:[#allocation3 + $0x20] sm:$0xff] %vm751_vm3, %v5451_v8 }
  0x2a   : > { %758 = vst.msk [vmem:[#allocation3 + $0x28] sm:$0x7f] %vm753_vm4, %v5451_v8 }
  0x2b   : > { %759 = vst.msk [vmem:[#allocation3 + $0x30] sm:$0xff] %vm751_vm3, %v5451_v8 }
  0x2c   : > { %760 = vst.msk [vmem:[#allocation3 + $0x38] sm:$0x7f] %vm753_vm4, %v5451_v8 }
  0x2d   : > { %761 = vst.msk [vmem:[#allocation3 + $0x40] sm:$0xff] %vm751_vm3, %v5451_v8 }
  0x2e   : > { %762 = vst.msk [vmem:[#allocation3 + $0x48] sm:$0x7f] %vm753_vm4, %v5451_v8 }
  0x2f   : > { %763 = vst.msk [vmem:[#allocation3 + $0x50] sm:$0xff] %vm751_vm3, %v5451_v8 }
  0x30   : > { %764 = vst.msk [vmem:[#allocation3 + $0x58] sm:$0x7f] %vm753_vm4, %v5451_v8 }
  0x31   : > { %765 = vst.msk [vmem:[#allocation3 + $0x60] sm:$0xff] %vm751_vm3, %v5451_v8 }
  0x32   : > { %766 = vst.msk [vmem:[#allocation3 + $0x68] sm:$0x7f] %vm753_vm4, %v5451_v8 }
  0x33   : > { %767 = vst.msk [vmem:[#allocation3 + $0x70] sm:$0xff] %vm751_vm3, %v5451_v8 }
  0x34   : > { %768 = vst.msk [vmem:[#allocation3 + $0x78] sm:$0x7f] %vm753_vm4, %v5451_v8 }
  0x35   : > { %769 = vst.msk [vmem:[#allocation3 + $0x80] sm:$0xff] %vm751_vm3, %v5451_v8 }
  0x36   : > { %770 = vst.msk [vmem:[#allocation3 + $0x88] sm:$0x7f] %vm753_vm4, %v5451_v8 }
  0x37   : > { %771 = vst.msk [vmem:[#allocation3 + $0x90] sm:$0xff] %vm751_vm3, %v5451_v8 }
  0x38   : > { %772 = vst.msk [vmem:[#allocation3 + $0x98] sm:$0x7f] %vm753_vm4, %v5451_v8 }
  0x39   : > { %773 = vst.msk [vmem:[#allocation3 + $0xa0] sm:$0xff] %vm751_vm3, %v5451_v8 }
  0x3a   : > { %774 = vst.msk [vmem:[#allocation3 + $0xa8] sm:$0x7f] %vm753_vm4, %v5451_v8 }
  0x3b   : > { %775 = vst.msk [vmem:[#allocation3 + $0xb0] sm:$0xff] %vm751_vm3, %v5451_v8 }
  0x3c   : > { %776 = vst.msk [vmem:[#allocation3 + $0xb8] sm:$0x7f] %vm753_vm4, %v5451_v8 }
  0x3d   : > { %777 = vst.msk [vmem:[#allocation3 + $0xc0] sm:$0xff] %vm751_vm3, %v5451_v8 }
  0x3e   : > { %778 = vst.msk [vmem:[#allocation3 + $0xc8] sm:$0x7f] %vm753_vm4, %v5451_v8 }
  0x3f   : > { %779 = vst.msk [vmem:[#allocation3 + $0xd0] sm:$0xff] %vm751_vm3, %v5451_v8 }
  0x40   : > { %780 = vst.msk [vmem:[#allocation3 + $0xd8] sm:$0x7f] %vm753_vm4, %v5451_v8 }
  0x41   : > { %781 = vst.msk [vmem:[#allocation3 + $0xe0] sm:$0xff] %vm751_vm3, %v5451_v8 }
  0x42   : > { %782 = vst.msk [vmem:[#allocation3 + $0xe8] sm:$0x7f] %vm753_vm4, %v5451_v8 }
  0x43   : > { %783 = vst.msk [vmem:[#allocation3 + $0xf0] sm:$0xff] %vm751_vm3, %v5451_v8 }
  0x44   : > { %784 = vst.msk [vmem:[#allocation3 + $0xf8] sm:$0x7f] %vm753_vm4, %v5451_v8 }
  0x45   : > { %785 = vst.msk [vmem:[#allocation3 + $0x100] sm:$0xff] %vm751_vm3, %v5451_v8 }
  0x46   : > { %786 = vst.msk [vmem:[#allocation3 + $0x108] sm:$0x7f] %vm753_vm4, %v5451_v8 }
  0x47   : > { %787 = vst.msk [vmem:[#allocation3 + $0x110] sm:$0xff] %vm751_vm3, %v5451_v8 }
  0x48   : > { %788 = vst.msk [vmem:[#allocation3 + $0x118] sm:$0x7f] %vm753_vm4, %v5451_v8 }
  0x49   : > { %789 = vst.msk [vmem:[#allocation3 + $0x120] sm:$0xff] %vm751_vm3, %v5451_v8 }
  0x4a   : > { %790 = vst.msk [vmem:[#allocation3 + $0x128] sm:$0x7f] %vm753_vm4, %v5451_v8 }
  0x4b   : > { %791 = vst.msk [vmem:[#allocation3 + $0x130] sm:$0xff] %vm751_vm3, %v5451_v8 }
  0x4c   : > { %792 = vst.msk [vmem:[#allocation3 + $0x138] sm:$0x7f] %vm753_vm4, %v5451_v8 }
  0x4d   : > { %793 = vst.msk [vmem:[#allocation3 + $0x140] sm:$0xff] %vm751_vm3, %v5451_v8 }
  0x4e   : > { %794 = vst.msk [vmem:[#allocation3 + $0x148] sm:$0x7f] %vm753_vm4, %v5451_v8 }
  0x4f   : > { %795 = vst.msk [vmem:[#allocation3 + $0x150] sm:$0xff] %vm751_vm3, %v5451_v8 }
  0x50   : > { %796 = vst.msk [vmem:[#allocation3 + $0x158] sm:$0x7f] %vm753_vm4, %v5451_v8 }
  0x51   : > { %797 = vst.msk [vmem:[#allocation3 + $0x160] sm:$0xff] %vm751_vm3, %v5451_v8 }
  0x52   : > { %798 = vst.msk [vmem:[#allocation3 + $0x168] sm:$0x7f] %vm753_vm4, %v5451_v8 }
  0x53   : > { %799 = vst.msk [vmem:[#allocation3 + $0x170] sm:$0xff] %vm751_vm3, %v5451_v8 }
  0x54   : > { %800 = vst.msk [vmem:[#allocation3 + $0x178] sm:$0x7f] %vm753_vm4, %v5451_v8 }
  0x55   : > { %801 = vst.msk [vmem:[#allocation3 + $0x180] sm:$0xff] %vm751_vm3, %v5451_v8 }
  0x56   : > { %802 = vst.msk [vmem:[#allocation3 + $0x188] sm:$0x7f] %vm753_vm4, %v5451_v8 }
  0x57   : > { %803 = vst.msk [vmem:[#allocation3 + $0x190] sm:$0xff] %vm751_vm3, %v5451_v8 }
  0x58   : > { %804 = vst.msk [vmem:[#allocation3 + $0x198] sm:$0x7f] %vm753_vm4, %v5451_v8 }
  0x59   : > { %805 = vst.msk [vmem:[#allocation3 + $0x1a0] sm:$0xff] %vm751_vm3, %v5451_v8 }
  0x5a   : > { %806 = vst.msk [vmem:[#allocation3 + $0x1a8] sm:$0x7f] %vm753_vm4, %v5451_v8 }
  0x5b   : > { %807 = vst.msk [vmem:[#allocation3 + $0x1b0] sm:$0xff] %vm751_vm3, %v5451_v8 }
  0x5c   : > { %808 = vst.msk [vmem:[#allocation3 + $0x1b8] sm:$0x7f] %vm753_vm4, %v5451_v8 }
  0x5d   : > { %809 = vst.msk [vmem:[#allocation3 + $0x1c0] sm:$0xff] %vm751_vm3, %v5451_v8 }
  0x5e   : > { %810 = vst.msk [vmem:[#allocation3 + $0x1c8] sm:$0x7f] %vm753_vm4, %v5451_v8 }
  0x5f   : > { %811 = vst.msk [vmem:[#allocation3 + $0x1d0] sm:$0xff] %vm751_vm3, %v5451_v8 }
  0x60   : > { %812 = vst.msk [vmem:[#allocation3 + $0x1d8] sm:$0x7f] %vm753_vm4, %v5451_v8 }
  0x61   : > { %813 = vst.msk [vmem:[#allocation3 + $0x1e0] sm:$0xff] %vm751_vm3, %v5451_v8 }
  0x62   : > { %814 = vst.msk [vmem:[#allocation3 + $0x1e8] sm:$0x7f] %vm753_vm4, %v5451_v8 }
  0x63   : > { %815 = vst.msk [vmem:[#allocation3 + $0x1f0] sm:$0xff] %vm751_vm3, %v5451_v8 }
  0x64   : > { %816 = vst.msk [vmem:[#allocation3 + $0x1f8] sm:$0x7f] %vm753_vm4, %v5451_v8 }
  0x65   : > { %817 = vst.msk [vmem:[#allocation3 + $0x200] sm:$0xff] %vm751_vm3, %v5451_v8 }
  0x66   : > { %818 = vst.msk [vmem:[#allocation3 + $0x208] sm:$0x7f] %vm753_vm4, %v5451_v8 }
  0x67   : > { %819 = vst.msk [vmem:[#allocation3 + $0x210] sm:$0xff] %vm751_vm3, %v5451_v8 }
  0x68   : > { %820 = vst.msk [vmem:[#allocation3 + $0x218] sm:$0x7f] %vm753_vm4, %v5451_v8 }
  0x69   : > { %821 = vst.msk [vmem:[#allocation3 + $0x220] sm:$0xff] %vm751_vm3, %v5451_v8 }
  0x6a   : > { %822 = vst.msk [vmem:[#allocation3 + $0x228] sm:$0x7f] %vm753_vm4, %v5451_v8 }
  0x6b   : > { %823 = vst.msk [vmem:[#allocation3 + $0x230] sm:$0xff] %vm751_vm3, %v5451_v8 }
  0x6c   : > { %824 = vst.msk [vmem:[#allocation3 + $0x238] sm:$0x7f] %vm753_vm4, %v5451_v8 }
  0x6d   : > { %825 = vst.msk [vmem:[#allocation3 + $0x240] sm:$0xff] %vm751_vm3, %v5451_v8 }
  0x6e   : > { %826 = vst.msk [vmem:[#allocation3 + $0x248] sm:$0x7f] %vm753_vm4, %v5451_v8 }
  0x6f   : > { %827 = vst.msk [vmem:[#allocation3 + $0x250] sm:$0xff] %vm751_vm3, %v5451_v8 }
  0x70   : > { %828 = vst.msk [vmem:[#allocation3 + $0x258] sm:$0x7f] %vm753_vm4, %v5451_v8 }
  0x71   : > { %829 = vst.msk [vmem:[#allocation3 + $0x260] sm:$0xff] %vm751_vm3, %v5451_v8 }
  0x72   : > { %830 = vst.msk [vmem:[#allocation3 + $0x268] sm:$0x7f] %vm753_vm4, %v5451_v8 }
  0x73   : > { %831 = vst.msk [vmem:[#allocation3 + $0x270] sm:$0xff] %vm751_vm3, %v5451_v8 }
  0x74   : > { %832 = vst.msk [vmem:[#allocation3 + $0x278] sm:$0x7f] %vm753_vm4, %v5451_v8 }
  0x75   : > { %833 = vst.msk [vmem:[#allocation3 + $0x280] sm:$0xff] %vm751_vm3, %v5451_v8 }
  0x76   : > { %834 = vst.msk [vmem:[#allocation3 + $0x288] sm:$0x7f] %vm753_vm4, %v5451_v8 }
  0x77   : > { %835 = vst.msk [vmem:[#allocation4] sm:$0xff] %vm751_vm3, %v5451_v8 }
  0x78   : > { %836 = vst.msk [vmem:[#allocation4 + $0x8] sm:$0xff] %vm751_vm3, %v5451_v8 }
  0x79   : > { %838 = vst.msk [vmem:[#allocation4 + $0x10] sm:$0x1] %vm837_vm5, %v5451_v8 }
  0x7a   : > { %839 = vst.msk [vmem:[#allocation4 + $0x18] sm:$0xff] %vm751_vm3, %v5451_v8 }
  0x7b   : > { %840 = vst.msk [vmem:[#allocation4 + $0x20] sm:$0xff] %vm751_vm3, %v5451_v8 }
  0x7c   : > { %841 = vst.msk [vmem:[#allocation4 + $0x28] sm:$0x1] %vm837_vm5, %v5451_v8 }
  0x7d   : > { %842 = vst.msk [vmem:[#allocation4 + $0x30] sm:$0xff] %vm751_vm3, %v5451_v8 }
  0x7e   : > { %843 = vst.msk [vmem:[#allocation4 + $0x38] sm:$0xff] %vm751_vm3, %v5451_v8 }
  0x7f   : > { %844 = vst.msk [vmem:[#allocation4 + $0x40] sm:$0x1] %vm837_vm5, %v5451_v8 }
  0x80   : > { %845 = vst.msk [vmem:[#allocation4 + $0x48] sm:$0xff] %vm751_vm3, %v5451_v8 }
  0x81   : > { %846 = vst.msk [vmem:[#allocation4 + $0x50] sm:$0xff] %vm751_vm3, %v5451_v8 }
  0x82   : > { %847 = vst.msk [vmem:[#allocation4 + $0x58] sm:$0x1] %vm837_vm5, %v5451_v8 }
  0x83   : > { %848 = vst.msk [vmem:[#allocation4 + $0x60] sm:$0xff] %vm751_vm3, %v5451_v8 }
  0x84   : > { %849 = vst.msk [vmem:[#allocation4 + $0x68] sm:$0xff] %vm751_vm3, %v5451_v8 }
  0x85   : > { %850 = vst.msk [vmem:[#allocation4 + $0x70] sm:$0x1] %vm837_vm5, %v5451_v8 }
  0x86   : > { %851 = vst.msk [vmem:[#allocation4 + $0x78] sm:$0xff] %vm751_vm3, %v5451_v8 }
  0x87   : > { %852 = vst.msk [vmem:[#allocation4 + $0x80] sm:$0xff] %vm751_vm3, %v5451_v8 }
  0x88   : > { %853 = vst.msk [vmem:[#allocation4 + $0x88] sm:$0x1] %vm837_vm5, %v5451_v8 }
  0x89   : > { %854 = vst.msk [vmem:[#allocation4 + $0x90] sm:$0xff] %vm751_vm3, %v5451_v8 }
  0x8a   : > { %855 = vst.msk [vmem:[#allocation4 + $0x98] sm:$0xff] %vm751_vm3, %v5451_v8 }
  0x8b   : > { %856 = vst.msk [vmem:[#allocation4 + $0xa0] sm:$0x1] %vm837_vm5, %v5451_v8 }
  0x8c   : > { %857 = vst.msk [vmem:[#allocation4 + $0xa8] sm:$0xff] %vm751_vm3, %v5451_v8 }
  0x8d   : > { %858 = vst.msk [vmem:[#allocation4 + $0xb0] sm:$0xff] %vm751_vm3, %v5451_v8 }
  0x8e   : > { %859 = vst.msk [vmem:[#allocation4 + $0xb8] sm:$0x1] %vm837_vm5, %v5451_v8 }
  0x8f   : > { %860 = vst.msk [vmem:[#allocation4 + $0xc0] sm:$0xff] %vm751_vm3, %v5451_v8 }
  0x90   : > { %861 = vst.msk [vmem:[#allocation4 + $0xc8] sm:$0xff] %vm751_vm3, %v5451_v8 }
  0x91   : > { %862 = vst.msk [vmem:[#allocation4 + $0xd0] sm:$0x1] %vm837_vm5, %v5451_v8 }
  0x92   : > { %863 = vst.msk [vmem:[#allocation4 + $0xd8] sm:$0xff] %vm751_vm3, %v5451_v8 }
  0x93   : > { %864 = vst.msk [vmem:[#allocation4 + $0xe0] sm:$0xff] %vm751_vm3, %v5451_v8 }
  0x94   : > { %865 = vst.msk [vmem:[#allocation4 + $0xe8] sm:$0x1] %vm837_vm5, %v5451_v8 }
  0x95   : > { %866 = vst.msk [vmem:[#allocation4 + $0xf0] sm:$0xff] %vm751_vm3, %v5451_v8 }
  0x96   : > { %867 = vst.msk [vmem:[#allocation4 + $0xf8] sm:$0xff] %vm751_vm3, %v5451_v8 }
  0x97   : > { %868 = vst.msk [vmem:[#allocation4 + $0x100] sm:$0x1] %vm837_vm5, %v5451_v8 }
  0x98   : > { %869 = vst.msk [vmem:[#allocation4 + $0x108] sm:$0xff] %vm751_vm3, %v5451_v8 }
  0x99   : > { %870 = vst.msk [vmem:[#allocation4 + $0x110] sm:$0xff] %vm751_vm3, %v5451_v8 }
  0x9a   : > { %871 = vst.msk [vmem:[#allocation4 + $0x118] sm:$0x1] %vm837_vm5, %v5451_v8 }
  0x9b   : > { %872 = vst.msk [vmem:[#allocation4 + $0x120] sm:$0xff] %vm751_vm3, %v5451_v8 }
  0x9c   : > { %873 = vst.msk [vmem:[#allocation4 + $0x128] sm:$0xff] %vm751_vm3, %v5451_v8 }
  0x9d   : > { %874 = vst.msk [vmem:[#allocation4 + $0x130] sm:$0x1] %vm837_vm5, %v5451_v8 }
  0x9e   : > { %875 = vst.msk [vmem:[#allocation4 + $0x138] sm:$0xff] %vm751_vm3, %v5451_v8 }
  0x9f   : > { %876 = vst.msk [vmem:[#allocation4 + $0x140] sm:$0xff] %vm751_vm3, %v5451_v8 }
  0xa0   : > { %877 = vst.msk [vmem:[#allocation4 + $0x148] sm:$0x1] %vm837_vm5, %v5451_v8 }
  0xa1   : > { %878 = vst.msk [vmem:[#allocation4 + $0x150] sm:$0xff] %vm751_vm3, %v5451_v8 }
  0xa2   : > { %879 = vst.msk [vmem:[#allocation4 + $0x158] sm:$0xff] %vm751_vm3, %v5451_v8 }
  0xa3   : > { %880 = vst.msk [vmem:[#allocation4 + $0x160] sm:$0x1] %vm837_vm5, %v5451_v8 }
  0xa4   : > { %881 = vst.msk [vmem:[#allocation4 + $0x168] sm:$0xff] %vm751_vm3, %v5451_v8 }
  0xa5   : > { %v5779_v9 = vpop.f32.mrf.mxu0  ;;  %882 = vst.msk [vmem:[#allocation4 + $0x170] sm:$0xff] %vm751_vm3, %v5451_v8 }
  0xa6   : > { %1072 = vrot.lane.b32.xlu2 %v5779_v9, %s5452_s0  ;;  %1063 = vrot.lane.b32.xlu1 %v5779_v9, %s5453_s3  ;;  %883 = vst.msk [vmem:[#allocation4 + $0x178] sm:$0x1] %vm837_vm5, %v5451_v8 }
  0xa7   : > { %1054 = vrot.lane.b32.xlu0 %v5779_v9, %s5454_s26  ;;  %884 = vst.msk [vmem:[#allocation4 + $0x180] sm:$0xff] %vm751_vm3, %v5451_v8 }
  0xa8   : > { %885 = vst.msk [vmem:[#allocation4 + $0x188] sm:$0xff] %vm751_vm3, %v5451_v8 }
  0xa9   : > { %886 = vst.msk [vmem:[#allocation4 + $0x190] sm:$0x1] %vm837_vm5, %v5451_v8 }
  0xaa   : > { %887 = vst.msk [vmem:[#allocation4 + $0x198] sm:$0xff] %vm751_vm3, %v5451_v8 }
  0xab   : > { %888 = vst.msk [vmem:[#allocation4 + $0x1a0] sm:$0xff] %vm751_vm3, %v5451_v8 }
  0xac   : > { %889 = vst.msk [vmem:[#allocation4 + $0x1a8] sm:$0x1] %vm837_vm5, %v5451_v8 }
  0xad   : > { %890 = vst.msk [vmem:[#allocation4 + $0x1b0] sm:$0xff] %vm751_vm3, %v5451_v8  ;;  %v6191_v10 = vpop.f32.mrf.mxu0 }
  0xae   : > { %1090 = vrot.lane.b32.xlu2 %v5779_v9, %s5455_s27  ;;  %1099 = vrot.lane.b32.xlu1 %v5779_v9, %s5456_s25  ;;  %891 = vst.msk [vmem:[#allocation4 + $0x1b8] sm:$0xff] %vm751_vm3, %v5451_v8 }
  0xaf   : > { %1081 = vrot.lane.b32.xlu0 %v5779_v9, %s5457_s28  ;;  %892 = vst.msk [vmem:[#allocation4 + $0x1c0] sm:$0x1] %vm837_vm5, %v5451_v8 }
  0xb0   : > { %893 = vst.msk [vmem:[#allocation4 + $0x1c8] sm:$0xff] %vm751_vm3, %v5451_v8 }
  0xb1   : > { %894 = vst.msk [vmem:[#allocation4 + $0x1d0] sm:$0xff] %vm751_vm3, %v5451_v8 }
  0xb2   : > { %895 = vst.msk [vmem:[#allocation4 + $0x1d8] sm:$0x1] %vm837_vm5, %v5451_v8 }
  0xb3   : > { %896 = vst.msk [vmem:[#allocation4 + $0x1e0] sm:$0xff] %vm751_vm3, %v5451_v8 }
  0xb4   : > { %897 = vst.msk [vmem:[#allocation4 + $0x1e8] sm:$0xff] %vm751_vm3, %v5451_v8 }
  0xb5   : > { %898 = vst.msk [vmem:[#allocation4 + $0x1f0] sm:$0x1] %vm837_vm5, %v5451_v8 }
  0xb6   : > { %1117 = vrot.lane.b32.xlu2 %v5779_v9, %s5458_s29  ;;  %1126 = vrot.lane.b32.xlu1 %v5779_v9, %s5459_s30  ;;  %899 = vst.msk [vmem:[#allocation4 + $0x1f8] sm:$0xff] %vm751_vm3, %v5451_v8 }
  0xb7   : > { %1108 = vrot.lane.b32.xlu0 %v5779_v9, %s5460_s21  ;;  %900 = vst.msk [vmem:[#allocation4 + $0x200] sm:$0xff] %vm751_vm3, %v5451_v8 }
  0xb8   : > { %901 = vst.msk [vmem:[#allocation4 + $0x208] sm:$0x1] %vm837_vm5, %v5451_v8 }
  0xb9   : > { %902 = vst.msk [vmem:[#allocation4 + $0x210] sm:$0xff] %vm751_vm3, %v5451_v8 }
  0xba   : > { %903 = vst.msk [vmem:[#allocation4 + $0x218] sm:$0xff] %vm751_vm3, %v5451_v8 }
  0xbb   : > { %904 = vst.msk [vmem:[#allocation4 + $0x220] sm:$0x1] %vm837_vm5, %v5451_v8 }
  0xbc   : > { %905 = vst.msk [vmem:[#allocation4 + $0x228] sm:$0xff] %vm751_vm3, %v5451_v8 }
  0xbd   : > { %906 = vst.msk [vmem:[#allocation4 + $0x230] sm:$0xff] %vm751_vm3, %v5451_v8 }
  0xbe   : > { %1144 = vrot.lane.b32.xlu2 %v5779_v9, %s8213_s22  ;;  %1153 = vrot.lane.b32.xlu1 %v5779_v9, %s5462_s23  ;;  %s8215_s22 = smov 102   ;;  %907 = vst.msk [vmem:[#allocation4 + $0x238] sm:$0x1] %vm837_vm5, %v5451_v8 }
  0xbf   : > { %1135 = vrot.lane.b32.xlu0 %v5779_v9, %s5463_s13  ;;  %908 = vst.msk [vmem:[#allocation4 + $0x240] sm:$0xff] %vm751_vm3, %v5451_v8 }
  0xc0   : > { %909 = vst.msk [vmem:[#allocation4 + $0x248] sm:$0xff] %vm751_vm3, %v5451_v8 }
  0xc1   : > { %910 = vst.msk [vmem:[#allocation4 + $0x250] sm:$0x1] %vm837_vm5, %v5451_v8 }
  0xc2   : > { %911 = vst.msk [vmem:[#allocation5] sm:$0xff] %vm751_vm3, %v5451_v8 }
  0xc3   : > { %912 = vst.msk [vmem:[#allocation5 + $0x8] sm:$0xff] %vm751_vm3, %v5451_v8 }
  0xc4   : > { %914 = vst.msk [vmem:[#allocation5 + $0x10] sm:$0x1f] %vm8238_vm6, %v5451_v8 }
  0xc5   : > { %915 = vst.msk [vmem:[#allocation5 + $0x18] sm:$0xff] %vm751_vm3, %v5451_v8 }
  0xc6   : > { %1171 = vrot.lane.b32.xlu2 %v5779_v9, %s8214_s1  ;;  %1180 = vrot.lane.b32.xlu1 %v5779_v9, %s8216_s7  ;;  %s8217_s1 = smov 94   ;;  %s8218_s7 = smov 96   ;;  %916 = vst.msk [vmem:[#allocation5 + $0x20] sm:$0xff] %vm751_vm3, %v5451_v8 }
  0xc7   : > { %1162 = vrot.lane.b32.xlu0 %v5779_v9, %s8215_s22  ;;  %s8219_s22 = smov 92   ;;  %917 = vst.msk [vmem:[#allocation5 + $0x28] sm:$0x1f] %vm8238_vm6, %v5451_v8 }
  0xc8   : > { %918 = vst.msk [vmem:[#allocation5 + $0x30] sm:$0xff] %vm751_vm3, %v5451_v8 }
  0xc9   : > { %919 = vst.msk [vmem:[#allocation5 + $0x38] sm:$0xff] %vm751_vm3, %v5451_v8 }
  0xca   : > { %920 = vst.msk [vmem:[#allocation5 + $0x40] sm:$0x1f] %vm8238_vm6, %v5451_v8 }
  0xcb   : > { %921 = vst.msk [vmem:[#allocation5 + $0x48] sm:$0xff] %vm751_vm3, %v5451_v8 }
  0xcc   : > { %922 = vst.msk [vmem:[#allocation5 + $0x50] sm:$0xff] %vm751_vm3, %v5451_v8 }
  0xcd   : > { %923 = vst.msk [vmem:[#allocation5 + $0x58] sm:$0x1f] %vm8238_vm6, %v5451_v8 }
  0xce   : > { %1198 = vrot.lane.b32.xlu2 %v5779_v9, %s8217_s1  ;;  %1207 = vrot.lane.b32.xlu1 %v5779_v9, %s8219_s22  ;;  %s8220_s1 = smov 88   ;;  %s8221_s22 = smov 90   ;;  %924 = vst.msk [vmem:[#allocation5 + $0x60] sm:$0xff] %vm751_vm3, %v5451_v8 }
  0xcf   : > { %1189 = vrot.lane.b32.xlu0 %v5779_v9, %s8218_s7  ;;  %s8222_s7 = smov 86   ;;  %925 = vst.msk [vmem:[#allocation5 + $0x68] sm:$0xff] %vm751_vm3, %v5451_v8 }
  0xd0   : > { %926 = vst.msk [vmem:[#allocation5 + $0x70] sm:$0x1f] %vm8238_vm6, %v5451_v8 }
  0xd1   : > { %927 = vst.msk [vmem:[#allocation5 + $0x78] sm:$0xff] %vm751_vm3, %v5451_v8 }
  0xd2   : > { %928 = vst.msk [vmem:[#allocation5 + $0x80] sm:$0xff] %vm751_vm3, %v5451_v8 }
  0xd3   : > { %929 = vst.msk [vmem:[#allocation5 + $0x88] sm:$0x1f] %vm8238_vm6, %v5451_v8 }
  0xd4   : > { %930 = vst.msk [vmem:[#allocation5 + $0x90] sm:$0xff] %vm751_vm3, %v5451_v8 }
  0xd5   : > { %931 = vst.msk [vmem:[#allocation5 + $0x98] sm:$0xff] %vm751_vm3, %v5451_v8 }
  0xd6   : > { %1225 = vrot.lane.b32.xlu2 %v5779_v9, %s8220_s1  ;;  %1234 = vrot.lane.b32.xlu1 %v5779_v9, %s8222_s7  ;;  %s8223_s1 = smov 82   ;;  %s8224_s7 = smov 84   ;;  %932 = vst.msk [vmem:[#allocation5 + $0xa0] sm:$0x1f] %vm8238_vm6, %v5451_v8 }
  0xd7   : > { %1216 = vrot.lane.b32.xlu0 %v5779_v9, %s8221_s22  ;;  %s8225_s22 = smov 80   ;;  %933 = vst.msk [vmem:[#allocation5 + $0xa8] sm:$0xff] %vm751_vm3, %v5451_v8 }
  0xd8   : > { %934 = vst.msk [vmem:[#allocation5 + $0xb0] sm:$0xff] %vm751_vm3, %v5451_v8 }
  0xd9   : > { %935 = vst.msk [vmem:[#allocation5 + $0xb8] sm:$0x1f] %vm8238_vm6, %v5451_v8 }
  0xda   : > { %936 = vst.msk [vmem:[#allocation5 + $0xc0] sm:$0xff] %vm751_vm3, %v5451_v8 }
  0xdb   : > { %937 = vst.msk [vmem:[#allocation5 + $0xc8] sm:$0xff] %vm751_vm3, %v5451_v8 }
  0xdc   : > { %938 = vst.msk [vmem:[#allocation5 + $0xd0] sm:$0x1f] %vm8238_vm6, %v5451_v8 }
  0xdd   : > { %939 = vst.msk [vmem:[#allocation5 + $0xd8] sm:$0xff] %vm751_vm3, %v5451_v8 }
  0xde   : > { %1252 = vrot.lane.b32.xlu2 %v5779_v9, %s8223_s1  ;;  %1261 = vrot.lane.b32.xlu1 %v5779_v9, %s8225_s22  ;;  %s8226_s1 = smov 76   ;;  %s8227_s22 = smov 78   ;;  %940 = vst.msk [vmem:[#allocation5 + $0xe0] sm:$0xff] %vm751_vm3, %v5451_v8 }
  0xdf   : > { %1243 = vrot.lane.b32.xlu0 %v5779_v9, %s8224_s7  ;;  %s8228_s7 = smov 74   ;;  %941 = vst.msk [vmem:[#allocation5 + $0xe8] sm:$0x1f] %vm8238_vm6, %v5451_v8 }
  0xe0   : > { %942 = vst.msk [vmem:[#allocation5 + $0xf0] sm:$0xff] %vm751_vm3, %v5451_v8 }
  0xe1   : > { %943 = vst.msk [vmem:[#allocation5 + $0xf8] sm:$0xff] %vm751_vm3, %v5451_v8 }
  0xe2   : > { %944 = vst.msk [vmem:[#allocation5 + $0x100] sm:$0x1f] %vm8238_vm6, %v5451_v8 }
  0xe3   : > { %945 = vst.msk [vmem:[#allocation5 + $0x108] sm:$0xff] %vm751_vm3, %v5451_v8 }
  0xe4   : > { %946 = vst.msk [vmem:[#allocation5 + $0x110] sm:$0xff] %vm751_vm3, %v5451_v8 }
  0xe5   : > { %947 = vst.msk [vmem:[#allocation5 + $0x118] sm:$0x1f] %vm8238_vm6, %v5451_v8 }
  0xe6   : > { %1279 = vrot.lane.b32.xlu2 %v5779_v9, %s8226_s1  ;;  %1288 = vrot.lane.b32.xlu1 %v5779_v9, %s8228_s7  ;;  %s5479_s1 = smov 70   ;;  %s5481_s7 = smov 72   ;;  %948 = vst.msk [vmem:[#allocation5 + $0x120] sm:$0xff] %vm751_vm3, %v5451_v8 }
  0xe7   : > { %1270 = vrot.lane.b32.xlu0 %v5779_v9, %s8227_s22  ;;  %s5480_s22 = smov 68   ;;  %949 = vst.msk [vmem:[#allocation5 + $0x128] sm:$0xff] %vm751_vm3, %v5451_v8 }
  0xe8   : > { %950 = vst.msk [vmem:[#allocation5 + $0x130] sm:$0x1f] %vm8238_vm6, %v5451_v8 }
  0xe9   : > { %951 = vst.msk [vmem:[#allocation5 + $0x138] sm:$0xff] %vm751_vm3, %v5451_v8 }
  0xea   : > { %952 = vst.msk [vmem:[#allocation5 + $0x140] sm:$0xff] %vm751_vm3, %v5451_v8 }
  0xeb   : > { %953 = vst.msk [vmem:[#allocation5 + $0x148] sm:$0x1f] %vm8238_vm6, %v5451_v8 }
  0xec   : > { %954 = vst.msk [vmem:[#allocation5 + $0x150] sm:$0xff] %vm751_vm3, %v5451_v8 }
  0xed   : > { %955 = vst.msk [vmem:[#allocation5 + $0x158] sm:$0xff] %vm751_vm3, %v5451_v8 }
  0xee   : > { %1306 = vrot.lane.b32.xlu2 %v5779_v9, %s5479_s1  ;;  %1315 = vrot.lane.b32.xlu1 %v5779_v9, %s5480_s22  ;;  %956 = vst.msk [vmem:[#allocation5 + $0x160] sm:$0x1f] %vm8238_vm6, %v5451_v8 }
  0xef   : > { %1297 = vrot.lane.b32.xlu0 %v5779_v9, %s5481_s7  ;;  %957 = vst.msk [vmem:[#allocation5 + $0x168] sm:$0xff] %vm751_vm3, %v5451_v8 }
  0xf0   : > { %958 = vst.msk [vmem:[#allocation5 + $0x170] sm:$0xff] %vm751_vm3, %v5451_v8 }
  0xf1   : > { %959 = vst.msk [vmem:[#allocation5 + $0x178] sm:$0x1f] %vm8238_vm6, %v5451_v8 }
  0xf2   : > { %960 = vst.msk [vmem:[#allocation5 + $0x180] sm:$0xff] %vm751_vm3, %v5451_v8 }
  0xf3   : > { %961 = vst.msk [vmem:[#allocation5 + $0x188] sm:$0xff] %vm751_vm3, %v5451_v8 }
  0xf4   : > { %962 = vst.msk [vmem:[#allocation5 + $0x190] sm:$0x1f] %vm8238_vm6, %v5451_v8 }
  0xf5   : > { %963 = vst.msk [vmem:[#allocation6] sm:$0xff] %vm751_vm3, %v5451_v8 }
  0xf6   : > { %1074 = vrot.lane.b32.xlu2 %v6191_v10, %s5452_s0  ;;  %1065 = vrot.lane.b32.xlu1 %v6191_v10, %s5453_s3  ;;  %964 = vst.msk [vmem:[#allocation6 + $0x8] sm:$0x7f] %vm753_vm4, %v5451_v8  ;;  %s8249_s0 = smov 106   ;;  %s8251_s3 = smov 102  }
  0xf7   : > { %1056 = vrot.lane.b32.xlu0 %v6191_v10, %s5454_s26  ;;  %965 = vst.msk [vmem:[#allocation6 + $0x10] sm:$0xff] %vm751_vm3, %v5451_v8  ;;  %s8252_s26 = smov 100  }
  0xf8   : > { %966 = vst.msk [vmem:[#allocation6 + $0x18] sm:$0x7f] %vm753_vm4, %v5451_v8 }
  0xf9   : > { %967 = vst.msk [vmem:[#allocation6 + $0x20] sm:$0xff] %vm751_vm3, %v5451_v8 }
  0xfa   : > { %968 = vst.msk [vmem:[#allocation6 + $0x28] sm:$0x7f] %vm753_vm4, %v5451_v8 }
  0xfb   : > { %969 = vst.msk [vmem:[#allocation6 + $0x30] sm:$0xff] %vm751_vm3, %v5451_v8 }
  0xfc   : > { %970 = vst.msk [vmem:[#allocation6 + $0x38] sm:$0x7f] %vm753_vm4, %v5451_v8 }
  0xfd   : > { %971 = vst.msk [vmem:[#allocation6 + $0x40] sm:$0xff] %vm751_vm3, %v5451_v8 }
  0xfe   : > { %1101 = vrot.lane.b32.xlu2 %v6191_v10, %s5456_s25  ;;  %1083 = vrot.lane.b32.xlu1 %v6191_v10, %s5457_s28  ;;  %972 = vst.msk [vmem:[#allocation6 + $0x48] sm:$0x7f] %vm753_vm4, %v5451_v8  ;;  %s8254_s25 = smov 96   ;;  %s8255_s28 = smov 94  }
  0xff   : > { %1092 = vrot.lane.b32.xlu0 %v6191_v10, %s5455_s27  ;;  %973 = vst.msk [vmem:[#allocation6 + $0x50] sm:$0xff] %vm751_vm3, %v5451_v8  ;;  %s8253_s27 = smov 92  }
 0x100   : > { %974 = vst.msk [vmem:[#allocation6 + $0x58] sm:$0x7f] %vm753_vm4, %v5451_v8  ;;  %v1073_v11 = vpop.permute.xlu2 %1072 }
 0x101   : > { %975 = vst.msk [vmem:[#allocation6 + $0x60] sm:$0xff] %vm751_vm3, %v5451_v8 }
 0x102   : > { %976 = vst.msk [vmem:[#allocation6 + $0x68] sm:$0x7f] %vm753_vm4, %v5451_v8 }
 0x103   : > { %977 = vst.msk [vmem:[#allocation7] sm:$0xff] %vm751_vm3, %v5451_v8 }
 0x104   : > { %978 = vst.msk [vmem:[#allocation7 + $0x8] sm:$0x7f] %vm753_vm4, %v5451_v8 }
 0x105   : > { %979 = vst.msk [vmem:[#allocation7 + $0x10] sm:$0xff] %vm751_vm3, %v5451_v8 }
 0x106   : > { %1128 = vrot.lane.b32.xlu2 %v6191_v10, %s5459_s30  ;;  %1110 = vrot.lane.b32.xlu1 %v6191_v10, %s5460_s21  ;;  %980 = vst.msk [vmem:[#allocation7 + $0x18] sm:$0x7f] %vm753_vm4, %v5451_v8  ;;  %s8257_s30 = smov 90   ;;  %s8258_s21 = smov 88  }
 0x107   : > { %1119 = vrot.lane.b32.xlu0 %v6191_v10, %s5458_s29  ;;  %981 = vst.msk [vmem:[#allocation7 + $0x20] sm:$0xff] %vm751_vm3, %v5451_v8  ;;  %s8256_s29 = smov 86  }
 0x108   : > { %982 = vst.msk [vmem:[#allocation7 + $0x28] sm:$0x7f] %vm753_vm4, %v5451_v8  ;;  %v1091_v14 = vpop.permute.xlu2 %1090 }
 0x109   : > { %983 = vst.msk [vmem:[#allocation7 + $0x30] sm:$0xff] %vm751_vm3, %v5451_v8 }
 0x10a   : > { %984 = vst.msk [vmem:[#allocation7 + $0x38] sm:$0x7f] %vm753_vm4, %v5451_v8 }
 0x10b   : > { %985 = vst.msk [vmem:[#allocation7 + $0x40] sm:$0xff] %vm751_vm3, %v5451_v8 }
 0x10c   : > { %986 = vst.msk [vmem:[#allocation7 + $0x48] sm:$0x7f] %vm753_vm4, %v5451_v8 }
 0x10d   : > { %987 = vst.msk [vmem:[#allocation7 + $0x50] sm:$0xff] %vm751_vm3, %v5451_v8 }
 0x10e   : > { %1155 = vrot.lane.b32.xlu2 %v6191_v10, %s5462_s23  ;;  %1137 = vrot.lane.b32.xlu1 %v6191_v10, %s5463_s13  ;;  %s8250_s13 = smov 98   ;;  %988 = vst.msk [vmem:[#allocation7 + $0x58] sm:$0x7f] %vm753_vm4, %v5451_v8  ;;  %s8259_s23 = smov 80  }
 0x10f   : > { %1146 = vrot.lane.b32.xlu0 %v6191_v10, %s8249_s0  ;;  %989 = vst.msk [vmem:[#allocation7 + $0x60] sm:$0xff] %vm751_vm3, %v5451_v8  ;;  %s8260_s0 = smov 84  }
 0x110   : > { %990 = vst.msk [vmem:[#allocation7 + $0x68] sm:$0x7f] %vm753_vm4, %v5451_v8  ;;  %v1118_v17 = vpop.permute.xlu2 %1117 }
 0x111   : > { %1049 = vst.msk [vmem:[#allocation2 + $0x41] sm:$0xff] %vm667_vm1, %v5779_v9 }
 0x112   : > { %1051 = vst.msk [vmem:[#allocation2 + $0x49] sm:$0x1f] %vm1050_vm7, %v6191_v10 }
 0x113   : > { %679 = vst.msk [vmem:[#allocation2 + $0x50] sm:$0xff] %vm667_vm1, %v5451_v8 }
 0x114   : > { %680 = vst.msk [vmem:[#allocation2 + $0x58] sm:$0x7f] %vm669_vm2, %v5451_v8 }
 0x115   : > { %681 = vst.msk [vmem:[#allocation2 + $0x60] sm:$0xff] %vm667_vm1, %v5451_v8 }
 0x116   : > { %1182 = vrot.lane.b32.xlu2 %v6191_v10, %s8250_s13  ;;  %1164 = vrot.lane.b32.xlu1 %v6191_v10, %s8251_s3  ;;  %682 = vst.msk [vmem:[#allocation2 + $0x68] sm:$0x7f] %vm669_vm2, %v5451_v8  ;;  %s8261_s13 = smov 82   ;;  %s8262_s3 = smov 74  }
 0x117   : > { %1173 = vrot.lane.b32.xlu0 %v6191_v10, %s8252_s26  ;;  %683 = vst.msk [vmem:[#allocation2 + $0x70] sm:$0xff] %vm667_vm1, %v5451_v8  ;;  %s8263_s26 = smov 78  }
 0x118   : > { %684 = vst.msk [vmem:[#allocation2 + $0x78] sm:$0x7f] %vm669_vm2, %v5451_v8  ;;  %v1064_v12 = vpop.permute.xlu1 %1063  ;;  %v1145_v20 = vpop.permute.xlu2 %1144 }
 0x119   : > { %685 = vst.msk [vmem:[#allocation2 + $0x80] sm:$0xff] %vm667_vm1, %v5451_v8  ;;  %v1055_v13 = vpop.permute.xlu0 %1054 }
 0x11a   : > { %686 = vst.msk [vmem:[#allocation2 + $0x88] sm:$0x7f] %vm669_vm2, %v5451_v8 }
 0x11b   : > { %687 = vst.msk [vmem:[#allocation2 + $0x90] sm:$0xff] %vm667_vm1, %v5451_v8 }
 0x11c   : > { %688 = vst.msk [vmem:[#allocation2 + $0x98] sm:$0x7f] %vm669_vm2, %v5451_v8 }
 0x11d   : > { %689 = vst.msk [vmem:[#allocation2 + $0xa0] sm:$0xff] %vm667_vm1, %v5451_v8 }
 0x11e   : > { %1209 = vrot.lane.b32.xlu2 %v6191_v10, %s8253_s27  ;;  %1191 = vrot.lane.b32.xlu1 %v6191_v10, %s8254_s25  ;;  %690 = vst.msk [vmem:[#allocation2 + $0xa8] sm:$0x7f] %vm669_vm2, %v5451_v8  ;;  %s8264_s27 = smov 76  }
 0x11f   : > { %1200 = vrot.lane.b32.xlu0 %v6191_v10, %s8255_s28  ;;  %691 = vst.msk [vmem:[#allocation2 + $0xb0] sm:$0xff] %vm667_vm1, %v5451_v8  ;;  %s8265_s28 = sld [smem:[#allocation14_spill]] }
 0x120   : > { %692 = vst.msk [vmem:[#allocation2 + $0xb8] sm:$0x7f] %vm669_vm2, %v5451_v8  ;;  %v1100_v15 = vpop.permute.xlu1 %1099  ;;  %v1172_v23 = vpop.permute.xlu2 %1171 }
 0x121   : > { %693 = vst.msk [vmem:[#allocation2 + $0xc0] sm:$0xff] %vm667_vm1, %v5451_v8  ;;  %v1082_v16 = vpop.permute.xlu0 %1081 }
 0x122   : > { %694 = vst.msk [vmem:[#allocation2 + $0xc8] sm:$0x7f] %vm669_vm2, %v5451_v8 }
 0x123   : > { %695 = vst.msk [vmem:[#allocation2 + $0xd0] sm:$0xff] %vm667_vm1, %v5451_v8 }
 0x124   : > { %696 = vst.msk [vmem:[#allocation2 + $0xd8] sm:$0x7f] %vm669_vm2, %v5451_v8 }
 0x125   : > { %697 = vst.msk [vmem:[#allocation2 + $0xe0] sm:$0xff] %vm667_vm1, %v5451_v8  ;;  %v6542_v1 = vld [vmem:[%s8265_s28] sm:$0xf]  ;;  %v6547_v2 = vld [vmem:[%s8265_s28] sm:$0xf0] }
 0x126   : > { %1236 = vrot.lane.b32.xlu2 %v6191_v10, %s8256_s29  ;;  %1218 = vrot.lane.b32.xlu1 %v6191_v10, %s8257_s30  ;;  %698 = vst.msk [vmem:[#allocation2 + $0xe8] sm:$0x7f] %vm669_vm2, %v5451_v8  ;;  %v6552_v3 = vld [vmem:[%s8265_s28 + $0x8] sm:$0xf]  ;;  %v6557_v4 = vld [vmem:[%s8265_s28 + $0x8] sm:$0xf0] }
 0x127   : > { %1227 = vrot.lane.b32.xlu0 %v6191_v10, %s8258_s21  ;;  %699 = vst.msk [vmem:[#allocation2 + $0xf0] sm:$0xff] %vm667_vm1, %v5451_v8  ;;  %v6562_v5 = vld [vmem:[%s8265_s28 + $0x10] sm:$0xf]  ;;  %v6567_v7 = vld [vmem:[%s8265_s28 + $0x10] sm:$0xf0]  ;;  %s6589_s30 = smov 0  }
 0x128   : > { %700 = vst.msk [vmem:[#allocation2 + $0xf8] sm:$0x7f] %vm669_vm2, %v5451_v8  ;;  %v1127_v18 = vpop.permute.xlu1 %1126  ;;  %v1199_v26 = vpop.permute.xlu2 %1198 }
 0x129   : > { %701 = vst.msk [vmem:[#allocation2 + $0x100] sm:$0xff] %vm667_vm1, %v5451_v8  ;;  %v1109_v19 = vpop.permute.xlu0 %1108 }
 0x12a   : > { %702 = vst.msk [vmem:[#allocation2 + $0x108] sm:$0x7f] %vm669_vm2, %v5451_v8 }
 0x12b   : > { %703 = vst.msk [vmem:[#allocation2 + $0x110] sm:$0xff] %vm667_vm1, %v5451_v8 }
 0x12c   : > { %704 = vst.msk [vmem:[#allocation2 + $0x118] sm:$0x7f] %vm669_vm2, %v5451_v8 }
 0x12d   : > { %705 = vst.msk [vmem:[#allocation2 + $0x120] sm:$0xff] %vm667_vm1, %v5451_v8 }
 0x12e   : > { %1263 = vrot.lane.b32.xlu2 %v6191_v10, %s8259_s23  ;;  %1245 = vrot.lane.b32.xlu1 %v6191_v10, %s8260_s0  ;;  %706 = vst.msk [vmem:[#allocation2 + $0x128] sm:$0x7f] %vm669_vm2, %v5451_v8 }
 0x12f   : > { %1254 = vrot.lane.b32.xlu0 %v6191_v10, %s8261_s13  ;;  %707 = vst.msk [vmem:[#allocation2 + $0x130] sm:$0xff] %vm667_vm1, %v5451_v8 }
 0x130   : > { %708 = vst.msk [vmem:[#allocation2 + $0x138] sm:$0x7f] %vm669_vm2, %v5451_v8  ;;  %v1154_v21 = vpop.permute.xlu1 %1153  ;;  %v1226_v29 = vpop.permute.xlu2 %1225 }
 0x131   : > { %709 = vst.msk [vmem:[#allocation2 + $0x140] sm:$0xff] %vm667_vm1, %v5451_v8  ;;  %v1136_v22 = vpop.permute.xlu0 %1135 }
 0x132   : > { %710 = vst.msk [vmem:[#allocation2 + $0x148] sm:$0x7f] %vm669_vm2, %v5451_v8 }
 0x133   : > { %711 = vst.msk [vmem:[#allocation2 + $0x150] sm:$0xff] %vm667_vm1, %v5451_v8 }
 0x134   : > { %712 = vst.msk [vmem:[#allocation2 + $0x158] sm:$0x7f] %vm669_vm2, %v5451_v8 }
 0x135   : > { %713 = vst.msk [vmem:[#allocation2 + $0x160] sm:$0xff] %vm667_vm1, %v5451_v8 }
 0x136   : > { %1290 = vrot.lane.b32.xlu2 %v6191_v10, %s8262_s3  ;;  %1272 = vrot.lane.b32.xlu1 %v6191_v10, %s8263_s26  ;;  %714 = vst.msk [vmem:[#allocation2 + $0x168] sm:$0x7f] %vm669_vm2, %v5451_v8 }
 0x137   : > { %1281 = vrot.lane.b32.xlu0 %v6191_v10, %s8264_s27  ;;  %715 = vst.msk [vmem:[#allocation2 + $0x170] sm:$0xff] %vm667_vm1, %v5451_v8 }
 0x138   : > { %716 = vst.msk [vmem:[#allocation2 + $0x178] sm:$0x7f] %vm669_vm2, %v5451_v8  ;;  %v1181_v24 = vpop.permute.xlu1 %1180  ;;  %v1253_v32 = vpop.permute.xlu2 %1252 }
 0x139   : > { %717 = vst.msk [vmem:[#allocation2 + $0x180] sm:$0xff] %vm667_vm1, %v5451_v8  ;;  %v1163_v25 = vpop.permute.xlu0 %1162 }
 0x13a   : > { %718 = vst.msk [vmem:[#allocation2 + $0x188] sm:$0x7f] %vm669_vm2, %v5451_v8 }
 0x13b   : > { %719 = vst.msk [vmem:[#allocation2 + $0x190] sm:$0xff] %vm667_vm1, %v5451_v8 }
 0x13c   : > { %720 = vst.msk [vmem:[#allocation2 + $0x198] sm:$0x7f] %vm669_vm2, %v5451_v8 }
 0x13d   : > { %721 = vst.msk [vmem:[#allocation2 + $0x1a0] sm:$0xff] %vm667_vm1, %v5451_v8 }
 0x13e   : > { %1317 = vrot.lane.b32.xlu2 %v6191_v10, %s5480_s22  ;;  %1299 = vrot.lane.b32.xlu1 %v6191_v10, %s5481_s7  ;;  %s5482_s7 = smov 64   ;;  %722 = vst.msk [vmem:[#allocation2 + $0x1a8] sm:$0x7f] %vm669_vm2, %v5451_v8 }
 0x13f   : > { %1308 = vrot.lane.b32.xlu0 %v6191_v10, %s5479_s1  ;;  %s5483_s1 = smov 66   ;;  %723 = vst.msk [vmem:[#allocation2 + $0x1b0] sm:$0xff] %vm667_vm1, %v5451_v8 }
 0x140   : > { %724 = vst.msk [vmem:[#allocation2 + $0x1b8] sm:$0x7f] %vm669_vm2, %v5451_v8  ;;  %v1208_v27 = vpop.permute.xlu1 %1207  ;;  %v1280_v35 = vpop.permute.xlu2 %1279 }
 0x141   : > { %725 = vst.msk [vmem:[#allocation2 + $0x1c0] sm:$0xff] %vm667_vm1, %v5451_v8  ;;  %v1190_v28 = vpop.permute.xlu0 %1189 }
 0x142   : > { %726 = vst.msk [vmem:[#allocation2 + $0x1c8] sm:$0x7f] %vm669_vm2, %v5451_v8 }
 0x143   : > { %727 = vst.msk [vmem:[#allocation2 + $0x1d0] sm:$0xff] %vm667_vm1, %v5451_v8 }
 0x144   : > { %728 = vst.msk [vmem:[#allocation2 + $0x1d8] sm:$0x7f] %vm669_vm2, %v5451_v8 }
 0x145   : > { %729 = vst.msk [vmem:[#allocation2 + $0x1e0] sm:$0xff] %vm667_vm1, %v5451_v8 }
 0x146   : > { %1333 = vrot.lane.b32.xlu2 %v5779_v9, %s5482_s7  ;;  %1326 = vrot.lane.b32.xlu1 %v6191_v10, %s5483_s1  ;;  %730 = vst.msk [vmem:[#allocation2 + $0x1e8] sm:$0x7f] %vm669_vm2, %v5451_v8 }
 0x147   : > { %1324 = vrot.lane.b32.xlu0 %v5779_v9, %s5483_s1  ;;  %731 = vst.msk [vmem:[#allocation2 + $0x1f0] sm:$0xff] %vm667_vm1, %v5451_v8  ;;  %v6577_v9 = vld [vmem:[%s8195_s8] sm:$0x1] }
 0x148   : > { %732 = vst.msk [vmem:[#allocation2 + $0x1f8] sm:$0x7f] %vm669_vm2, %v5451_v8  ;;  %v1235_v30 = vpop.permute.xlu1 %1234  ;;  %v1307_v38 = vpop.permute.xlu2 %1306 }
 0x149   : > { %733 = vst.msk [vmem:[#allocation2 + $0x200] sm:$0xff] %vm667_vm1, %v5451_v8  ;;  %v1217_v31 = vpop.permute.xlu0 %1216 }
 0x14a   : > { %734 = vst.msk [vmem:[#allocation2 + $0x208] sm:$0x7f] %vm669_vm2, %v5451_v8 }
 0x14b   : > { %735 = vst.msk [vmem:[#allocation2 + $0x210] sm:$0xff] %vm667_vm1, %v5451_v8 }
 0x14c   : > { %736 = vst.msk [vmem:[#allocation2 + $0x218] sm:$0x7f] %vm669_vm2, %v5451_v8 }
 0x14d   : > { %737 = vst.msk [vmem:[#allocation2 + $0x220] sm:$0xff] %vm667_vm1, %v5451_v8 }
 0x14e   : > { %738 = vst.msk [vmem:[#allocation2 + $0x228] sm:$0x7f] %vm669_vm2, %v5451_v8 }
 0x14f   : > { %1335 = vrot.lane.b32.xlu0 %v6191_v10, %s5482_s7  ;;  %739 = vst.msk [vmem:[#allocation2 + $0x230] sm:$0xff] %vm667_vm1, %v5451_v8 }
 0x150   : > { %740 = vst.msk [vmem:[#allocation2 + $0x238] sm:$0x7f] %vm669_vm2, %v5451_v8  ;;  %v1262_v33 = vpop.permute.xlu1 %1261  ;;  %v1075_v41 = vpop.permute.xlu2 %1074 }
 0x151   : > { %741 = vst.msk [vmem:[#allocation2 + $0x240] sm:$0xff] %vm667_vm1, %v5451_v8  ;;  %v1244_v34 = vpop.permute.xlu0 %1243 }
 0x152   : > { %742 = vst.msk [vmem:[#allocation2 + $0x248] sm:$0x7f] %vm669_vm2, %v5451_v8  ;;  %v6572_v8 = vld [vmem:[%s8265_s28 + $0x18] sm:$0x7] }
 0x153   : > { %1079 = vst.msk [vmem:[#allocation2 + $0x71] sm:$0xff] %vm667_vm1, %v1073_v11 }
 0x154   : > { %1097 = vst.msk [vmem:[#allocation2 + $0x91] sm:$0xff] %vm667_vm1, %v1091_v14 }
 0x155   : > { %1124 = vst.msk [vmem:[#allocation2 + $0xc1] sm:$0xff] %vm667_vm1, %v1118_v17 }
 0x156   : > { %1151 = vst.msk [vmem:[#allocation2 + $0xf1] sm:$0xff] %vm667_vm1, %v1145_v20 }
 0x157   : > { %1070 = vst.msk [vmem:[#allocation2 + $0x61] sm:$0xff] %vm667_vm1, %v1064_v12 }
 0x158   : > { %1061 = vst.msk [vmem:[#allocation2 + $0x51] sm:$0xff] %vm667_vm1, %v1055_v13  ;;  %v1289_v36 = vpop.permute.xlu1 %1288  ;;  %v1102_v44 = vpop.permute.xlu2 %1101 }
 0x159   : > { %1178 = vst.msk [vmem:[#allocation2 + $0x121] sm:$0xff] %vm667_vm1, %v1172_v23  ;;  %v1271_v37 = vpop.permute.xlu0 %1270 }
 0x15a   : > { %1106 = vst.msk [vmem:[#allocation2 + $0xa1] sm:$0xff] %vm667_vm1, %v1100_v15 }
 0x15b   : > { %1088 = vst.msk [vmem:[#allocation2 + $0x81] sm:$0xff] %vm667_vm1, %v1082_v16 }
 0x15c   : > { %1205 = vst.msk [vmem:[#allocation2 + $0x151] sm:$0xff] %vm667_vm1, %v1199_v26 }
 0x15d   : > { %1133 = vst.msk [vmem:[#allocation2 + $0xd1] sm:$0xff] %vm667_vm1, %v1127_v18 }
 0x15e   : > { %1115 = vst.msk [vmem:[#allocation2 + $0xb1] sm:$0xff] %vm667_vm1, %v1109_v19 }
 0x15f   : > { %1160 = vst.msk [vmem:[#allocation2 + $0x101] sm:$0xff] %vm667_vm1, %v1154_v21 }
 0x160   : > { %1142 = vst.msk [vmem:[#allocation2 + $0xe1] sm:$0xff] %vm667_vm1, %v1136_v22  ;;  %v1316_v39 = vpop.permute.xlu1 %1315  ;;  %v1129_v47 = vpop.permute.xlu2 %1128 }
 0x161   : > { %1187 = vst.msk [vmem:[#allocation2 + $0x131] sm:$0xff] %vm667_vm1, %v1181_v24  ;;  %v1298_v40 = vpop.permute.xlu0 %1297 }
 0x162   : > { %1169 = vst.msk [vmem:[#allocation2 + $0x111] sm:$0xff] %vm667_vm1, %v1163_v25 }
 0x163   : > { %1232 = vst.msk [vmem:[#allocation2 + $0x181] sm:$0xff] %vm667_vm1, %v1226_v29 }
 0x164   : > { %1214 = vst.msk [vmem:[#allocation2 + $0x161] sm:$0xff] %vm667_vm1, %v1208_v27 }
 0x165   : > { %1196 = vst.msk [vmem:[#allocation2 + $0x141] sm:$0xff] %vm667_vm1, %v1190_v28 }
 0x166   : > { %1241 = vst.msk [vmem:[#allocation2 + $0x191] sm:$0xff] %vm667_vm1, %v1235_v30 }
 0x167   : > { %1223 = vst.msk [vmem:[#allocation2 + $0x171] sm:$0xff] %vm667_vm1, %v1217_v31 }
 0x168   : > { %1259 = vst.msk [vmem:[#allocation2 + $0x1b1] sm:$0xff] %vm667_vm1, %v1253_v32  ;;  %v1066_v42 = vpop.permute.xlu1 %1065  ;;  %v1156_v50 = vpop.permute.xlu2 %1155 }
 0x169   : > { %1268 = vst.msk [vmem:[#allocation2 + $0x1c1] sm:$0xff] %vm667_vm1, %v1262_v33  ;;  %v1057_v43 = vpop.permute.xlu0 %1056 }
 0x16a   : > { %1250 = vst.msk [vmem:[#allocation2 + $0x1a1] sm:$0xff] %vm667_vm1, %v1244_v34 }
 0x16b   : > { %1286 = vst.msk [vmem:[#allocation2 + $0x1e1] sm:$0xff] %vm667_vm1, %v1280_v35 }
 0x16c   : > { %1295 = vst.msk [vmem:[#allocation2 + $0x1f1] sm:$0xff] %vm667_vm1, %v1289_v36 }
 0x16d   : > { %1277 = vst.msk [vmem:[#allocation2 + $0x1d1] sm:$0xff] %vm667_vm1, %v1271_v37 }
 0x16e   : > { %1313 = vst.msk [vmem:[#allocation2 + $0x211] sm:$0xff] %vm667_vm1, %v1307_v38 }
 0x16f   : > { %1322 = vst.msk [vmem:[#allocation2 + $0x221] sm:$0xff] %vm667_vm1, %v1316_v39 }
 0x170   : > { %1304 = vst.msk [vmem:[#allocation2 + $0x201] sm:$0xff] %vm667_vm1, %v1298_v40  ;;  %v1084_v45 = vpop.permute.xlu1 %1083  ;;  %v1183_v53 = vpop.permute.xlu2 %1182 }
 0x171   : > { %1080 = vst.msk [vmem:[#allocation2 + $0x79] sm:$0x1f] %vm1050_vm7, %v1075_v41  ;;  %v1093_v46 = vpop.permute.xlu0 %1092 }
 0x172   : > { %1071 = vst.msk [vmem:[#allocation2 + $0x69] sm:$0x1f] %vm1050_vm7, %v1066_v42 }
 0x173   : > { %1062 = vst.msk [vmem:[#allocation2 + $0x59] sm:$0x1f] %vm1050_vm7, %v1057_v43 }
 0x174   : > { %1107 = vst.msk [vmem:[#allocation2 + $0xa9] sm:$0x1f] %vm1050_vm7, %v1102_v44 }
 0x175   : > { %1089 = vst.msk [vmem:[#allocation2 + $0x89] sm:$0x1f] %vm1050_vm7, %v1084_v45 }
 0x176   : > { %1098 = vst.msk [vmem:[#allocation2 + $0x99] sm:$0x1f] %vm1050_vm7, %v1093_v46 }
 0x177   : > { %1134 = vst.msk [vmem:[#allocation2 + $0xd9] sm:$0x1f] %vm1050_vm7, %v1129_v47 }
 0x178   : > { %v1111_v48 = vpop.permute.xlu1 %1110  ;;  %1161 = vst.msk [vmem:[#allocation2 + $0x109] sm:$0x1f] %vm1050_vm7, %v1156_v50  ;;  %v1210_v56 = vpop.permute.xlu2 %1209 }
 0x179   : > { %1116 = vst.msk [vmem:[#allocation2 + $0xb9] sm:$0x1f] %vm1050_vm7, %v1111_v48  ;;  %v1120_v49 = vpop.permute.xlu0 %1119 }
 0x17a   : > { %1125 = vst.msk [vmem:[#allocation2 + $0xc9] sm:$0x1f] %vm1050_vm7, %v1120_v49 }
 0x17b   : > { %1188 = vst.msk [vmem:[#allocation2 + $0x139] sm:$0x1f] %vm1050_vm7, %v1183_v53 }
 0x17c   : > { %1215 = vst.msk [vmem:[#allocation2 + $0x169] sm:$0x1f] %vm1050_vm7, %v1210_v56 }
 0x180   : > { %v1138_v51 = vpop.permute.xlu1 %1137  ;;  %v1237_v59 = vpop.permute.xlu2 %1236 }
 0x181   : > { %1143 = vst.msk [vmem:[#allocation2 + $0xe9] sm:$0x1f] %vm1050_vm7, %v1138_v51  ;;  %v1147_v52 = vpop.permute.xlu0 %1146 }
 0x182   : > { %1152 = vst.msk [vmem:[#allocation2 + $0xf9] sm:$0x1f] %vm1050_vm7, %v1147_v52 }
 0x183   : > { %1242 = vst.msk [vmem:[#allocation2 + $0x199] sm:$0x1f] %vm1050_vm7, %v1237_v59 }
 0x188   : > { %v1165_v54 = vpop.permute.xlu1 %1164  ;;  %v1264_v62 = vpop.permute.xlu2 %1263 }
 0x189   : > { %1170 = vst.msk [vmem:[#allocation2 + $0x119] sm:$0x1f] %vm1050_vm7, %v1165_v54  ;;  %v1174_v55 = vpop.permute.xlu0 %1173 }
 0x18a   : > { %1179 = vst.msk [vmem:[#allocation2 + $0x129] sm:$0x1f] %vm1050_vm7, %v1174_v55 }
 0x18b   : > { %1269 = vst.msk [vmem:[#allocation2 + $0x1c9] sm:$0x1f] %vm1050_vm7, %v1264_v62 }
 0x190   : > { %v1192_v57 = vpop.permute.xlu1 %1191  ;;  %v1291_v6 = vpop.permute.xlu2 %1290 }
 0x191   : > { %1197 = vst.msk [vmem:[#allocation2 + $0x149] sm:$0x1f] %vm1050_vm7, %v1192_v57  ;;  %v1201_v58 = vpop.permute.xlu0 %1200 }
 0x192   : > { %1206 = vst.msk [vmem:[#allocation2 + $0x159] sm:$0x1f] %vm1050_vm7, %v1201_v58 }
 0x193   : > { %1296 = vst.msk [vmem:[#allocation2 + $0x1f9] sm:$0x1f] %vm1050_vm7, %v1291_v6 }
 0x198   : > { %v1219_v60 = vpop.permute.xlu1 %1218  ;;  %v1318_v12 = vpop.permute.xlu2 %1317 }
 0x199   : > { %1224 = vst.msk [vmem:[#allocation2 + $0x179] sm:$0x1f] %vm1050_vm7, %v1219_v60  ;;  %v1228_v61 = vpop.permute.xlu0 %1227 }
 0x19a   : > { %1233 = vst.msk [vmem:[#allocation2 + $0x189] sm:$0x1f] %vm1050_vm7, %v1228_v61 }
 0x19b   : > { %1323 = vst.msk [vmem:[#allocation2 + $0x229] sm:$0x1f] %vm1050_vm7, %v1318_v12 }
 0x1a0   : > { %v1246_v63 = vpop.permute.xlu1 %1245  ;;  %v1334_v15 = vpop.permute.xlu2 %1333 }
 0x1a1   : > { %1251 = vst.msk [vmem:[#allocation2 + $0x1a9] sm:$0x1f] %vm1050_vm7, %v1246_v63  ;;  %v1255_v0 = vpop.permute.xlu0 %1254 }
 0x1a2   : > { %1260 = vst.msk [vmem:[#allocation2 + $0x1b9] sm:$0x1f] %vm1050_vm7, %v1255_v0 }
 0x1a3   : > { %1340 = vst.msk [vmem:[#allocation2 + $0x241] sm:$0xff] %vm667_vm1, %v1334_v15 }
 0x1a8   : > { %v1273_v10 = vpop.permute.xlu1 %1272 }
 0x1a9   : > { %1278 = vst.msk [vmem:[#allocation2 + $0x1d9] sm:$0x1f] %vm1050_vm7, %v1273_v10  ;;  %v1282_v11 = vpop.permute.xlu0 %1281 }
 0x1aa   : > { %1287 = vst.msk [vmem:[#allocation2 + $0x1e9] sm:$0x1f] %vm1050_vm7, %v1282_v11 }
 0x1b0   : > { %v1300_v13 = vpop.permute.xlu1 %1299 }
 0x1b1   : > { %1305 = vst.msk [vmem:[#allocation2 + $0x209] sm:$0x1f] %vm1050_vm7, %v1300_v13  ;;  %v1309_v14 = vpop.permute.xlu0 %1308 }
 0x1b2   : > { %1314 = vst.msk [vmem:[#allocation2 + $0x219] sm:$0x1f] %vm1050_vm7, %v1309_v14 }
 0x1b8   : > { %v1327_v16 = vpop.permute.xlu1 %1326 }
 0x1b9   : > { %1332 = vst.msk [vmem:[#allocation2 + $0x239] sm:$0x1f] %vm1050_vm7, %v1327_v16  ;;  %v1325_v17 = vpop.permute.xlu0 %1324 }
 0x1ba   : > { %1331 = vst.msk [vmem:[#allocation2 + $0x231] sm:$0xff] %vm667_vm1, %v1325_v17 }
 0x1c1   : > { %v1336_v18 = vpop.permute.xlu0 %1335 }
 0x1c2   : > { %1341 = vst.msk [vmem:[#allocation2 + $0x249] sm:$0x1f] %vm1050_vm7, %v1336_v18 }
 0x1c3 LB: >> { %s6595_s21 = sshll.u32 %s5429_s30, 4  ;;  %vm8233_vm8 = vcmask 1046528   ;;  %s5484_s0 = smov 6   ;;  %vm8229_vm9 = vcmask 1040384   ;;  %vm8237_vm10 = vcmask 1045504   ;;  %vm1536_vm11 = vcmask 31744   ;;  %s5429_s30 = sphi %s6589_s30, %s1355_s30  }
 0x1c4   : >> { %s6598_s23 = scalar_lea.vmem [#allocation2], %s6595_s21  ;;  %s5485_s13 = smov 2   ;;  %vm1539_vm12 = vcmask 48128   ;;  %vm1544_vm13 = vcmask 80896   ;;  %vm1547_vm14 = vcmask 97280   ;;  %vm1550_vm15 = vcmask 113664  }
 0x1c5   : >> { %s5486_s3 = smov 12   ;;  %s5487_s26 = smov 8   ;;  %vm8236_vm2 = vcmask 130048   ;;  %vm1556_vm4 = vcmask 146432   ;;  %vm1559_vm5 = vcmask 162816   ;;  %vm1728_vm7 = vcmask 1042432  }
 0x1c6   : >> { %s5488_s27 = smov 4   ;;  %s5489_s7 = smov 10  }
 0x1c7   : >> { %s5490_s1 = smov 16   ;;  %s5491_s22 = smov 14  }
 0x1c8   : >> { %s5492_s25 = smov 18   ;;  %s5493_s29 = smov 20  }
 0x1c9   : >> { %v6601_v19 = vld [vmem:[%s6598_s23 + $0x50] sm:$0xff]  ;;  %v6604_v20 = vld [vmem:[%s6598_s23 + $0x58] sm:$0x7f]  ;;  %v4211_v21 = vld [vmem:[%s6598_s23 + $0x60] sm:$0xff]  ;;  %s1355_s30 = sadd.s32 1, %s5429_s30  }
 0x1ca   : >> { %v1577_v22 = vrot.slane %v6601_v19, 1  ;;  %v1578_v23 = vrot.slane %v6604_v20, 1  ;;  %v4212_v24 = vld [vmem:[%s6598_s23 + $0x68] sm:$0x7f]  ;;  %v1604_v25 = vrot.slane %v4211_v21, 1  ;;  %v1589_v30 = vrot.slane %v4211_v21, 7 }
 0x1cb   : >> { %v4810_v26 = vpack.i.bf16 %v4212_v24, %v4211_v21  ;;  %v1605_v27 = vrot.slane %v4212_v24, 1  ;;  %v1590_v29 = vrot.slane %v4212_v24, 7  ;;  %v4214_v33 = vld [vmem:[%s6598_s23 + $0x70] sm:$0xff]  ;;  %v4215_v34 = vld [vmem:[%s6598_s23 + $0x78] sm:$0x7f]  ;;  %v4217_v35 = vld [vmem:[%s6598_s23 + $0x80] sm:$0xff] }
 0x1cc   : >> { %v1579_v28 = vsel %vm8233_vm8, %v1577_v22, %v1578_v23  ;;  %v4218_v36 = vld [vmem:[%s6598_s23 + $0x88] sm:$0x7f]  ;;  %v4815_v37 = vpack.i.bf16 %v4215_v34, %v4214_v33  ;;  %v1615_v39 = vrot.slane %v4214_v33, 7  ;;  %v1616_v40 = vrot.slane %v4215_v34, 7  ;;  %v6625_v50 = vld [vmem:[%s6598_s23] sm:$0xff]  ;;  %v4196_v6 = vld [vmem:[%s6598_s23 + $0x10] sm:$0xff] }
 0x1cd   : >> { %v4820_v31 = vpack.i.bf16 %v1578_v23, %v1579_v28  ;;  %4811 = vrot.lane.b32.xlu1 %v4810_v26, %s5484_s0  ;;  %v1606_v32 = vsel %vm8233_vm8, %v1604_v25, %v1605_v27  ;;  %v1591_v38 = vsel %vm8229_vm9, %v1589_v30, %v1590_v29  ;;  %v1641_v42 = vrot.slane %v4217_v35, 7  ;;  %v6628_v51 = vld [vmem:[%s6598_s23 + $0x8] sm:$0x7f]  ;;  %v4197_v10 = vld [vmem:[%s6598_s23 + $0x18] sm:$0x7f]  ;;  %v4199_v18 = vld [vmem:[%s6598_s23 + $0x20] sm:$0xff] }
 0x1ce   : >> { %v4830_v41 = vpack.i.bf16 %v1605_v27, %v1606_v32  ;;  %4816 = vrot.lane.b32.xlu2 %v4815_v37, %s5486_s3  ;;  %v1642_v43 = vrot.slane %v4218_v36, 7  ;;  %v1617_v44 = vsel %vm8229_vm9, %v1615_v39, %v1616_v40  ;;  %v4825_v45 = vpack.i.bf16 %v1591_v38, %v1589_v30  ;;  %v4200_v21 = vld [vmem:[%s6598_s23 + $0x28] sm:$0x7f]  ;;  %v4202_v27 = vld [vmem:[%s6598_s23 + $0x30] sm:$0xff]  ;;  %v4203_v28 = vld [vmem:[%s6598_s23 + $0x38] sm:$0x7f] }
 0x1cf   : >> { %4821 = vrot.lane.b32.xlu0 %v4820_v31, %s5485_s13  ;;  %v1630_v46 = vrot.slane %v4214_v33, 1  ;;  %v1631_v47 = vrot.slane %v4215_v34, 1  ;;  %v4835_v48 = vpack.i.bf16 %v1617_v44, %v1615_v39  ;;  %v1403_v54 = vrot.slane %v6625_v50, 1  ;;  %p1352_p4 = scmp.ge.s32.totalorder %s1355_s30, 33  }
 0x1d0   : >> { %v1643_v49 = vsel %vm8229_vm9, %v1641_v42, %v1642_v43  ;;  %v1404_v55 = vrot.slane %v6628_v51, 1  ;;  %v1656_v57 = vrot.slane %v4217_v35, 1  ;;  %v1657_v58 = vrot.slane %v4218_v36, 1 }
 0x1d1   : >> { %v1632_v52 = vsel %vm8233_vm8, %v1630_v46, %v1631_v47  ;;  %v4845_v53 = vpack.i.bf16 %v1643_v49, %v1641_v42  ;;  %v4850_v59 = vpack.i.bf16 %v4218_v36, %v4217_v35  ;;  %v1413_v61 = vrot.slane %v6625_v50, 2  ;;  %v4205_v35 = vld [vmem:[%s6598_s23 + $0x40] sm:$0xff]  ;;  %v4206_v36 = vld [vmem:[%s6598_s23 + $0x48] sm:$0x7f]  ;;  %s5497_s23 = smov 22  }
 0x1d2   : >> { %v4840_v56 = vpack.i.bf16 %v1631_v47, %v1632_v52  ;;  %v1405_v60 = vsel %vm8233_vm8, %v1403_v54, %v1404_v55  ;;  %v1414_v62 = vrot.slane %v6628_v51, 2  ;;  %v1658_v63 = vsel %vm8233_vm8, %v1656_v57, %v1657_v58 }
 0x1d3   : >> { %v4860_v0 = vpack.i.bf16 %v1404_v55, %v1405_v60  ;;  %v1430_v11 = vrot.slane %v4196_v6, 1  ;;  %v1431_v12 = vrot.slane %v4197_v10, 1  ;;  %v4855_v14 = vpack.i.bf16 %v1657_v58, %v1658_v63 }
 0x1d4   : >> { %v1415_v13 = vsel %vm8237_vm10, %v1413_v61, %v1414_v62  ;;  %v1456_v22 = vrot.slane %v4199_v18, 1  ;;  %v1457_v23 = vrot.slane %v4200_v21, 1  ;;  %v4870_v24 = vpack.i.bf16 %v4197_v10, %v4196_v6 }
 0x1d5   : >> { %4831 = vrot.lane.b32.xlu1 %v4830_v41, %s5487_s26  ;;  %v4865_v15 = vpack.i.bf16 %v1414_v62, %v1415_v13  ;;  %v1432_v16 = vsel %vm8233_vm8, %v1430_v11, %v1431_v12  ;;  %v1482_v29 = vrot.slane %v4202_v27, 1  ;;  %v1483_v30 = vrot.slane %v4203_v28, 1 }
 0x1d6   : >> { %4836 = vrot.lane.b32.xlu2 %v4835_v48, %s5489_s7  ;;  %v4875_v17 = vpack.i.bf16 %v1431_v12, %v1432_v16  ;;  %v1458_v25 = vsel %vm8233_vm8, %v1456_v22, %v1457_v23  ;;  %v4885_v31 = vpack.i.bf16 %v4200_v21, %v4199_v18  ;;  %v4900_v34 = vpack.i.bf16 %v4203_v28, %v4202_v27 }
 0x1d7   : >> { %4826 = vrot.lane.b32.xlu0 %v4825_v45, %s5488_s27  ;;  %v4890_v26 = vpack.i.bf16 %v1457_v23, %v1458_v25  ;;  %v1484_v32 = vsel %vm8233_vm8, %v1482_v29, %v1483_v30  ;;  %v4915_v37 = vpack.i.bf16 %v4206_v36, %v4205_v35  ;;  %v1508_v38 = vrot.slane %v4205_v35, 1 }
 0x1d8   : >> { %v4905_v33 = vpack.i.bf16 %v1483_v30, %v1484_v32  ;;  %v1439_v39 = vrot.slane %v4196_v6, 2  ;;  %v1509_v40 = vrot.slane %v4206_v36, 1  ;;  %v1440_v41 = vrot.slane %v4197_v10, 2 }
 0x1d9   : >> { %v4930_v45 = vpack.i.bf16 %v6604_v20, %v6601_v19  ;;  %v1465_v47 = vrot.slane %v4199_v18, 2  ;;  %v1466_v48 = vrot.slane %v4200_v21, 2  ;;  %v1492_v54 = vrot.slane %v4203_v28, 2 }
 0x1da   : >> { %v1510_v42 = vsel %vm8233_vm8, %v1508_v38, %v1509_v40  ;;  %v1441_v44 = vsel %vm8237_vm10, %v1439_v39, %v1440_v41  ;;  %v1517_v57 = vrot.slane %v4205_v35, 2  ;;  %v1518_v58 = vrot.slane %v4206_v36, 2 }
 0x1db   : >> { %v4920_v43 = vpack.i.bf16 %v1509_v40, %v1510_v42  ;;  %v4880_v46 = vpack.i.bf16 %v1440_v41, %v1441_v44  ;;  %v1467_v49 = vsel %vm8237_vm10, %v1465_v47, %v1466_v48 }
 0x1dc   : >> { %v4895_v52 = vpack.i.bf16 %v1466_v48, %v1467_v49 }
 0x1dd   : >> { %4846 = vrot.lane.b32.xlu1 %v4845_v53, %s5490_s1  ;;  %v1491_v53 = vrot.slane %v4202_v27, 2 }
 0x1de   : >> { %4851 = vrot.lane.b32.xlu2 %v4850_v59, %s5492_s25  ;;  %v1519_v59 = vsel %vm8237_vm10, %v1517_v57, %v1518_v58 }
 0x1df   : >> { %4841 = vrot.lane.b32.xlu0 %v4840_v56, %s5491_s22  ;;  %v1493_v55 = vsel %vm8237_vm10, %v1491_v53, %v1492_v54  ;;  %v4925_v60 = vpack.i.bf16 %v1518_v58, %v1519_v59 }
 0x1e0   : >> { %v4910_v56 = vpack.i.bf16 %v1492_v54, %v1493_v55 }
 0x1e5   : >> { %4861 = vrot.lane.b32.xlu1 %v4860_v0, %s5485_s13  ;;  %s5495_s13 = smov 26  }
 0x1e6   : >> { %4866 = vrot.lane.b32.xlu2 %v4865_v15, %s5488_s27  ;;  %s5499_s27 = smov 32  }
 0x1e7   : >> { %4856 = vrot.lane.b32.xlu0 %v4855_v14, %s5493_s29 }
 0x1ed   : >> { %4876 = vrot.lane.b32.xlu1 %v4875_v17, %s5487_s26  ;;  %s5498_s26 = smov 28  }
 0x1ee   : >> { %4881 = vrot.lane.b32.xlu2 %v4880_v46, %s5489_s7  ;;  %s1752_s7 = scalar_lea.vmem %s5687_s20, %s6595_s21 }
 0x1ef   : >> { %4871 = vrot.lane.b32.xlu0 %v4870_v24, %s5484_s0  ;;  %s5494_s0 = smov 24  }
 0x1f5   : >> { %4891 = vrot.lane.b32.xlu1 %v4890_v26, %s5491_s22 }
 0x1f6   : >> { %4896 = vrot.lane.b32.xlu2 %v4895_v52, %s5490_s1  ;;  %s3899_s1 = scalar_lea.vmem [#allocation3], %s6595_s21  ;;  %s8266_s21 = sld [smem:[#allocation15_spill]] (%p1352_p4) }
 0x1f7   : >> { %4886 = vrot.lane.b32.xlu0 %v4885_v31, %s5486_s3  ;;  %s5496_s3 = smov 30  }
 0x1fd   : >> { %4906 = vrot.lane.b32.xlu1 %v4905_v33, %s5493_s29 }
 0x1fe   : >> { %4911 = vrot.lane.b32.xlu2 %v4910_v56, %s5497_s23 }
 0x1ff   : >> { %4901 = vrot.lane.b32.xlu0 %v4900_v34, %s5492_s25 }
 0x205   : >> { %4921 = vrot.lane.b32.xlu1 %v4920_v43, %s5495_s13  ;;  %s6876_s13 = smov (%p1352_p4), 0  }
 0x206   : >> { %4926 = vrot.lane.b32.xlu2 %v4925_v60, %s5498_s26 }
 0x207   : >> { %4916 = vrot.lane.b32.xlu0 %v4915_v37, %s5494_s0 }
 0x20f   : >> { %4931 = vrot.lane.b32.xlu0 %v4930_v45, %s5496_s3 }
 0x228   : >> { %v4817_v62 = vpop.permute.xlu2 %4816 }
 0x229   : >> { %v4818_v34 = vunpack.i.l.bf16 %v4817_v62 }
 0x230   : >> { %v4837_v16 = vpop.permute.xlu2 %4836 }
 0x231   : >> { %v4839_v27 = vunpack.i.h.bf16 %v4837_v16  ;;  %v4838_v28 = vunpack.i.l.bf16 %v4837_v16 }
 0x238   : >> { %v4852_v41 = vpop.permute.xlu2 %4851 }
 0x239   : >> { %v4854_v44 = vunpack.i.h.bf16 %v4852_v41  ;;  %v4853_v45 = vunpack.i.l.bf16 %v4852_v41 }
 0x23f   : >> { %v4812_v61 = vpop.permute.xlu1 %4811 }
 0x240   : >> { %v4814_v21 = vunpack.i.h.bf16 %v4812_v61  ;;  %v4813_v22 = vunpack.i.l.bf16 %v4812_v61  ;;  %v4867_v60 = vpop.permute.xlu2 %4866 }
 0x241   : >> { %v4822_v63 = vpop.permute.xlu0 %4821 }
 0x242   : >> { %v4824_v0 = vunpack.i.h.bf16 %v4822_v63  ;;  %v4823_v6 = vunpack.i.l.bf16 %v4822_v63  ;;  %v4869_v63 = vunpack.i.h.bf16 %v4867_v60 }
 0x244   : >> { %v1666_v17 = vsel %vm667_vm1, %v6604_v20, %v4824_v0  ;;  %v1665_v18 = vsel %vm667_vm1, %v6601_v19, %v4823_v6  ;;  %v4819_v20 = vunpack.i.h.bf16 %v4817_v62  ;;  %v4868_v0 = vunpack.i.l.bf16 %v4867_v60 }
 0x245   : >> { %v4222_v60 = vor.u32 %v6547_v2, %v6542_v1  ;;  %v6759_v1 = vld [vmem:[%s8266_s21 + $0x10] sm:$0xf] (%p1352_p4)  ;;  %v6764_v2 = vld [vmem:[%s8266_s21 + $0x10] sm:$0xf0] (%p1352_p4) }
 0x247   : >> { %v4832_v10 = vpop.permute.xlu1 %4831 }
 0x248   : >> { %v4834_v14 = vunpack.i.h.bf16 %v4832_v10  ;;  %v4833_v15 = vunpack.i.l.bf16 %v4832_v10 }
 0x249   : >> { %v4827_v11 = vpop.permute.xlu0 %4826 }
 0x24a   : >> { %v4829_v12 = vunpack.i.h.bf16 %v4827_v11  ;;  %v4828_v13 = vunpack.i.l.bf16 %v4827_v11 }
 0x24c   : >> { %v1667_v23 = vsel %vm1536_vm11, %v1665_v18, %v4828_v13  ;;  %v1668_v24 = vsel %vm1536_vm11, %v1666_v17, %v4829_v12 }
 0x24d   : >> { %v1669_v25 = vsel %vm1539_vm12, %v1667_v23, %v4813_v22  ;;  %v1670_v26 = vsel %vm1539_vm12, %v1668_v24, %v4814_v21 }
 0x24e   : >> { %v1671_v29 = vsel %vm751_vm3, %v1669_v25, %v4833_v15  ;;  %v1672_v30 = vsel %vm751_vm3, %v1670_v26, %v4834_v14 }
 0x24f   : >> { %v1673_v19 = vsel %vm1544_vm13, %v1671_v29, %v4838_v28  ;;  %v1674_v31 = vsel %vm1544_vm13, %v1672_v30, %v4839_v27  ;;  %v4847_v33 = vpop.permute.xlu1 %4846  ;;  %v4882_v29 = vpop.permute.xlu2 %4881 }
 0x250   : >> { %v1675_v37 = vsel %vm1547_vm14, %v1673_v19, %v4818_v34  ;;  %v1676_v38 = vsel %vm1547_vm14, %v1674_v31, %v4819_v20  ;;  %v4849_v39 = vunpack.i.h.bf16 %v4847_v33  ;;  %v4848_v40 = vunpack.i.l.bf16 %v4847_v33 }
 0x251   : >> { %v4842_v32 = vpop.permute.xlu0 %4841  ;;  %v4883_v33 = vunpack.i.l.bf16 %v4882_v29 }
 0x252   : >> { %v4844_v35 = vunpack.i.h.bf16 %v4842_v32  ;;  %v4843_v36 = vunpack.i.l.bf16 %v4842_v32  ;;  %v4884_v32 = vunpack.i.h.bf16 %v4882_v29 }
 0x254   : >> { %v1677_v42 = vsel %vm1550_vm15, %v1675_v37, %v4843_v36  ;;  %v1678_v43 = vsel %vm1550_vm15, %v1676_v38, %v4844_v35  ;;  %v4230_v35 = vor.u32 %v6567_v7, %v6562_v5  ;;  %v6779_v5 = vld [vmem:[%s8266_s21 + $0x20] sm:$0xf] (%p1352_p4)  ;;  %v6784_v7 = vld [vmem:[%s8266_s21 + $0x20] sm:$0xf0] (%p1352_p4) }
 0x255   : >> { %v1679_v46 = vsel %vm8236_vm2, %v1677_v42, %v4848_v40  ;;  %v1680_v47 = vsel %vm8236_vm2, %v1678_v43, %v4849_v39  ;;  %v4226_v42 = vor.u32 %v6557_v4, %v6552_v3  ;;  %v6769_v3 = vld [vmem:[%s8266_s21 + $0x18] sm:$0xf] (%p1352_p4)  ;;  %v6774_v4 = vld [vmem:[%s8266_s21 + $0x18] sm:$0xf0] (%p1352_p4) }
 0x256   : >> { %v1681_v56 = vsel %vm1556_vm4, %v1679_v46, %v4853_v45  ;;  %v1682_v57 = vsel %vm1556_vm4, %v1680_v47, %v4854_v44 }
 0x257   : >> { %v4862_v49 = vpop.permute.xlu1 %4861  ;;  %v4897_v44 = vpop.permute.xlu2 %4896 }
 0x258   : >> { %v4864_v54 = vunpack.i.h.bf16 %v4862_v49  ;;  %v4863_v55 = vunpack.i.l.bf16 %v4862_v49  ;;  %v4898_v49 = vunpack.i.l.bf16 %v4897_v44 }
 0x259   : >> { %v4857_v48 = vpop.permute.xlu0 %4856 }
 0x25a   : >> { %v4859_v52 = vunpack.i.h.bf16 %v4857_v48  ;;  %v4858_v53 = vunpack.i.l.bf16 %v4857_v48  ;;  %v1535_v6 = vsel %vm667_vm1, %v6628_v51, %v4864_v54  ;;  %v1534_v10 = vsel %vm667_vm1, %v6625_v50, %v4863_v55 }
 0x25b   : >> { %v1537_v13 = vsel %vm1536_vm11, %v1534_v10, %v4868_v0  ;;  %v1538_v14 = vsel %vm1536_vm11, %v1535_v6, %v4869_v63  ;;  %v1716_v50 = vunpack.c.l.b16 %v6572_v8  ;;  %v4899_v48 = vunpack.i.h.bf16 %v4897_v44  ;;  %v6744_v44 = vld [vmem:[%s8266_s21] sm:$0xf0] (%p1352_p4)  ;;  %v6789_v8 = vld [vmem:[%s8266_s21 + $0x28] sm:$0xf] (%p1352_p4) }
 0x25c   : >> { %v1683_v58 = vsel %vm1559_vm5, %v1681_v56, %v4858_v53  ;;  %v1684_v59 = vsel %vm1559_vm5, %v1682_v57, %v4859_v52  ;;  %vm1562_vm11 = vcmask 179200  }
 0x25d   : >> { %v1687_v61 = vrot.slane %v1683_v58, 1  ;;  %v1688_v62 = vrot.slane %v1684_v59, 1  ;;  %v1720_v26 = vpack.c.b16 %v1716_v50, %v1716_v50 }
 0x25f   : >> { %v1689_v11 = vsel %vm8233_vm8, %v1687_v61, %v1688_v62  ;;  %v4877_v51 = vpop.permute.xlu1 %4876  ;;  %v1730_v31 = vsel %vm1728_vm7, %v1720_v26, 0  ;;  %v4912_v61 = vpop.permute.xlu2 %4911 }
 0x260   : >> { %v4935_v12 = vpack.i.bf16 %v1688_v62, %v1689_v11  ;;  %v4879_v22 = vunpack.i.h.bf16 %v4877_v51  ;;  %v4878_v23 = vunpack.i.l.bf16 %v4877_v51  ;;  %1736 = vmatpush.bf16.msra.mxu0 %v1730_v31  ;;  %v4914_v63 = vunpack.i.h.bf16 %v4912_v61 }
 0x261   : >> { %v4872_v15 = vpop.permute.xlu0 %4871  ;;  %v4913_v0 = vunpack.i.l.bf16 %v4912_v61  ;;  %v6859_v61 = vld [vmem:[%s8266_s21 + $0x60] sm:$0xf] (%p1352_p4) }
 0x262   : >> { %4936 = vrot.lane.b32.xlu1 %v4935_v12, %s5499_s27  ;;  %v4874_v16 = vunpack.i.h.bf16 %v4872_v15  ;;  %v4873_v17 = vunpack.i.l.bf16 %v4872_v15 }
 0x264   : >> { %v1540_v18 = vsel %vm1539_vm12, %v1537_v13, %v4873_v17  ;;  %v1541_v21 = vsel %vm1539_vm12, %v1538_v14, %v4874_v16  ;;  %1737 = vmatpush.bf16.msra.mxu0 %v4230_v35  ;;  %vm8235_vm12 = vcmask 195584  }
 0x265   : >> { %v1542_v27 = vsel %vm751_vm3, %v1540_v18, %v4878_v23  ;;  %v1543_v28 = vsel %vm751_vm3, %v1541_v21, %v4879_v22 }
 0x266   : >> { %v1545_v36 = vsel %vm1544_vm13, %v1542_v27, %v4883_v33  ;;  %v1546_v37 = vsel %vm1544_vm13, %v1543_v28, %v4884_v32  ;;  %vm1568_vm13 = vcmask 211968  }
 0x267   : >> { %v4892_v25 = vpop.permute.xlu1 %4891  ;;  %v4927_v16 = vpop.permute.xlu2 %4926 }
 0x268   : >> { %v4894_v19 = vunpack.i.h.bf16 %v4892_v25  ;;  %v4893_v34 = vunpack.i.l.bf16 %v4892_v25  ;;  %1738 = vmatpush.bf16.msra.mxu0 %v4226_v42  ;;  %v4929_v21 = vunpack.i.h.bf16 %v4927_v16  ;;  %v4928_v51 = vunpack.i.l.bf16 %v4927_v16 }
 0x269   : >> { %v4887_v24 = vpop.permute.xlu0 %4886 }
 0x26a   : >> { %v4889_v30 = vunpack.i.h.bf16 %v4887_v24  ;;  %v4888_v20 = vunpack.i.l.bf16 %v4887_v24 }
 0x26c   : >> { %v1548_v38 = vsel %vm1547_vm14, %v1545_v36, %v4888_v20  ;;  %v1549_v39 = vsel %vm1547_vm14, %v1546_v37, %v4889_v30  ;;  %1739 = vmatpush.bf16.msra.mxu0 %v4222_v60  ;;  %vm1571_vm14 = vcmask 228352   ;;  %v6854_v60 = vld [vmem:[%s8266_s21 + $0x58] sm:$0xf0] (%p1352_p4) }
 0x26d   : >> { %v1551_v40 = vsel %vm1550_vm15, %v1548_v38, %v4893_v34  ;;  %v1552_v41 = vsel %vm1550_vm15, %v1549_v39, %v4894_v19  ;;  %vm1574_vm15 = vcmask 244736   ;;  %v1701_v34 = vperm.slane %v6577_v9, 0  ;;  %v6794_v9 = vld [vmem:[%s8266_s21 + $0x28] sm:$0xf0] (%p1352_p4) }
 0x26e   : >> { %v1554_v54 = vsel %vm8236_vm2, %v1551_v40, %v4898_v49  ;;  %v1555_v55 = vsel %vm8236_vm2, %v1552_v41, %v4899_v48  ;;  %v6804_v48 = vld [vmem:[%s8266_s21 + $0x30] sm:$0xf0] (%p1352_p4)  ;;  %v6809_v49 = vld [vmem:[%s8266_s21 + $0x38] sm:$0xf] (%p1352_p4) }
 0x26f   : >> { %v4907_v47 = vpop.permute.xlu1 %4906 }
 0x270   : >> { %v4909_v52 = vunpack.i.h.bf16 %v4907_v47  ;;  %v4908_v53 = vunpack.i.l.bf16 %v4907_v47  ;;  %v6799_v47 = vld [vmem:[%s8266_s21 + $0x30] sm:$0xf] (%p1352_p4) }
 0x271   : >> { %v4902_v43 = vpop.permute.xlu0 %4901 }
 0x272   : >> { %v4904_v45 = vunpack.i.h.bf16 %v4902_v43  ;;  %v4903_v46 = vunpack.i.l.bf16 %v4902_v43  ;;  %v6739_v43 = vld [vmem:[%s8266_s21] sm:$0xf] (%p1352_p4) }
 0x274   : >> { %v1557_v56 = vsel %vm1556_vm4, %v1554_v54, %v4903_v46  ;;  %v1558_v57 = vsel %vm1556_vm4, %v1555_v55, %v4904_v45  ;;  %vm8230_vm4 = vcmask 261120   ;;  %v6749_v45 = vld [vmem:[%s8266_s21 + $0x8] sm:$0xf] (%p1352_p4)  ;;  %v6754_v46 = vld [vmem:[%s8266_s21 + $0x8] sm:$0xf0] (%p1352_p4) }
 0x275   : >> { %v1560_v58 = vsel %vm1559_vm5, %v1557_v56, %v4908_v53  ;;  %v1561_v59 = vsel %vm1559_vm5, %v1558_v57, %v4909_v52  ;;  %vm1724_vm5 = vcmask 441344   ;;  %v6814_v52 = vld [vmem:[%s8266_s21 + $0x38] sm:$0xf0] (%p1352_p4)  ;;  %v6819_v53 = vld [vmem:[%s8266_s21 + $0x40] sm:$0xf] (%p1352_p4) }
 0x276   : >> { %v1563_v12 = vsel %vm1562_vm11, %v1560_v58, %v4913_v0  ;;  %v1564_v13 = vsel %vm1562_vm11, %v1561_v59, %v4914_v63  ;;  %v6824_v54 = vld [vmem:[%s8266_s21 + $0x40] sm:$0xf0] (%p1352_p4)  ;;  %v6829_v55 = vld [vmem:[%s8266_s21 + $0x48] sm:$0xf] (%p1352_p4)  ;;  %v6834_v56 = vld [vmem:[%s8266_s21 + $0x48] sm:$0xf0] (%p1352_p4) }
 0x277   : >> { %v4922_v11 = vpop.permute.xlu1 %4921  ;;  %v6839_v57 = vld [vmem:[%s8266_s21 + $0x50] sm:$0xf] (%p1352_p4)  ;;  %v6844_v58 = vld [vmem:[%s8266_s21 + $0x50] sm:$0xf0] (%p1352_p4)  ;;  %v6849_v59 = vld [vmem:[%s8266_s21 + $0x58] sm:$0xf] (%p1352_p4) }
 0x278   : >> { %v4924_v14 = vunpack.i.h.bf16 %v4922_v11  ;;  %v4923_v15 = vunpack.i.l.bf16 %v4922_v11  ;;  %v6869_v63 = vld [vmem:[%s8266_s21 + $0x68] sm:$0xf] (%p1352_p4)  ;;  %v6874_v0 = vld [vmem:[%s8196_s9] sm:$0x1] (%p1352_p4) }
 0x279   : >> { %v4917_v62 = vpop.permute.xlu0 %4916 }
 0x27a   : >> { %v4919_v6 = vunpack.i.h.bf16 %v4917_v62  ;;  %v4918_v10 = vunpack.i.l.bf16 %v4917_v62  ;;  %v6864_v62 = vld [vmem:[%s8266_s21 + $0x60] sm:$0xf0] (%p1352_p4) }
 0x27c   : >> { %v1566_v17 = vsel %vm8235_vm12, %v1563_v12, %v4918_v10  ;;  %v1567_v18 = vsel %vm8235_vm12, %v1564_v13, %v4919_v6 }
 0x27d   : >> { %v1569_v23 = vsel %vm1568_vm13, %v1566_v17, %v4923_v15  ;;  %v1570_v50 = vsel %vm1568_vm13, %v1567_v18, %v4924_v14 }
 0x27e   : >> { %v1572_v26 = vsel %vm1571_vm14, %v1569_v23, %v4928_v51  ;;  %v1573_v27 = vsel %vm1571_vm14, %v1570_v50, %v4929_v21 }
 0x281   : >> { %v4932_v22 = vpop.permute.xlu0 %4931 }
 0x282   : >> { %v4934_v24 = vunpack.i.h.bf16 %v4932_v22  ;;  %v4933_v25 = vunpack.i.l.bf16 %v4932_v22 }
 0x284   : >> { %v1575_v20 = vsel %vm1574_vm15, %v1572_v26, %v4933_v25  ;;  %v1576_v19 = vsel %vm1574_vm15, %v1573_v27, %v4934_v24 }
 0x2d4   : >> { %v4937_v28 = vpop.permute.xlu1 %4936 }
 0x2d5   : >> { %v4939_v29 = vunpack.i.h.bf16 %v4937_v28  ;;  %v4938_v30 = vunpack.i.l.bf16 %v4937_v28 }
 0x2d7   : >> { %v1697_v31 = vsel %vm8230_vm4, %v1575_v20, %v4938_v30  ;;  %v1698_v32 = vsel %vm8230_vm4, %v1576_v19, %v4939_v29 }
 0x2d8   : >> { %v1699_v33 = vpack.c.bf16 %v1698_v32, %v1697_v31 }
 0x2da   : >> { %4231 = vmatmul.msk.bf16.vlgmr.msra.gmra.mxu0 %vm1724_vm5, %v1699_v33 }
 0x357   : >> { %v1741_v35 = vpop.f32.mrf.mxu0 }
 0x358   : >> { %v1742_v36 = vadd.f32 %v1741_v35, %v1701_v34 }
 0x35a   : >> { %vm1746_vm7 = vcmp.ge.f32.partialorder %v1742_v36, 0.0  ;;  %v1748_v37 = vmul.f32 0.2, %v1742_v36 }
 0x35c   : >> { %v1750_v38 = vsel %vm1746_vm7, %v1742_v36, %v1748_v37 }
 0x35d   : >> { %1753 = vst.msk [vmem:[%s1752_s7] sm:$0xff] %vm751_vm3, %v1750_v38 }
 0x35e   : >> { %4233 = vst.msk [vmem:[%s3899_s1 + $0x41] sm:$0xff] %vm751_vm3, %v1750_v38 }
 0x35f   : >> { %v1743_v39 = vpop.f32.mrf.mxu0 }
 0x360   : >> { %v1744_v40 = vadd.f32 %v1743_v39, %v1701_v34 }
 0x362   : >> { %vm1747_vm11 = vcmp.ge.f32.partialorder %v1744_v40, 0.0  ;;  %v1749_v41 = vmul.f32 0.2, %v1744_v40  ;;  %1354 = sbr.rel (!%p1352_p4) target bundleno = 451 (0x1c3), region = 294 }
 0x364   : >> { %v1751_v42 = vsel %vm1747_vm11, %v1744_v40, %v1749_v41 }
 0x365   : >> { %1754 = vst.msk [vmem:[%s1752_s7 + $0x8] sm:$0x1f] %vm8238_vm6, %v1751_v42 }
 0x366   : >> { %4234 = vst.msk [vmem:[%s3899_s1 + $0x49] sm:$0x1f] %vm8238_vm6, %v1751_v42 }
 0x367 LB: >> { %s4597_s3 = sshll.u32 %s5433_s13, 5  ;;  %s5500_s26 = smov 24   ;;  %vm8267_vm8 = vcmask 1046528   ;;  %vm8268_vm9 = vcmask 1040384   ;;  %vm2218_vm1 = vcmask 1043456   ;;  %vm1982_vm13 = vcmask 326656   ;;  %s5433_s13 = sphi %s6876_s13, %s1791_s13  }
 0x368   : >> { %s6882_s23 = scalar_lea.vmem [#allocation3], %s4597_s3  ;;  %s5501_s20 = smov 8   ;;  %vm1985_vm14 = vcmask 392192   ;;  %vm8269_vm4 = vcmask 261120   ;;  %vm1988_vm15 = vcmask 457728   ;;  %vm8231_vm5 = vcmask 588800  }
 0x369   : >> { %s5502_s30 = smov 32   ;;  %s5503_s27 = smov 40   ;;  %vm1996_vm7 = vcmask 654336   ;;  %vm1999_vm11 = vcmask 719872   ;;  %vm8270_vm0 = vcmask 523264  }
 0x36a   : >> { %s5504_s7 = smov 16   ;;  %s5505_s1 = smov 48  }
 0x36b   : >> { %s5506_s22 = smov 64   ;;  %s5507_s25 = smov 56  }
 0x36c   : >> { %s5508_s29 = smov 72   ;;  %s5509_s0 = smov 88  }
 0x36d   : >> { %v4239_v6 = vld [vmem:[%s6882_s23 + $0x10] sm:$0xff]  ;;  %v4240_v10 = vld [vmem:[%s6882_s23 + $0x18] sm:$0x7f]  ;;  %v6887_v11 = vld [vmem:[%s6882_s23] sm:$0xff]  ;;  %s5510_s3 = smov 80  }
 0x36e   : >> { %v4940_v12 = vpack.i.bf16 %v4240_v10, %v4239_v6  ;;  %v1867_v13 = vrot.slane %v4239_v6, 1  ;;  %v6890_v14 = vld [vmem:[%s6882_s23 + $0x8] sm:$0x7f]  ;;  %v1840_v15 = vrot.slane %v6887_v11, 1  ;;  %v1868_v16 = vrot.slane %v4240_v10, 1  ;;  %v4259_v23 = vld [vmem:[%s6882_s23 + $0x60] sm:$0xff] }
 0x36f   : >> { %v1841_v17 = vrot.slane %v6890_v14, 1  ;;  %v1850_v18 = vrot.slane %v6887_v11, 2  ;;  %v1851_v22 = vrot.slane %v6890_v14, 2  ;;  %v4260_v50 = vld [vmem:[%s6882_s23 + $0x68] sm:$0x7f]  ;;  %v1876_v24 = vrot.slane %v4239_v6, 2 }
 0x370   : >> { %4941 = vrot.lane.b32.xlu1 %v4940_v12, %s5500_s26  ;;  %v1869_v51 = vsel %vm8267_vm8, %v1867_v13, %v1868_v16  ;;  %v6902_v26 = vld [vmem:[%s6882_s23 + $0x50] sm:$0xff]  ;;  %v6905_v27 = vld [vmem:[%s6882_s23 + $0x58] sm:$0x7f]  ;;  %v1877_v28 = vrot.slane %v4240_v10, 2  ;;  %v2026_v30 = vrot.slane %v4259_v23, 7  ;;  %v2027_v20 = vrot.slane %v4260_v50, 7 }
 0x371   : >> { %v1842_v21 = vsel %vm8267_vm8, %v1840_v15, %v1841_v17  ;;  %v4960_v29 = vpack.i.bf16 %v1868_v16, %v1869_v51  ;;  %v1852_v19 = vsel %vm8237_vm10, %v1850_v18, %v1851_v22  ;;  %v2014_v32 = vrot.slane %v6902_v26, 1  ;;  %v4243_v39 = vld [vmem:[%s6882_s23 + $0x20] sm:$0xff]  ;;  %v4244_v40 = vld [vmem:[%s6882_s23 + $0x28] sm:$0x7f]  ;;  %v4264_v18 = vld [vmem:[%s6882_s23 + $0x78] sm:$0x7f] }
 0x372   : >> { %v4945_v25 = vpack.i.bf16 %v1841_v17, %v1842_v21  ;;  %v1878_v31 = vsel %vm8237_vm10, %v1876_v24, %v1877_v28  ;;  %v2015_v33 = vrot.slane %v6905_v27, 1  ;;  %v4950_v35 = vpack.i.bf16 %v1851_v22, %v1852_v19  ;;  %v4263_v17 = vld [vmem:[%s6882_s23 + $0x70] sm:$0xff] }
 0x373   : >> { %v4965_v34 = vpack.i.bf16 %v1877_v28, %v1878_v31  ;;  %v2028_v36 = vsel %vm8268_vm9, %v2026_v30, %v2027_v20  ;;  %v1902_v42 = vrot.slane %v4243_v39, 2  ;;  %v1903_v6 = vrot.slane %v4244_v40, 2  ;;  %v4247_v31 = vld [vmem:[%s6882_s23 + $0x30] sm:$0xff] }
 0x374   : >> { %4946 = vrot.lane.b32.xlu0 %v4945_v25, %s5501_s20  ;;  %v2016_v37 = vsel %vm8267_vm8, %v2014_v32, %v2015_v33  ;;  %v4975_v38 = vpack.i.bf16 %v2028_v36, %v2026_v30  ;;  %v1893_v10 = vrot.slane %v4243_v39, 1  ;;  %v1894_v12 = vrot.slane %v4244_v40, 1  ;;  %v4248_v32 = vld [vmem:[%s6882_s23 + $0x38] sm:$0x7f] }
 0x375   : >> { %4966 = vrot.lane.b32.xlu2 %v4965_v34, %s5503_s27  ;;  %v4970_v41 = vpack.i.bf16 %v2015_v33, %v2016_v37  ;;  %v4955_v13 = vpack.i.bf16 %v4244_v40, %v4243_v39  ;;  %v1904_v15 = vsel %vm8237_vm10, %v1902_v42, %v1903_v6  ;;  %v2052_v22 = vrot.slane %v4263_v17, 7  ;;  %v4267_v39 = vld [vmem:[%s6882_s23 + $0x80] sm:$0xff]  ;;  %v4268_v40 = vld [vmem:[%s6882_s23 + $0x88] sm:$0x7f] }
 0x376   : >> { %v1895_v16 = vsel %vm8267_vm8, %v1893_v10, %v1894_v12  ;;  %v4990_v21 = vpack.i.bf16 %v1903_v6, %v1904_v15  ;;  %v2053_v24 = vrot.slane %v4264_v18, 7  ;;  %v2041_v25 = vrot.slane %v4259_v23, 1 }
 0x377   : >> { %v4980_v51 = vpack.i.bf16 %v1894_v12, %v1895_v16  ;;  %v2042_v28 = vrot.slane %v4260_v50, 1  ;;  %v1928_v34 = vrot.slane %v4247_v31, 2  ;;  %v1919_v36 = vrot.slane %v4247_v31, 1 }
 0x378   : >> { %4961 = vrot.lane.b32.xlu1 %v4960_v29, %s5502_s30  ;;  %v4985_v29 = vpack.i.bf16 %v4260_v50, %v4259_v23  ;;  %v2054_v30 = vsel %vm8268_vm9, %v2052_v22, %v2053_v24  ;;  %v1920_v37 = vrot.slane %v4248_v32, 1  ;;  %v5000_v23 = vpack.i.bf16 %v4248_v32, %v4247_v31  ;;  %v4252_v24 = vld [vmem:[%s6882_s23 + $0x48] sm:$0x7f] }
 0x379   : >> { %v2043_v20 = vsel %vm8267_vm8, %v2041_v25, %v2042_v28  ;;  %v5005_v19 = vpack.i.bf16 %v2054_v30, %v2052_v22  ;;  %v2078_v6 = vrot.slane %v4267_v39, 7  ;;  %v2079_v10 = vrot.slane %v4268_v40, 7  ;;  %v4251_v22 = vld [vmem:[%s6882_s23 + $0x40] sm:$0xff]  ;;  %s5512_s23 = smov 112  }
 0x37a   : >> { %v4995_v33 = vpack.i.bf16 %v2042_v28, %v2043_v20  ;;  %v2067_v12 = vrot.slane %v4263_v17, 1  ;;  %v5015_v15 = vpack.i.bf16 %v4264_v18, %v4263_v17  ;;  %v1954_v28 = vrot.slane %v4251_v22, 2 }
 0x37b   : >> { %v2080_v16 = vsel %vm8268_vm9, %v2078_v6, %v2079_v10  ;;  %v1945_v30 = vrot.slane %v4251_v22, 1  ;;  %v1946_v20 = vrot.slane %v4252_v24, 1  ;;  %v5030_v17 = vpack.i.bf16 %v4252_v24, %v4251_v22 }
 0x37c   : >> { %4951 = vrot.lane.b32.xlu0 %v4950_v35, %s5504_s7  ;;  %v1929_v35 = vrot.slane %v4248_v32, 2  ;;  %v2187_v10 = vunpack.c.l.b16 %v6869_v63  ;;  %v4292_v22 = vor.u32 %v6794_v9, %v6789_v8  ;;  %vm2002_vm9 = vcmask 785408  }
 0x37d   : >> { %4971 = vrot.lane.b32.xlu2 %v4970_v41, %s5501_s20  ;;  %s5513_s20 = smov 104  }
 0x37e   : >> { %v1930_v50 = vsel %vm8237_vm10, %v1928_v34, %v1929_v35  ;;  %v2094_v34 = vrot.slane %v4268_v40, 1 }
 0x37f   : >> { %v5020_v41 = vpack.i.bf16 %v1929_v35, %v1930_v50  ;;  %v5045_v35 = vpack.i.bf16 %v4268_v40, %v4267_v39 }
 0x380   : >> { %4976 = vrot.lane.b32.xlu1 %v4975_v38, %s5504_s7  ;;  %v1921_v38 = vsel %vm8267_vm8, %v1919_v36, %v1920_v37  ;;  %s3937_s7 = smul.u32 24, %s5433_s13 }
 0x381   : >> { %v5010_v42 = vpack.i.bf16 %v1920_v37, %v1921_v38 }
 0x384   : >> { %4956 = vrot.lane.b32.xlu0 %v4955_v13, %s5505_s1  ;;  %v2068_v13 = vrot.slane %v4264_v18, 1 }
 0x385   : >> { %4981 = vrot.lane.b32.xlu2 %v4980_v51, %s5507_s25  ;;  %v5035_v51 = vpack.i.bf16 %v2080_v16, %v2078_v6  ;;  %v4300_v6 = vor.u32 %v6814_v52, %v6809_v49 }
 0x387   : >> { %2222 = vmatpush.bf16.msra.mxu0 %v4300_v6 }
 0x388   : >> { %4991 = vrot.lane.b32.xlu1 %v4990_v21, %s5506_s22  ;;  %v2069_v21 = vsel %vm8267_vm8, %v2067_v12, %v2068_v13 }
 0x389   : >> { %v5025_v25 = vpack.i.bf16 %v2068_v13, %v2069_v21  ;;  %v2201_v13 = vpack.c.b16 %v2187_v10, %v2187_v10  ;;  %v4272_v10 = vor.u32 %v6744_v44, %v6739_v43 }
 0x38b   : >> { %v2220_v16 = vsel %vm2218_vm1, %v2201_v13, 0 }
 0x38c   : >> { %4986 = vrot.lane.b32.xlu0 %v4985_v29, %s5500_s26  ;;  %v1955_v29 = vrot.slane %v4252_v24, 2  ;;  %s5511_s26 = smov 96   ;;  %2238 = vmatpush.bf16.msra.mxu1 %v2220_v16  ;;  %v4320_v24 = vor.u32 %v6864_v62, %v6859_v61 }
 0x38d   : >> { %4996 = vrot.lane.b32.xlu2 %v4995_v33, %s5502_s30  ;;  %v2093_v33 = vrot.slane %v4267_v39, 1  ;;  %s5514_s30 = smov 120  }
 0x38e   : >> { %v1956_v18 = vsel %vm8237_vm10, %v1954_v28, %v1955_v29  ;;  %v4288_v28 = vor.u32 %v6784_v7, %v6779_v5 }
 0x38f   : >> { %v5050_v31 = vpack.i.bf16 %v1955_v29, %v1956_v18  ;;  %v2095_v36 = vsel %vm8267_vm8, %v2093_v33, %v2094_v34  ;;  %v4316_v29 = vor.u32 %v6854_v60, %v6849_v59 }
 0x390   : >> { %5006 = vrot.lane.b32.xlu1 %v5005_v19, %s5503_s27  ;;  %v1947_v19 = vsel %vm8267_vm8, %v1945_v30, %v1946_v20  ;;  %v5055_v37 = vpack.i.bf16 %v2094_v34, %v2095_v36  ;;  %2239 = vmatpush.bf16.msra.mxu1 %v4320_v24  ;;  %v4276_v34 = vor.u32 %v6754_v46, %v6749_v45  ;;  %s4322_s27 = sshll.u32 %s5433_s13, 4  ;;  %s1791_s13 = sadd.s32 1, %s5433_s13  }
 0x391   : >> { %v5040_v32 = vpack.i.bf16 %v1946_v20, %v1947_v19  ;;  %v4284_v20 = vor.u32 %v6774_v4, %v6769_v3  ;;  %p1788_p5 = scmp.ge.s32.totalorder %s1791_s13, 17  }
 0x392   : > { %v7137_v43 = vld [vmem:[%s8191_s4 + $0x10] sm:$0xf] (%p1788_p5)  ;;  %v7142_v44 = vld [vmem:[%s8191_s4 + $0x10] sm:$0xf0] (%p1788_p5)  ;;  %v7147_v45 = vld [vmem:[%s8191_s4 + $0x18] sm:$0xf] (%p1788_p5) }
 0x393   : > { %v7152_v46 = vld [vmem:[%s8191_s4 + $0x18] sm:$0xf0] (%p1788_p5)  ;;  %v7167_v3 = vld [vmem:[%s8191_s4 + $0x28] sm:$0xf] (%p1788_p5)  ;;  %v7172_v4 = vld [vmem:[%s8191_s4 + $0x28] sm:$0xf0] (%p1788_p5) }
 0x394   : >> { %5001 = vrot.lane.b32.xlu0 %v5000_v23, %s5508_s29  ;;  %v5060_v23 = vpack.i.bf16 %v6905_v27, %v6902_v26  ;;  %2240 = vmatpush.bf16.msra.mxu1 %v4316_v29  ;;  %v7177_v5 = vld [vmem:[%s8191_s4 + $0x30] sm:$0xf] (%p1788_p5)  ;;  %v7182_v7 = vld [vmem:[%s8191_s4 + $0x30] sm:$0xf0] (%p1788_p5)  ;;  %v7187_v8 = vld [vmem:[%s8191_s4 + $0x38] sm:$0xf] (%p1788_p5) }
 0x395   : >> { %5011 = vrot.lane.b32.xlu2 %v5010_v42, %s5510_s3  ;;  %v7192_v9 = vld [vmem:[%s8191_s4 + $0x38] sm:$0xf0] (%p1788_p5)  ;;  %v7207_v49 = vld [vmem:[%s8191_s4 + $0x48] sm:$0xf] (%p1788_p5)  ;;  %v7212_v52 = vld [vmem:[%s8191_s4 + $0x48] sm:$0xf0] (%p1788_p5) }
 0x396   : > { %v7247_v59 = vld [vmem:[%s8191_s4 + $0x68] sm:$0xf] (%p1788_p5)  ;;  %v7252_v60 = vld [vmem:[%s8197_s10] sm:$0x1] (%p1788_p5) }
 0x398   : >> { %5021 = vrot.lane.b32.xlu1 %v5020_v41, %s5509_s0 }
 0x39c   : >> { %5016 = vrot.lane.b32.xlu0 %v5015_v15, %s5505_s1  ;;  %v4296_v15 = vor.u32 %v6804_v48, %v6799_v47  ;;  %s2257_s1 = scalar_lea.vmem %s5692_s12, %s4322_s27  ;;  %v7197_v47 = vld [vmem:[%s8191_s4 + $0x40] sm:$0xf] (%p1788_p5)  ;;  %v7202_v48 = vld [vmem:[%s8191_s4 + $0x40] sm:$0xf0] (%p1788_p5) }
 0x39d   : >> { %5026 = vrot.lane.b32.xlu2 %v5025_v25, %s5507_s25  ;;  %s7254_s25 = smov (%p1788_p5), 0  }
 0x39e   : >> { %2223 = vmatpush.bf16.msra.mxu0 %v4296_v15 }
 0x3a0   : >> { %5036 = vrot.lane.b32.xlu1 %v5035_v51, %s5506_s22  ;;  %s3938_s22 = scalar_lea.vmem [#allocation4], %s3937_s7 }
 0x3a2   : >> { %2224 = vmatpush.bf16.msra.mxu0 %v4292_v22 }
 0x3a4   : >> { %5031 = vrot.lane.b32.xlu0 %v5030_v17, %s5511_s26  ;;  %v4312_v17 = vor.u32 %v6844_v58, %v6839_v57  ;;  %v7237_v57 = vld [vmem:[%s8191_s4 + $0x60] sm:$0xf] (%p1788_p5)  ;;  %v7242_v58 = vld [vmem:[%s8191_s4 + $0x60] sm:$0xf0] (%p1788_p5) }
 0x3a5   : >> { %5041 = vrot.lane.b32.xlu2 %v5040_v32, %s5513_s20  ;;  %v4308_v32 = vor.u32 %v6834_v56, %v6829_v55  ;;  %v7227_v55 = vld [vmem:[%s8191_s4 + $0x58] sm:$0xf] (%p1788_p5)  ;;  %v7232_v56 = vld [vmem:[%s8191_s4 + $0x58] sm:$0xf0] (%p1788_p5) }
 0x3a6   : >> { %2225 = vmatpush.bf16.msra.mxu0 %v4288_v28  ;;  %2241 = vmatpush.bf16.msra.mxu1 %v4312_v17 }
 0x3a8   : >> { %5051 = vrot.lane.b32.xlu1 %v5050_v31, %s5512_s23  ;;  %v4280_v31 = vor.u32 %v6764_v2, %v6759_v1  ;;  %v7157_v1 = vld [vmem:[%s8191_s4 + $0x20] sm:$0xf] (%p1788_p5)  ;;  %v7162_v2 = vld [vmem:[%s8191_s4 + $0x20] sm:$0xf0] (%p1788_p5) }
 0x3aa   : >> { %2226 = vmatpush.bf16.msra.mxu0 %v4284_v20  ;;  %2242 = vmatpush.bf16.msra.mxu1 %v4308_v32 }
 0x3ac   : >> { %5046 = vrot.lane.b32.xlu0 %v5045_v35, %s5508_s29  ;;  %v4304_v35 = vor.u32 %v6824_v54, %v6819_v53  ;;  %v7217_v53 = vld [vmem:[%s8191_s4 + $0x50] sm:$0xf] (%p1788_p5)  ;;  %v7222_v54 = vld [vmem:[%s8191_s4 + $0x50] sm:$0xf0] (%p1788_p5) }
 0x3ad   : >> { %5056 = vrot.lane.b32.xlu2 %v5055_v37, %s5510_s3 }
 0x3ae   : >> { %2227 = vmatpush.bf16.msra.mxu0 %v4280_v31  ;;  %2243 = vmatpush.bf16.msra.mxu1 %v4304_v35 }
 0x3b2   : >> { %2228 = vmatpush.bf16.msra.mxu0 %v4276_v34 }
 0x3b4   : >> { %5061 = vrot.lane.b32.xlu0 %v5060_v23, %s5514_s30 }
 0x3b6   : >> { %2229 = vmatpush.bf16.msra.mxu0 %v4272_v10 }
 0x3cf   : >> { %v6951_v50 = vpop.permute.xlu2 %4966 }
 0x3d0   : >> { %v4969_v35 = vunpack.i.h.bf16 %v6951_v50 }
 0x3d7   : >> { %v6953_v38 = vpop.permute.xlu2 %4971 }
 0x3d8   : >> { %v4974_v20 = vunpack.i.h.bf16 %v6953_v38  ;;  %v4973_v17 = vunpack.i.l.bf16 %v6953_v38 }
 0x3da   : >> { %v2103_v38 = vsel %vm751_vm3, %v6905_v27, %v4974_v20 }
 0x3df   : >> { %v6957_v40 = vpop.permute.xlu2 %4981 }
 0x3e2   : >> { %v6955_v41 = vpop.permute.xlu1 %4941 }
 0x3e3   : >> { %v4944_v28 = vunpack.i.h.bf16 %v6955_v41  ;;  %v4943_v29 = vunpack.i.l.bf16 %v6955_v41  ;;  %v2102_v41 = vsel %vm751_vm3, %v6902_v26, %v4973_v17 }
 0x3e6   : >> { %v4947_v39 = vpop.permute.xlu0 %4946 }
 0x3e7   : >> { %v6969_v51 = vpop.permute.xlu2 %4996  ;;  %v4949_v37 = vunpack.i.h.bf16 %v4947_v39  ;;  %v4948_v23 = vunpack.i.l.bf16 %v4947_v39 }
 0x3e9   : >> { %v1972_v16 = vsel %vm751_vm3, %v6890_v14, %v4949_v37  ;;  %v1971_v22 = vsel %vm751_vm3, %v6887_v11, %v4948_v23  ;;  %v4968_v37 = vunpack.i.l.bf16 %v6951_v50 }
 0x3ea   : >> { %v6959_v42 = vpop.permute.xlu1 %4961 }
 0x3eb   : >> { %v4964_v14 = vunpack.i.h.bf16 %v6959_v42  ;;  %v4963_v31 = vunpack.i.l.bf16 %v6959_v42 }
 0x3ee   : >> { %v4952_v12 = vpop.permute.xlu0 %4951 }
 0x3ef   : >> { %v6987_v18 = vpop.permute.xlu2 %5011  ;;  %v4954_v13 = vunpack.i.h.bf16 %v4952_v12  ;;  %v4953_v15 = vunpack.i.l.bf16 %v4952_v12 }
 0x3f1   : >> { %v1974_v24 = vsel %vm8236_vm2, %v1971_v22, %v4953_v15  ;;  %v1975_v39 = vsel %vm8236_vm2, %v1972_v16, %v4954_v13  ;;  %v4984_v22 = vunpack.i.h.bf16 %v6957_v40 }
 0x3f2   : >> { %v6967_v21 = vpop.permute.xlu1 %4976  ;;  %v1977_v32 = vsel %vm8235_vm12, %v1974_v24, %v4943_v29  ;;  %v1978_v34 = vsel %vm8235_vm12, %v1975_v39, %v4944_v28  ;;  %v4983_v24 = vunpack.i.l.bf16 %v6957_v40  ;;  %v4998_v39 = vunpack.i.l.bf16 %v6969_v51 }
 0x3f3   : >> { %v4979_v23 = vunpack.i.h.bf16 %v6967_v21  ;;  %v4978_v42 = vunpack.i.l.bf16 %v6967_v21  ;;  %v1980_v13 = vsel %vm8269_vm4, %v1977_v32, %v4963_v31  ;;  %v1981_v15 = vsel %vm8269_vm4, %v1978_v34, %v4964_v14 }
 0x3f4   : >> { %v4999_v21 = vunpack.i.h.bf16 %v6969_v51  ;;  %v1983_v28 = vsel %vm1982_vm13, %v1980_v13, %v4968_v37  ;;  %v1984_v29 = vsel %vm1982_vm13, %v1981_v15, %v4969_v35 }
 0x3f5   : >> { %v2104_v20 = vsel %vm8236_vm2, %v2102_v41, %v4978_v42  ;;  %v5013_v41 = vunpack.i.l.bf16 %v6987_v18 }
 0x3f6   : >> { %v6975_v25 = vpop.permute.xlu0 %4956 }
 0x3f7   : >> { %v7003_v6 = vpop.permute.xlu2 %5026  ;;  %v4959_v50 = vunpack.i.h.bf16 %v6975_v25  ;;  %v4958_v16 = vunpack.i.l.bf16 %v6975_v25  ;;  %v2105_v25 = vsel %vm8236_vm2, %v2103_v38, %v4979_v23  ;;  %v5014_v38 = vunpack.i.h.bf16 %v6987_v18 }
 0x3f9   : >> { %v1986_v17 = vsel %vm1985_vm14, %v1983_v28, %v4958_v16  ;;  %v1987_v14 = vsel %vm1985_vm14, %v1984_v29, %v4959_v50 }
 0x3fa   : >> { %v6981_v30 = vpop.permute.xlu1 %4991  ;;  %v1990_v13 = vsel %vm1988_vm15, %v1987_v14, %v4984_v22 }
 0x3fb   : >> { %v4993_v40 = vunpack.i.l.bf16 %v6981_v30 }
 0x3fe   : >> { %v6989_v19 = vpop.permute.xlu0 %4986 }
 0x3ff   : >> { %v7031_v10 = vpop.permute.xlu2 %5041  ;;  %v4989_v27 = vunpack.i.h.bf16 %v6989_v19  ;;  %v4988_v26 = vunpack.i.l.bf16 %v6989_v19  ;;  %v4994_v19 = vunpack.i.h.bf16 %v6981_v30  ;;  %v1989_v30 = vsel %vm1988_vm15, %v1986_v17, %v4983_v24 }
 0x400   : >> { %v1991_v18 = vsel %vm8270_vm0, %v1989_v30, %v4993_v40 }
 0x401   : >> { %v2107_v51 = vsel %vm8235_vm12, %v2105_v25, %v4989_v27  ;;  %v2106_v32 = vsel %vm8235_vm12, %v2104_v20, %v4988_v26  ;;  %v5029_v27 = vunpack.i.h.bf16 %v7003_v6  ;;  %v5028_v26 = vunpack.i.l.bf16 %v7003_v6 }
 0x402   : >> { %v6995_v33 = vpop.permute.xlu1 %5006  ;;  %v2108_v16 = vsel %vm8269_vm4, %v2106_v32, %v4998_v39 }
 0x403   : >> { %v5009_v34 = vunpack.i.h.bf16 %v6995_v33  ;;  %v5008_v35 = vunpack.i.l.bf16 %v6995_v33  ;;  %v2109_v33 = vsel %vm8269_vm4, %v2107_v51, %v4999_v21  ;;  %vm2005_vm4 = vcmask 850944  }
 0x405   : >> { %v2110_v24 = vsel %vm1982_vm13, %v2108_v16, %v5008_v35  ;;  %v2111_v22 = vsel %vm1982_vm13, %v2109_v33, %v5009_v34 }
 0x406   : >> { %v7001_v36 = vpop.permute.xlu0 %5001 }
 0x407   : >> { %v5004_v15 = vunpack.i.h.bf16 %v7001_v36  ;;  %v5003_v50 = vunpack.i.l.bf16 %v7001_v36  ;;  %v5057_v28 = vpop.permute.xlu2 %5056 }
 0x408   : >> { %v5058_v40 = vunpack.i.l.bf16 %v5057_v28 }
 0x409   : >> { %v1994_v21 = vsel %vm8231_vm5, %v1991_v18, %v5003_v50 }
 0x40a   : >> { %v7017_v12 = vpop.permute.xlu1 %5021 }
 0x40b   : >> { %v5024_v6 = vunpack.i.h.bf16 %v7017_v12  ;;  %v5023_v17 = vunpack.i.l.bf16 %v7017_v12  ;;  %v5043_v12 = vunpack.i.l.bf16 %v7031_v10 }
 0x40e   : >> { %v5017_v11 = vpop.permute.xlu0 %5016 }
 0x40f   : >> { %v5019_v23 = vunpack.i.h.bf16 %v5017_v11  ;;  %v5018_v42 = vunpack.i.l.bf16 %v5017_v11  ;;  %v1992_v11 = vsel %vm8270_vm0, %v1990_v13, %v4994_v19  ;;  %v5059_v19 = vunpack.i.h.bf16 %v5057_v28 }
 0x410   : >> { %v1995_v20 = vsel %vm8231_vm5, %v1992_v11, %v5004_v15  ;;  %v5044_v13 = vunpack.i.h.bf16 %v7031_v10 }
 0x411   : >> { %v2112_v29 = vsel %vm1985_vm14, %v2110_v24, %v5018_v42  ;;  %v2113_v36 = vsel %vm1985_vm14, %v2111_v22, %v5019_v23  ;;  %v1998_v18 = vsel %vm1996_vm7, %v1995_v20, %v5014_v38 }
 0x412   : >> { %v5037_v37 = vpop.permute.xlu1 %5036  ;;  %v2114_v51 = vsel %vm1988_vm15, %v2112_v29, %v5028_v26  ;;  %v2115_v32 = vsel %vm1988_vm15, %v2113_v36, %v5029_v27  ;;  %v1997_v26 = vsel %vm1996_vm7, %v1994_v21, %v5013_v41  ;;  %v2001_v22 = vsel %vm1999_vm11, %v1998_v18, %v5024_v6  ;;  %v7127_v18 = vld [vmem:[%s8191_s4 + $0x8] sm:$0xf] (%p1788_p5) }
 0x413   : >> { %v5039_v39 = vunpack.i.h.bf16 %v5037_v37  ;;  %v5038_v25 = vunpack.i.l.bf16 %v5037_v37 }
 0x415   : >> { %v2116_v37 = vsel %vm8270_vm0, %v2114_v51, %v5038_v25  ;;  %v2117_v23 = vsel %vm8270_vm0, %v2115_v32, %v5039_v39  ;;  %vm8234_vm0 = vcmask 982016   ;;  %v2132_v32 = vperm.slane %v6874_v0, 0 }
 0x416   : >> { %v7051_v31 = vpop.permute.xlu0 %5031 }
 0x417   : >> { %v5034_v42 = vunpack.i.h.bf16 %v7051_v31  ;;  %v5033_v30 = vunpack.i.l.bf16 %v7051_v31  ;;  %v2000_v31 = vsel %vm1999_vm11, %v1997_v26, %v5023_v17  ;;  %v7122_v26 = vld [vmem:[%s8191_s4] sm:$0xf0] (%p1788_p5) }
 0x419   : >> { %v2003_v29 = vsel %vm2002_vm9, %v2000_v31, %v5033_v30  ;;  %v2004_v36 = vsel %vm2002_vm9, %v2001_v22, %v5034_v42 }
 0x41a   : >> { %v5052_v15 = vpop.permute.xlu1 %5051  ;;  %v2006_v21 = vsel %vm2005_vm4, %v2003_v29, %v5043_v12  ;;  %v2007_v20 = vsel %vm2005_vm4, %v2004_v36, %v5044_v13 }
 0x41b   : >> { %v5054_v10 = vunpack.i.h.bf16 %v5052_v15  ;;  %v5053_v28 = vunpack.i.l.bf16 %v5052_v15 }
 0x41e   : >> { %v5047_v14 = vpop.permute.xlu0 %5046 }
 0x41f   : >> { %v5049_v34 = vunpack.i.h.bf16 %v5047_v14  ;;  %v5048_v35 = vunpack.i.l.bf16 %v5047_v14 }
 0x421   : >> { %v2118_v50 = vsel %vm8231_vm5, %v2116_v37, %v5048_v35  ;;  %v2119_v16 = vsel %vm8231_vm5, %v2117_v23, %v5049_v34  ;;  %vm2008_vm5 = vcmask 916480  }
 0x422   : >> { %v2120_v33 = vsel %vm1996_vm7, %v2118_v50, %v5058_v40  ;;  %v2121_v27 = vsel %vm1996_vm7, %v2119_v16, %v5059_v19  ;;  %v2009_v6 = vsel %vm2008_vm5, %v2006_v21, %v5053_v28  ;;  %v2010_v17 = vsel %vm2008_vm5, %v2007_v20, %v5054_v10 }
 0x423   : >> { %v2124_v11 = vrot.slane %v2120_v33, 1  ;;  %v2125_v24 = vrot.slane %v2121_v27, 1  ;;  %v7117_v27 = vld [vmem:[%s8191_s4] sm:$0xf] (%p1788_p5) }
 0x425   : >> { %v2126_v39 = vsel %vm8267_vm8, %v2124_v11, %v2125_v24  ;;  %v7132_v11 = vld [vmem:[%s8191_s4 + $0x8] sm:$0xf0] (%p1788_p5) }
 0x426   : >> { %v5062_v25 = vpop.permute.xlu0 %5061  ;;  %v2130_v14 = vpack.c.bf16 %v2125_v24, %v2126_v39 }
 0x427   : >> { %v5064_v38 = vunpack.i.h.bf16 %v5062_v25  ;;  %v5063_v41 = vunpack.i.l.bf16 %v5062_v25 }
 0x428   : >> { %4321 = vmatmul.msk.bf16.vlgmr.msra.gmra.mxu1 %vm1999_vm11, %v2130_v14 }
 0x429   : >> { %v2012_v19 = vsel %vm8234_vm0, %v2009_v6, %v5063_v41  ;;  %v2013_v40 = vsel %vm8234_vm0, %v2010_v17, %v5064_v38 }
 0x42a   : >> { %v2129_v51 = vpack.c.bf16 %v2013_v40, %v2012_v19 }
 0x42c   : >> { %2230 = vmatmul.bf16.vlgmr.msra.gmra.mxu0 %v2129_v51 }
 0x4a5   : >> { %v2245_v34 = vpop.f32.mrf.mxu1 }
 0x4a9   : >> { %v2231_v35 = vpop.f32.mrf.mxu0 }
 0x4aa   : >> { %v2232_v37 = vadd.f32 %v2231_v35, %v2132_v32 }
 0x4ac   : >> { %v2246_v23 = vadd.f32 %v2245_v34, %v2232_v37 }
 0x4ad   : >> { %v2247_v15 = vpop.f32.mrf.mxu1 }
 0x4ae   : >> { %vm2250_vm8 = vcmp.ge.f32.partialorder %v2246_v23, 0.0  ;;  %v2252_v42 = vmul.f32 0.2, %v2246_v23 }
 0x4b0   : >> { %v2254_v30 = vsel %vm2250_vm8, %v2246_v23, %v2252_v42 }
 0x4b1   : >> { %2258 = vst.msk [vmem:[%s2257_s1] sm:$0xff] %vm751_vm3, %v2254_v30  ;;  %v2233_v13 = vpop.f32.mrf.mxu0 }
 0x4b2   : >> { %4323 = vst.msk [vmem:[%s3938_s22 + $0x62] sm:$0xff] %vm751_vm3, %v2254_v30  ;;  %v2234_v12 = vadd.f32 %v2233_v13, %v2132_v32 }
 0x4b4   : >> { %v2248_v50 = vadd.f32 %v2247_v15, %v2234_v12 }
 0x4b6   : >> { %vm2251_vm0 = vcmp.ge.f32.partialorder %v2248_v50, 0.0  ;;  %v2253_v16 = vmul.f32 0.2, %v2248_v50  ;;  %1790 = sbr.rel (!%p1788_p5) target bundleno = 871 (0x367), region = 305 }
 0x4b8   : >> { %v2255_v33 = vsel %vm2251_vm0, %v2248_v50, %v2253_v16 }
 0x4b9   : >> { %2259 = vst.msk [vmem:[%s2257_s1 + $0x8] sm:$0x1f] %vm8238_vm6, %v2255_v33 }
 0x4ba   : >> { %4324 = vst.msk [vmem:[%s3938_s22 + $0x6a] sm:$0x1f] %vm8238_vm6, %v2255_v33 }
 0x4bb LB: >> { %s4326_s29 = smul.u32 48, %s5437_s25  ;;  %s5515_s3 = smov 24   ;;  %vm2559_vm0 = vcmask 1041408   ;;  %vm8271_vm2 = vcmask 130048   ;;  %vm8272_vm12 = vcmask 195584   ;;  %vm8273_vm8 = vcmask 261120   ;;  %s5437_s25 = sphi %s7254_s25, %s2298_s25  }
 0x4bc   : >> { %s5516_s26 = smov 8   ;;  %s5517_s23 = smov 32  }
 0x4bd   : >> { %s7260_s0 = scalar_lea.vmem [#allocation4], %s4326_s29  ;;  %s5518_s20 = smov 40  }
 0x4be   : >> { %s5519_s30 = smov 16   ;;  %s5520_s12 = smov 48  }
 0x4bf   : >> { %s5521_s13 = smov 64   ;;  %s5522_s27 = smov 56  }
 0x4c0   : >> { %s5523_s7 = smov 72   ;;  %s5524_s1 = smov 88  }
 0x4c1   : >> { %v4329_v61 = vld [vmem:[%s7260_s0 + $0x18] sm:$0xff]  ;;  %v4330_v62 = vld [vmem:[%s7260_s0 + $0x20] sm:$0xff]  ;;  %v7268_v31 = vld [vmem:[%s7260_s0 + $0x8] sm:$0xff]  ;;  %s5525_s22 = smov 80   ;;  %s5526_s29 = smov 96  }
 0x4c2   : >> { %v7265_v63 = vld [vmem:[%s7260_s0] sm:$0xff]  ;;  %v5065_v0 = vpack.i.bf16 %v4330_v62, %v4329_v61  ;;  %v2386_v24 = vrot.slane %v4329_v61, 2  ;;  %v2387_v10 = vrot.slane %v4330_v62, 2  ;;  %v2304_v28 = vld [vmem:[%s7260_s0 + $0x10] sm:$0x1]  ;;  %v2357_v29 = vrot.slane %v7268_v31, 2 }
 0x4c3   : >> { %v2356_v22 = vrot.slane %v7265_v63, 2  ;;  %v2367_v36 = vrot.slane %v7265_v63, 4  ;;  %v2368_v14 = vrot.slane %v7268_v31, 4  ;;  %v2370_v38 = vrot.slane %v2304_v28, 4  ;;  %v4331_v41 = vld [vmem:[%s7260_s0 + $0x28] sm:$0x1] }
 0x4c4   : >> { %5066 = vrot.lane.b32.xlu1 %v5065_v0, %s5515_s3  ;;  %v2388_v25 = vsel %vm8237_vm10, %v2386_v24, %v2387_v10  ;;  %v7280_v20 = vld [vmem:[%s7260_s0 + $0x90] sm:$0xff]  ;;  %v7283_v6 = vld [vmem:[%s7260_s0 + $0x98] sm:$0xff]  ;;  %v2396_v40 = vrot.slane %v4329_v61, 4  ;;  %v2397_v51 = vrot.slane %v4330_v62, 4  ;;  %v2399_v32 = vrot.slane %v4331_v41, 4  ;;  %v7290_v34 = vld [vmem:[%s7260_s0 + $0x80] sm:$0xff] }
 0x4c5   : >> { %v2358_v39 = vsel %vm8237_vm10, %v2356_v22, %v2357_v29  ;;  %v7286_v17 = vld [vmem:[%s7260_s0 + $0x78] sm:$0xff]  ;;  %v5085_v19 = vpack.i.bf16 %v2387_v10, %v2388_v25  ;;  %v4351_v35 = vld [vmem:[%s7260_s0 + $0x88] sm:$0x1]  ;;  %v2369_v37 = vsel %vm2218_vm1, %v2367_v36, %v2368_v14  ;;  %v2371_v23 = vsel %vm2218_vm1, %v2368_v14, %v2370_v38  ;;  %v4336_v0 = vld [vmem:[%s7260_s0 + $0x40] sm:$0x1] }
 0x4c6   : >> { %v5070_v21 = vpack.i.bf16 %v2357_v29, %v2358_v39  ;;  %v2560_v42 = vrot.slane %v7280_v20, 6  ;;  %v2561_v30 = vrot.slane %v7283_v6, 6  ;;  %v2398_v13 = vsel %vm2218_vm1, %v2396_v40, %v2397_v51  ;;  %v4334_v28 = vld [vmem:[%s7260_s0 + $0x30] sm:$0xff]  ;;  %v4335_v29 = vld [vmem:[%s7260_s0 + $0x38] sm:$0xff] }
 0x4c7   : >> { %v2400_v12 = vsel %vm2218_vm1, %v2397_v51, %v2399_v32  ;;  %v2546_v15 = vrot.slane %v7286_v17, 2  ;;  %v2547_v16 = vrot.slane %v7290_v34, 2  ;;  %v2549_v33 = vrot.slane %v4351_v35, 2  ;;  %v4359_v51 = vld [vmem:[%s7260_s0 + $0xa8] sm:$0xff]  ;;  %v4360_v32 = vld [vmem:[%s7260_s0 + $0xb0] sm:$0xff] }
 0x4c8   : >> { %5071 = vrot.lane.b32.xlu0 %v5070_v21, %s5516_s26  ;;  %v5090_v50 = vpack.i.bf16 %v2400_v12, %v2398_v13  ;;  %v5075_v61 = vpack.i.bf16 %v2371_v23, %v2369_v37  ;;  %v2562_v62 = vsel %vm2559_vm0, %v2560_v42, %v2561_v30  ;;  %v2425_v36 = vrot.slane %v4334_v28, 4  ;;  %v4356_v37 = vld [vmem:[%s7260_s0 + $0xa0] sm:$0x1] }
 0x4c9   : >> { %v2548_v24 = vsel %vm8237_vm10, %v2546_v15, %v2547_v16  ;;  %v2550_v22 = vsel %vm8237_vm10, %v2547_v16, %v2549_v33  ;;  %v5100_v10 = vpack.i.bf16 %v2562_v62, %v2560_v42  ;;  %v2426_v39 = vrot.slane %v4335_v29, 4 }
 0x4ca   : >> { %5091 = vrot.lane.b32.xlu2 %v5090_v50, %s5518_s20  ;;  %v2428_v25 = vrot.slane %v4336_v0, 4  ;;  %v5095_v14 = vpack.i.bf16 %v2550_v22, %v2548_v24  ;;  %v2415_v38 = vrot.slane %v4334_v28, 2  ;;  %v2416_v41 = vrot.slane %v4335_v29, 2  ;;  %v4339_v22 = vld [vmem:[%s7260_s0 + $0x48] sm:$0xff] }
 0x4cb   : >> { %v5080_v21 = vpack.i.bf16 %v4335_v29, %v4334_v28  ;;  %v2589_v42 = vrot.slane %v4359_v51, 6  ;;  %v2590_v30 = vrot.slane %v4360_v32, 6  ;;  %v2576_v12 = vrot.slane %v7280_v20, 2 }
 0x4cc   : >> { %5086 = vrot.lane.b32.xlu1 %v5085_v19, %s5517_s23  ;;  %v2427_v19 = vsel %vm2218_vm1, %v2425_v36, %v2426_v39  ;;  %v2429_v40 = vsel %vm2218_vm1, %v2426_v39, %v2428_v25  ;;  %v2417_v35 = vsel %vm8237_vm10, %v2415_v38, %v2416_v41  ;;  %v2577_v15 = vrot.slane %v7283_v6, 2 }
 0x4cd   : >> { %v5115_v23 = vpack.i.bf16 %v2429_v40, %v2427_v19  ;;  %v5105_v13 = vpack.i.bf16 %v2416_v41, %v2417_v35  ;;  %v2579_v50 = vrot.slane %v4356_v37, 2  ;;  %v5110_v16 = vpack.i.bf16 %v7283_v6, %v7280_v20  ;;  %v4364_v41 = vld [vmem:[%s7260_s0 + $0xc0] sm:$0xff]  ;;  %v4361_v40 = vld [vmem:[%s7260_s0 + $0xb8] sm:$0x1] }
 0x4ce   : >> { %v2591_v33 = vsel %vm2559_vm0, %v2589_v42, %v2590_v30  ;;  %v2578_v62 = vsel %vm8237_vm10, %v2576_v12, %v2577_v15  ;;  %v2454_v28 = vrot.slane %v4339_v22, 4  ;;  %v2444_v36 = vrot.slane %v4339_v22, 2 }
 0x4cf   : >> { %v2580_v0 = vsel %vm8237_vm10, %v2577_v15, %v2579_v50  ;;  %v5130_v24 = vpack.i.bf16 %v2591_v33, %v2589_v42  ;;  %v2618_v37 = vrot.slane %v4364_v41, 6  ;;  %v2605_v30 = vrot.slane %v4359_v51, 2 }
 0x4d0   : >> { %5076 = vrot.lane.b32.xlu0 %v5075_v61, %s5519_s30  ;;  %v4341_v61 = vld [vmem:[%s7260_s0 + $0x58] sm:$0x1]  ;;  %v5120_v29 = vpack.i.bf16 %v2580_v0, %v2578_v62  ;;  %v2608_v12 = vrot.slane %v4361_v40, 2  ;;  %v5140_v15 = vpack.i.bf16 %v4360_v32, %v4359_v51  ;;  %v4344_v0 = vld [vmem:[%s7260_s0 + $0x60] sm:$0xff] }
 0x4d1   : >> { %v2457_v6 = vrot.slane %v4341_v61, 4 }
 0x4d2   : >> { %5096 = vrot.lane.b32.xlu2 %v5095_v14, %s5516_s26  ;;  %s5528_s26 = smov 104  }
 0x4d4   : >> { %5101 = vrot.lane.b32.xlu1 %v5100_v10, %s5519_s30  ;;  %v4340_v10 = vld [vmem:[%s7260_s0 + $0x50] sm:$0xff] }
 0x4d5   : >> { %v2455_v20 = vrot.slane %v4340_v10, 4  ;;  %v2445_v39 = vrot.slane %v4340_v10, 2  ;;  %v5125_v25 = vpack.i.bf16 %v4340_v10, %v4339_v22  ;;  %v2483_v22 = vrot.slane %v4344_v0, 4 }
 0x4d7   : >> { %v2456_v14 = vsel %vm2218_vm1, %v2454_v28, %v2455_v20  ;;  %v2458_v38 = vsel %vm2218_vm1, %v2455_v20, %v2457_v6  ;;  %v2446_v19 = vsel %vm8237_vm10, %v2444_v36, %v2445_v39 }
 0x4d8   : >> { %5081 = vrot.lane.b32.xlu0 %v5080_v21, %s5520_s12  ;;  %v4365_v21 = vld [vmem:[%s7260_s0 + $0xc8] sm:$0xff]  ;;  %v5145_v35 = vpack.i.bf16 %v2458_v38, %v2456_v14  ;;  %v5135_v42 = vpack.i.bf16 %v2445_v39, %v2446_v19  ;;  %v2634_v19 = vrot.slane %v4364_v41, 2 }
 0x4d9   : >> { %v2635_v40 = vrot.slane %v4365_v21, 2 }
 0x4da   : >> { %5106 = vrot.lane.b32.xlu2 %v5105_v13, %s5522_s27  ;;  %v2606_v13 = vrot.slane %v4360_v32, 2  ;;  %v2473_v32 = vrot.slane %v4344_v0, 2 }
 0x4dc   : >> { %5116 = vrot.lane.b32.xlu1 %v5115_v23, %s5521_s13  ;;  %v2619_v23 = vrot.slane %v4365_v21, 6  ;;  %v2607_v33 = vsel %vm8237_vm10, %v2605_v30, %v2606_v13  ;;  %v2609_v61 = vsel %vm8237_vm10, %v2606_v13, %v2608_v12  ;;  %v5185_v13 = vpack.i.bf16 %v7290_v34, %v7286_v17 }
 0x4dd   : >> { %v5150_v51 = vpack.i.bf16 %v2609_v61, %v2607_v33  ;;  %v4398_v33 = vor.u32 %v7192_v9, %v7187_v8  ;;  %v2730_v61 = vunpack.c.l.b16 %v7247_v59 }
 0x4de   : >> { %v2620_v50 = vsel %vm2559_vm0, %v2618_v37, %v2619_v23  ;;  %v2636_v23 = vsel %vm8237_vm10, %v2634_v19, %v2635_v40  ;;  %v4378_v19 = vor.u32 %v7142_v44, %v7137_v43  ;;  %vm8274_vm0 = vmmov %vm8273_vm8 }
 0x4df   : >> { %v5160_v62 = vpack.i.bf16 %v2620_v50, %v2618_v37  ;;  %v5170_v37 = vpack.i.bf16 %v4365_v21, %v4364_v41  ;;  %2764 = vmatpush.bf16.msra.mxu0 %v4398_v33 }
 0x4e0   : >> { %5111 = vrot.lane.b32.xlu0 %v5110_v16, %s5515_s3  ;;  %v4346_v16 = vld [vmem:[%s7260_s0 + $0x70] sm:$0x1]  ;;  %s5527_s3 = smov 112  }
 0x4e1   : >> { %v2486_v28 = vrot.slane %v4346_v16, 4 }
 0x4e2   : >> { %5121 = vrot.lane.b32.xlu2 %v5120_v29, %s5517_s23  ;;  %s4420_s23 = sshll.u32 %s5437_s25, 4 }
 0x4e3   : >> { %s2799_s30 = scalar_lea.vmem %s5699_s24, %s4420_s23 }
 0x4e4   : >> { %5131 = vrot.lane.b32.xlu1 %v5130_v24, %s5518_s20  ;;  %v4345_v24 = vld [vmem:[%s7260_s0 + $0x68] sm:$0xff]  ;;  %s3976_s20 = smul.u32 24, %s5437_s25  ;;  %s2298_s25 = sadd.s32 1, %s5437_s25  }
 0x4e5   : >> { %v2484_v10 = vrot.slane %v4345_v24, 4  ;;  %v2474_v20 = vrot.slane %v4345_v24, 2  ;;  %v5155_v6 = vpack.i.bf16 %v4345_v24, %v4344_v0  ;;  %v2744_v0 = vpack.c.b16 %v2730_v61, %v2730_v61  ;;  %p2295_p6 = scmp.ge.s32.totalorder %s2298_s25, 9  }
 0x4e6   : >> { %v4394_v24 = vor.u32 %v7182_v7, %v7177_v5  ;;  %v4370_v61 = vor.u32 %v7122_v26, %v7117_v27  ;;  %v7541_v27 = vld [vmem:[%s8192_s5 + $0x10] sm:$0xf] (%p2295_p6)  ;;  %v7546_v26 = vld [vmem:[%s8192_s5 + $0x10] sm:$0xf0] (%p2295_p6)  ;;  %v7561_v43 = vld [vmem:[%s8192_s5 + $0x20] sm:$0xf] (%p2295_p6) }
 0x4e7   : >> { %v2485_v29 = vsel %vm2218_vm1, %v2483_v22, %v2484_v10  ;;  %v2487_v36 = vsel %vm2218_vm1, %v2484_v10, %v2486_v28  ;;  %v2475_v39 = vsel %vm8237_vm10, %v2473_v32, %v2474_v20  ;;  %v2762_v22 = vsel %vm2218_vm1, %v2744_v0, 0  ;;  %v7566_v44 = vld [vmem:[%s8192_s5 + $0x20] sm:$0xf0] (%p2295_p6)  ;;  %v7601_v5 = vld [vmem:[%s8192_s5 + $0x40] sm:$0xf] (%p2295_p6)  ;;  %s7658_s23 = smov (%p2295_p6), 0  }
 0x4e8   : >> { %5126 = vrot.lane.b32.xlu0 %v5125_v25, %s5523_s7  ;;  %v4366_v25 = vld [vmem:[%s7260_s0 + $0xd0] sm:$0x1]  ;;  %v5175_v14 = vpack.i.bf16 %v2487_v36, %v2485_v29  ;;  %v5165_v38 = vpack.i.bf16 %v2474_v20, %v2475_v39  ;;  %s5529_s0 = smov 120   ;;  %2765 = vmatpush.bf16.msra.mxu0 %v4394_v24  ;;  %v4418_v32 = vor.u32 %v7242_v58, %v7237_v57  ;;  %v7606_v7 = vld [vmem:[%s8192_s5 + $0x40] sm:$0xf0] (%p2295_p6) }
 0x4e9   : >> { %2780 = vmatpush.bf16.msra.mxu1 %v2762_v22  ;;  %v4414_v29 = vor.u32 %v7232_v56, %v7227_v55  ;;  %v4382_v39 = vor.u32 %v7152_v46, %v7147_v45  ;;  %v7571_v45 = vld [vmem:[%s8192_s5 + $0x28] sm:$0xf] (%p2295_p6)  ;;  %v7576_v46 = vld [vmem:[%s8192_s5 + $0x28] sm:$0xf0] (%p2295_p6)  ;;  %v7656_v56 = vld [vmem:[%s8198_s11] sm:$0x1] (%p2295_p6) }
 0x4ea   : >> { %5136 = vrot.lane.b32.xlu2 %v5135_v42, %s5525_s22  ;;  %v7611_v8 = vld [vmem:[%s8192_s5 + $0x48] sm:$0xf] (%p2295_p6)  ;;  %v7616_v9 = vld [vmem:[%s8192_s5 + $0x48] sm:$0xf0] (%p2295_p6) }
 0x4eb   : > { %v7651_v55 = vld [vmem:[%s8192_s5 + $0x68] sm:$0xf] (%p2295_p6) }
 0x4ec   : >> { %5146 = vrot.lane.b32.xlu1 %v5145_v35, %s5524_s1  ;;  %v2637_v35 = vrot.slane %v4366_v25, 2  ;;  %v4410_v25 = vor.u32 %v7222_v54, %v7217_v53  ;;  %v7641_v53 = vld [vmem:[%s8192_s5 + $0x60] sm:$0xf] (%p2295_p6)  ;;  %v7646_v54 = vld [vmem:[%s8192_s5 + $0x60] sm:$0xf0] (%p2295_p6) }
 0x4ed   : >> { %2781 = vmatpush.bf16.msra.mxu1 %v4418_v32 }
 0x4ee   : >> { %v2638_v42 = vsel %vm8237_vm10, %v2635_v40, %v2637_v35  ;;  %v4406_v40 = vor.u32 %v7212_v52, %v7207_v49  ;;  %v7631_v49 = vld [vmem:[%s8192_s5 + $0x58] sm:$0xf] (%p2295_p6)  ;;  %v7636_v52 = vld [vmem:[%s8192_s5 + $0x58] sm:$0xf0] (%p2295_p6) }
 0x4ef   : >> { %v5180_v30 = vpack.i.bf16 %v2638_v42, %v2636_v23  ;;  %v4402_v23 = vor.u32 %v7202_v48, %v7197_v47  ;;  %v7621_v47 = vld [vmem:[%s8192_s5 + $0x50] sm:$0xf] (%p2295_p6)  ;;  %v7626_v48 = vld [vmem:[%s8192_s5 + $0x50] sm:$0xf0] (%p2295_p6) }
 0x4f0   : >> { %5141 = vrot.lane.b32.xlu0 %v5140_v15, %s5520_s12  ;;  %s3977_s12 = scalar_lea.vmem [#allocation5], %s3976_s20 }
 0x4f1   : >> { %2782 = vmatpush.bf16.msra.mxu1 %v4414_v29 }
 0x4f2   : >> { %5151 = vrot.lane.b32.xlu2 %v5150_v51, %s5522_s27  ;;  %v4390_v51 = vor.u32 %v7172_v4, %v7167_v3  ;;  %v7591_v3 = vld [vmem:[%s8192_s5 + $0x38] sm:$0xf] (%p2295_p6)  ;;  %v7596_v4 = vld [vmem:[%s8192_s5 + $0x38] sm:$0xf0] (%p2295_p6) }
 0x4f4   : >> { %5161 = vrot.lane.b32.xlu1 %v5160_v62, %s5521_s13  ;;  %2766 = vmatpush.bf16.msra.mxu0 %v4390_v51 }
 0x4f5   : >> { %2783 = vmatpush.bf16.msra.mxu1 %v4410_v25 }
 0x4f8   : >> { %5156 = vrot.lane.b32.xlu0 %v5155_v6, %s5526_s29  ;;  %v4386_v6 = vor.u32 %v7162_v2, %v7157_v1  ;;  %v7581_v1 = vld [vmem:[%s8192_s5 + $0x30] sm:$0xf] (%p2295_p6)  ;;  %v7586_v2 = vld [vmem:[%s8192_s5 + $0x30] sm:$0xf0] (%p2295_p6) }
 0x4f9   : >> { %2784 = vmatpush.bf16.msra.mxu1 %v4406_v40  ;;  %8284 = vst [vmem:[#allocation10_spill] sm:$0xff] (%p2295_p6), %v7581_v1 }
 0x4fa   : >> { %5166 = vrot.lane.b32.xlu2 %v5165_v38, %s5528_s26  ;;  %2767 = vmatpush.bf16.msra.mxu0 %v4386_v6  ;;  %8285 = vst [vmem:[#allocation11_spill] sm:$0xff] (%p2295_p6), %v7586_v2 }
 0x4fc   : >> { %5176 = vrot.lane.b32.xlu1 %v5175_v14, %s5527_s3 }
 0x4fd   : >> { %2785 = vmatpush.bf16.msra.mxu1 %v4402_v23 }
 0x4fe   : >> { %2768 = vmatpush.bf16.msra.mxu0 %v4382_v39 }
 0x500   : >> { %5171 = vrot.lane.b32.xlu0 %v5170_v37, %s5523_s7  ;;  %v4374_v37 = vor.u32 %v7132_v11, %v7127_v18  ;;  %v7551_v18 = vld [vmem:[%s8192_s5 + $0x18] sm:$0xf] (%p2295_p6)  ;;  %v7556_v11 = vld [vmem:[%s8192_s5 + $0x18] sm:$0xf0] (%p2295_p6) }
 0x502   : >> { %5181 = vrot.lane.b32.xlu2 %v5180_v30, %s5525_s22  ;;  %2769 = vmatpush.bf16.msra.mxu0 %v4378_v19 }
 0x506   : >> { %2770 = vmatpush.bf16.msra.mxu0 %v4374_v37 }
 0x508   : >> { %5186 = vrot.lane.b32.xlu0 %v5185_v13, %s5529_s0 }
 0x50a   : >> { %2771 = vmatpush.bf16.msra.mxu0 %v4370_v61 }
 0x524   : >> { %v7359_v12 = vpop.permute.xlu2 %5091 }
 0x52c   : >> { %v7361_v15 = vpop.permute.xlu2 %5096 }
 0x52d   : >> { %v5099_v39 = vunpack.i.h.bf16 %v7361_v15  ;;  %v5098_v25 = vunpack.i.l.bf16 %v7361_v15 }
 0x52f   : >> { %v2646_v23 = vsel %vm751_vm3, %v7290_v34, %v5099_v39  ;;  %v5093_v34 = vunpack.i.l.bf16 %v7359_v12 }
 0x534   : >> { %v7365_v50 = vpop.permute.xlu2 %5106 }
 0x536   : >> { %v7363_v41 = vpop.permute.xlu1 %5066 }
 0x537   : >> { %v5069_v6 = vunpack.i.h.bf16 %v7363_v41  ;;  %v5068_v29 = vunpack.i.l.bf16 %v7363_v41  ;;  %v2645_v41 = vsel %vm751_vm3, %v7286_v17, %v5098_v25 }
 0x53a   : >> { %v5072_v21 = vpop.permute.xlu0 %5071 }
 0x53b   : >> { %v5074_v30 = vunpack.i.h.bf16 %v5072_v21  ;;  %v5073_v13 = vunpack.i.l.bf16 %v5072_v21 }
 0x53c   : >> { %v7377_v28 = vpop.permute.xlu2 %5121 }
 0x53d   : >> { %v2503_v22 = vsel %vm751_vm3, %v7268_v31, %v5074_v30  ;;  %v2502_v51 = vsel %vm751_vm3, %v7265_v63, %v5073_v13 }
 0x53e   : >> { %v7367_v16 = vpop.permute.xlu1 %5086 }
 0x53f   : >> { %v5089_v31 = vunpack.i.h.bf16 %v7367_v16  ;;  %v5088_v19 = vunpack.i.l.bf16 %v7367_v16 }
 0x542   : >> { %v5077_v62 = vpop.permute.xlu0 %5076 }
 0x543   : >> { %v5079_v0 = vunpack.i.h.bf16 %v5077_v62  ;;  %v5078_v24 = vunpack.i.l.bf16 %v5077_v62 }
 0x544   : >> { %v7395_v14 = vpop.permute.xlu2 %5136 }
 0x545   : >> { %v2505_v32 = vsel %vm8271_vm2, %v2502_v51, %v5078_v24  ;;  %v2506_v21 = vsel %vm8271_vm2, %v2503_v22, %v5079_v0  ;;  %v5094_v22 = vunpack.i.h.bf16 %v7359_v12 }
 0x546   : >> { %v7375_v10 = vpop.permute.xlu1 %5101  ;;  %v2508_v40 = vsel %vm8272_vm12, %v2505_v32, %v5068_v29  ;;  %v2509_v37 = vsel %vm8272_vm12, %v2506_v21, %v5069_v6  ;;  %v5108_v32 = vunpack.i.l.bf16 %v7365_v50  ;;  %v5124_v21 = vunpack.i.h.bf16 %v7377_v28 }
 0x547   : >> { %v5104_v30 = vunpack.i.h.bf16 %v7375_v10  ;;  %v5103_v15 = vunpack.i.l.bf16 %v7375_v10  ;;  %v2511_v0 = vsel %vm8273_vm8, %v2508_v40, %v5088_v19  ;;  %v2512_v24 = vsel %vm8274_vm0, %v2509_v37, %v5089_v31  ;;  %vm8275_vm8 = vmmov %vm8274_vm0 }
 0x548   : >> { %v5109_v10 = vunpack.i.h.bf16 %v7365_v50  ;;  %v2514_v39 = vsel %vm1982_vm13, %v2511_v0, %v5093_v34  ;;  %v2515_v12 = vsel %vm1982_vm13, %v2512_v24, %v5094_v22 }
 0x549   : >> { %v2648_v6 = vsel %vm8271_vm2, %v2646_v23, %v5104_v30  ;;  %v2647_v29 = vsel %vm8271_vm2, %v2645_v41, %v5103_v15 }
 0x54a   : >> { %v7383_v20 = vpop.permute.xlu0 %5081 }
 0x54b   : >> { %v5084_v61 = vunpack.i.h.bf16 %v7383_v20  ;;  %v5083_v16 = vunpack.i.l.bf16 %v7383_v20  ;;  %v5123_v20 = vunpack.i.l.bf16 %v7377_v28 }
 0x54c   : >> { %v7411_v33 = vpop.permute.xlu2 %5151 }
 0x54d   : >> { %v2517_v25 = vsel %vm1985_vm14, %v2514_v39, %v5083_v16  ;;  %v5154_v34 = vunpack.i.h.bf16 %v7411_v33 }
 0x54e   : >> { %v7389_v36 = vpop.permute.xlu1 %5116  ;;  %v2520_v16 = vsel %vm1988_vm15, %v2517_v25, %v5108_v32 }
 0x54f   : >> { %v5119_v31 = vunpack.i.h.bf16 %v7389_v36  ;;  %v5118_v50 = vunpack.i.l.bf16 %v7389_v36 }
 0x552   : >> { %v7397_v38 = vpop.permute.xlu0 %5111 }
 0x553   : >> { %v5114_v17 = vunpack.i.h.bf16 %v7397_v38  ;;  %v5113_v51 = vunpack.i.l.bf16 %v7397_v38  ;;  %v2518_v38 = vsel %vm1985_vm14, %v2515_v12, %v5084_v61  ;;  %v5138_v12 = vunpack.i.l.bf16 %v7395_v14 }
 0x554   : >> { %v7437_v13 = vpop.permute.xlu2 %5166  ;;  %v2521_v61 = vsel %vm1988_vm15, %v2518_v38, %v5109_v10 }
 0x555   : >> { %v2650_v40 = vsel %vm8272_vm12, %v2648_v6, %v5114_v17  ;;  %v2649_v28 = vsel %vm8272_vm12, %v2647_v29, %v5113_v51  ;;  %v5153_v17 = vunpack.i.l.bf16 %v7411_v33  ;;  %vm8276_vm12 = vcmask 523264  }
 0x556   : >> { %v7403_v35 = vpop.permute.xlu1 %5131  ;;  %v2651_v24 = vsel %vm8275_vm8, %v2649_v28, %v5123_v20  ;;  %v2652_v22 = vsel %vm8274_vm0, %v2650_v40, %v5124_v21  ;;  %vm8277_vm2 = vmmov %vm8276_vm12  ;;  %vm8278_vm8 = vcmask 588800   ;;  %v5139_v33 = vunpack.i.h.bf16 %v7395_v14 }
 0x557   : >> { %v5134_v37 = vunpack.i.h.bf16 %v7403_v35  ;;  %v5133_v23 = vunpack.i.l.bf16 %v7403_v35  ;;  %v2522_v35 = vsel %vm8276_vm12, %v2520_v16, %v5118_v50  ;;  %vm8279_vm0 = vmmov %vm8278_vm8  ;;  %v5169_v14 = vunpack.i.h.bf16 %v7437_v13 }
 0x558   : >> { %vm8280_vm12 = vmmov %vm8277_vm2 }
 0x559   : >> { %v2653_v51 = vsel %vm1982_vm13, %v2651_v24, %v5133_v23  ;;  %v2654_v10 = vsel %vm1982_vm13, %v2652_v22, %v5134_v37 }
 0x55a   : >> { %v7409_v42 = vpop.permute.xlu0 %5126 }
 0x55b   : >> { %v5129_v0 = vunpack.i.h.bf16 %v7409_v42  ;;  %v5128_v36 = vunpack.i.l.bf16 %v7409_v42 }
 0x55c   : >> { %v5182_v32 = vpop.permute.xlu2 %5181 }
 0x55d   : >> { %v2525_v21 = vsel %vm8278_vm8, %v2522_v35, %v5128_v36  ;;  %v5184_v50 = vunpack.i.h.bf16 %v5182_v32  ;;  %v5183_v40 = vunpack.i.l.bf16 %v5182_v32  ;;  %vm8281_vm8 = vmmov %vm8279_vm0 }
 0x55e   : >> { %v7425_v62 = vpop.permute.xlu1 %5146  ;;  %v2528_v22 = vsel %vm1996_vm7, %v2525_v21, %v5138_v12 }
 0x55f   : >> { %v5149_v25 = vunpack.i.h.bf16 %v7425_v62  ;;  %v5148_v38 = vunpack.i.l.bf16 %v7425_v62 }
 0x562   : >> { %v5142_v63 = vpop.permute.xlu0 %5141 }
 0x563   : >> { %v5144_v30 = vunpack.i.h.bf16 %v5142_v63  ;;  %v5143_v15 = vunpack.i.l.bf16 %v5142_v63  ;;  %v2523_v63 = vsel %vm8277_vm2, %v2521_v61, %v5119_v31 }
 0x564   : >> { %v2526_v39 = vsel %vm8279_vm0, %v2523_v63, %v5129_v0  ;;  %v5168_v0 = vunpack.i.l.bf16 %v7437_v13  ;;  %v2531_v63 = vsel %vm1999_vm11, %v2528_v22, %v5148_v38 }
 0x565   : >> { %v2655_v6 = vsel %vm1985_vm14, %v2653_v51, %v5143_v15  ;;  %v2656_v42 = vsel %vm1985_vm14, %v2654_v10, %v5144_v30 }
 0x566   : >> { %v5162_v41 = vpop.permute.xlu1 %5161  ;;  %v2657_v28 = vsel %vm1988_vm15, %v2655_v6, %v5153_v17  ;;  %v2658_v37 = vsel %vm1988_vm15, %v2656_v42, %v5154_v34  ;;  %v2529_v34 = vsel %vm1996_vm7, %v2526_v39, %v5139_v33 }
 0x567   : >> { %v5164_v20 = vunpack.i.h.bf16 %v5162_v41  ;;  %v5163_v29 = vunpack.i.l.bf16 %v5162_v41 }
 0x569   : >> { %v2659_v30 = vsel %vm8277_vm2, %v2657_v28, %v5163_v29  ;;  %v2660_v15 = vsel %vm8280_vm12, %v2658_v37, %v5164_v20  ;;  %vm8282_vm2 = vcmask 982016   ;;  %v2675_v37 = vperm.slane %v7252_v60, 0 }
 0x56a   : >> { %v5157_v19 = vpop.permute.xlu0 %5156  ;;  %vm8283_vm12 = vmmov %vm8282_vm2 }
 0x56b   : >> { %v5159_v16 = vunpack.i.h.bf16 %v5157_v19  ;;  %v5158_v61 = vunpack.i.l.bf16 %v5157_v19  ;;  %v2532_v19 = vsel %vm1999_vm11, %v2529_v34, %v5149_v25  ;;  %v7521_v34 = vld [vmem:[%s8192_s5] sm:$0xf] (%p2295_p6) }
 0x56d   : >> { %v2534_v13 = vsel %vm2002_vm9, %v2531_v63, %v5158_v61  ;;  %v2535_v32 = vsel %vm2002_vm9, %v2532_v19, %v5159_v16  ;;  %v7536_v63 = vld [vmem:[%s8192_s5 + $0x8] sm:$0xf0] (%p2295_p6) }
 0x56e   : >> { %v5177_v62 = vpop.permute.xlu1 %5176  ;;  %v2537_v39 = vsel %vm2005_vm4, %v2534_v13, %v5168_v0  ;;  %v2538_v33 = vsel %vm2005_vm4, %v2535_v32, %v5169_v14 }
 0x56f   : >> { %v5179_v6 = vunpack.i.h.bf16 %v5177_v62  ;;  %v5178_v42 = vunpack.i.l.bf16 %v5177_v62 }
 0x571   : >> { %v2540_v38 = vsel %vm2008_vm5, %v2537_v39, %v5178_v42 }
 0x572   : >> { %v5172_v31 = vpop.permute.xlu0 %5171 }
 0x573   : >> { %v5174_v23 = vunpack.i.h.bf16 %v5172_v31  ;;  %v5173_v41 = vunpack.i.l.bf16 %v5172_v31  ;;  %v2541_v31 = vsel %vm2008_vm5, %v2538_v33, %v5179_v6 }
 0x575   : >> { %v2661_v36 = vsel %vm8281_vm8, %v2659_v30, %v5173_v41  ;;  %v2662_v24 = vsel %vm8279_vm0, %v2660_v15, %v5174_v23 }
 0x576   : >> { %v2663_v17 = vsel %vm1996_vm7, %v2661_v36, %v5183_v40  ;;  %v2664_v35 = vsel %vm1996_vm7, %v2662_v24, %v5184_v50 }
 0x577   : >> { %v2667_v51 = vrot.slane %v2663_v17, 2  ;;  %v2668_v10 = vrot.slane %v2664_v35, 2  ;;  %v7526_v17 = vld [vmem:[%s8192_s5] sm:$0xf0] (%p2295_p6)  ;;  %v7531_v35 = vld [vmem:[%s8192_s5 + $0x8] sm:$0xf] (%p2295_p6) }
 0x579   : >> { %v2669_v20 = vsel %vm8237_vm10, %v2667_v51, %v2668_v10 }
 0x57a   : >> { %v5187_v29 = vpop.permute.xlu0 %5186  ;;  %v2673_v21 = vpack.c.bf16 %v2668_v10, %v2669_v20 }
 0x57b   : >> { %v5189_v12 = vunpack.i.h.bf16 %v5187_v29  ;;  %v5188_v25 = vunpack.i.l.bf16 %v5187_v29 }
 0x57c   : >> { %4419 = vmatmul.msk.bf16.vlgmr.msra.gmra.mxu1 %vm1999_vm11, %v2673_v21 }
 0x57d   : >> { %v2543_v50 = vsel %vm8282_vm2, %v2540_v38, %v5188_v25  ;;  %v2544_v40 = vsel %vm8283_vm12, %v2541_v31, %v5189_v12 }
 0x57e   : >> { %v2672_v28 = vpack.c.bf16 %v2544_v40, %v2543_v50 }
 0x580   : >> { %2772 = vmatmul.bf16.vlgmr.msra.gmra.mxu0 %v2672_v28 }
 0x5f9   : >> { %v2787_v23 = vpop.f32.mrf.mxu1 }
 0x5fd   : >> { %v2773_v41 = vpop.f32.mrf.mxu0 }
 0x5fe   : >> { %v2774_v30 = vadd.f32 %v2773_v41, %v2675_v37 }
 0x600   : >> { %v2788_v15 = vadd.f32 %v2787_v23, %v2774_v30 }
 0x601   : >> { %v2789_v62 = vpop.f32.mrf.mxu1 }
 0x602   : >> { %vm2792_vm8 = vcmp.ge.f32.partialorder %v2788_v15, 0.0  ;;  %v2794_v16 = vmul.f32 0.2, %v2788_v15 }
 0x604   : >> { %v2796_v61 = vsel %vm2792_vm8, %v2788_v15, %v2794_v16 }
 0x605   : >> { %2800 = vst.msk [vmem:[%s2799_s30] sm:$0xff] %vm751_vm3, %v2796_v61  ;;  %v2775_v14 = vpop.f32.mrf.mxu0 }
 0x606   : >> { %4421 = vst.msk [vmem:[%s3977_s12 + $0x64] sm:$0xff] %vm751_vm3, %v2796_v61  ;;  %v2776_v0 = vadd.f32 %v2775_v14, %v2675_v37 }
 0x608   : >> { %v2790_v36 = vadd.f32 %v2789_v62, %v2776_v0 }
 0x60a   : >> { %vm2793_vm0 = vcmp.ge.f32.partialorder %v2790_v36, 0.0  ;;  %v2795_v24 = vmul.f32 0.2, %v2790_v36  ;;  %2297 = sbr.rel (!%p2295_p6) target bundleno = 1211 (0x4bb), region = 316 }
 0x60c   : >> { %v2797_v22 = vsel %vm2793_vm0, %v2790_v36, %v2795_v24 }
 0x60d   : >> { %2801 = vst.msk [vmem:[%s2799_s30 + $0x8] sm:$0x1f] %vm8238_vm6, %v2797_v22 }
 0x60e   : >> { %4422 = vst.msk [vmem:[%s3977_s12 + $0x6c] sm:$0x1f] %vm8238_vm6, %v2797_v22 }
 0x60f LB: >> { %s4424_s20 = smul.u32 48, %s5441_s23  ;;  %s5530_s12 = smov 40   ;;  %vm8286_vm2 = vcmask 130048   ;;  %vm8288_vm8 = vcmask 195584   ;;  %vm8290_vm10 = vcmask 261120   ;;  %v8292_v1 = vld [vmem:[#allocation10_spill] sm:$0xff]  ;;  %s5441_s23 = sphi %s7658_s23, %s2840_s23  }
 0x610   : >> { %s5531_s13 = smov 24   ;;  %s5532_s27 = smov 16   ;;  %vm8287_vm12 = vmmov %vm8286_vm2  ;;  %v8293_v2 = vld [vmem:[#allocation11_spill] sm:$0xff] }
 0x611   : >> { %s7664_s30 = scalar_lea.vmem [#allocation5], %s4424_s20  ;;  %s5533_s7 = smov 8   ;;  %vm8289_vm0 = vmmov %vm8288_vm8 }
 0x612   : >> { %s5534_s1 = smov 32   ;;  %s5535_s22 = smov 48   ;;  %vm8291_vm6 = vmmov %vm8290_vm10 }
 0x613   : >> { %s5536_s29 = smov 56   ;;  %s5537_s3 = smov 64  }
 0x614   : >> { %s5538_s26 = smov 72   ;;  %s5539_s24 = smov 80  }
 0x615   : >> { %v4428_v57 = vld [vmem:[%s7664_s30 + $0x20] sm:$0xff]  ;;  %v4429_v58 = vld [vmem:[%s7664_s30 + $0x28] sm:$0x1f]  ;;  %v4427_v59 = vld [vmem:[%s7664_s30 + $0x18] sm:$0xff]  ;;  %s5540_s25 = smov 88   ;;  %s5541_s0 = smov 96  }
 0x616   : >> { %v2928_v60 = vrot.slane %v4429_v58, 4  ;;  %v5200_v19 = vpack.i.bf16 %v4429_v58, %v4428_v57  ;;  %v2926_v51 = vrot.slane %v4428_v57, 4  ;;  %v5195_v10 = vpack.i.bf16 %v4428_v57, %v4427_v59  ;;  %v7670_v13 = vld [vmem:[%s7664_s30 + $0x8] sm:$0xff]  ;;  %v2846_v32 = vld [vmem:[%s7664_s30 + $0x10] sm:$0x1f]  ;;  %v7674_v6 = vld [vmem:[%s7664_s30 + $0x80] sm:$0xff] }
 0x617   : >> { %v2925_v42 = vrot.slane %v4427_v59, 4  ;;  %v2902_v20 = vrot.slane %v2846_v32, 4  ;;  %v5190_v29 = vpack.i.bf16 %v2846_v32, %v7670_v13  ;;  %v2900_v21 = vrot.slane %v7670_v13, 4  ;;  %v7679_v39 = vld [vmem:[%s7664_s30 + $0x88] sm:$0x1f]  ;;  %v7682_v33 = vld [vmem:[%s7664_s30] sm:$0xff] }
 0x618   : >> { %5201 = vrot.lane.b32.xlu2 %v5200_v19, %s5530_s12  ;;  %5196 = vrot.lane.b32.xlu1 %v5195_v10, %s5531_s13  ;;  %v3072_v12 = vrot.slane %v7674_v6, 4  ;;  %v3073_v25 = vrot.slane %v7679_v39, 4  ;;  %v2899_v38 = vrot.slane %v7682_v33, 4  ;;  %v2929_v50 = vsel %vm2218_vm1, %v2926_v51, %v2928_v60  ;;  %v4452_v23 = vld [vmem:[%s7664_s30 + $0x90] sm:$0xff]  ;;  %v4453_v41 = vld [vmem:[%s7664_s30 + $0x98] sm:$0xff]  ;;  %s5542_s20 = smov 104  }
 0x619   : >> { %5191 = vrot.lane.b32.xlu0 %v5190_v29, %s5532_s27  ;;  %v2927_v31 = vsel %vm2218_vm1, %v2925_v42, %v2926_v51  ;;  %v2903_v37 = vsel %vm2218_vm1, %v2900_v21, %v2902_v20  ;;  %v3086_v61 = vrot.slane %v4452_v23, 4  ;;  %v3087_v14 = vrot.slane %v4453_v41, 4  ;;  %v4432_v62 = vld [vmem:[%s7664_s30 + $0x30] sm:$0xff]  ;;  %v4433_v36 = vld [vmem:[%s7664_s30 + $0x38] sm:$0xff]  ;;  %v4434_v24 = vld [vmem:[%s7664_s30 + $0x40] sm:$0x1f] }
 0x61a   : >> { %v3074_v40 = vsel %vm2218_vm1, %v3072_v12, %v3073_v25  ;;  %v2901_v28 = vsel %vm2218_vm1, %v2899_v38, %v2900_v21  ;;  %v5210_v15 = vpack.i.bf16 %v2929_v50, %v2927_v31  ;;  %v5215_v57 = vpack.i.bf16 %v4433_v36, %v4432_v62  ;;  %v4454_v10 = vld [vmem:[%s7664_s30 + $0xa0] sm:$0x1f]  ;;  %v4457_v21 = vld [vmem:[%s7664_s30 + $0xa8] sm:$0xff] }
 0x61b   : >> { %v5220_v30 = vpack.i.bf16 %v3074_v40, %v3072_v12  ;;  %v5205_v16 = vpack.i.bf16 %v2903_v37, %v2901_v28  ;;  %v3088_v0 = vsel %vm2218_vm1, %v3086_v61, %v3087_v14  ;;  %v2951_v58 = vrot.slane %v4432_v62, 4  ;;  %v4458_v12 = vld [vmem:[%s7664_s30 + $0xb0] sm:$0xff]  ;;  %v4437_v28 = vld [vmem:[%s7664_s30 + $0x48] sm:$0xff]  ;;  %v4459_v62 = vld [vmem:[%s7664_s30 + $0xb8] sm:$0x1f] }
 0x61c   : >> { %v5225_v22 = vpack.i.bf16 %v3088_v0, %v3086_v61  ;;  %v2952_v59 = vrot.slane %v4433_v36, 4  ;;  %v2954_v60 = vrot.slane %v4434_v24, 4  ;;  %v5235_v32 = vpack.i.bf16 %v4453_v41, %v4452_v23  ;;  %v4438_v37 = vld [vmem:[%s7664_s30 + $0x50] sm:$0xff]  ;;  %v4439_v23 = vld [vmem:[%s7664_s30 + $0x58] sm:$0x1f] }
 0x61d   : >> { %v3108_v20 = vrot.slane %v4454_v10, 4  ;;  %v5240_v38 = vpack.i.bf16 %v4434_v24, %v4433_v36  ;;  %v3121_v31 = vrot.slane %v4457_v21, 4  ;;  %v3122_v50 = vrot.slane %v4458_v12, 4 }
 0x61e   : >> { %v2953_v19 = vsel %vm2218_vm1, %v2951_v58, %v2952_v59  ;;  %v2955_v51 = vsel %vm2218_vm1, %v2952_v59, %v2954_v60  ;;  %v2980_v61 = vrot.slane %v4439_v23, 4  ;;  %v5265_v36 = vpack.i.bf16 %v4458_v12, %v4457_v21  ;;  %v4462_v58 = vld [vmem:[%s7664_s30 + $0xc0] sm:$0xff]  ;;  %v4463_v59 = vld [vmem:[%s7664_s30 + $0xc8] sm:$0xff] }
 0x61f   : >> { %v5230_v42 = vpack.i.bf16 %v2955_v51, %v2953_v19  ;;  %v3109_v29 = vsel %vm2218_vm1, %v3087_v14, %v3108_v20  ;;  %v3123_v40 = vsel %vm2218_vm1, %v3121_v31, %v3122_v50  ;;  %v5270_v19 = vpack.i.bf16 %v4439_v23, %v4438_v37 }
 0x620   : >> { %5221 = vrot.lane.b32.xlu2 %v5220_v30, %s5533_s7  ;;  %5211 = vrot.lane.b32.xlu1 %v5210_v15, %s5534_s1  ;;  %v5255_v41 = vpack.i.bf16 %v3123_v40, %v3121_v31  ;;  %v5250_v30 = vpack.i.bf16 %v4438_v37, %v4437_v28  ;;  %v2977_v15 = vrot.slane %v4437_v28, 4  ;;  %v3156_v51 = vrot.slane %v4462_v58, 4  ;;  %v4464_v28 = vld [vmem:[%s7664_s30 + $0xd0] sm:$0x1f] }
 0x621   : >> { %5206 = vrot.lane.b32.xlu0 %v5205_v16, %s5533_s7  ;;  %v2978_v16 = vrot.slane %v4438_v37, 4  ;;  %v5295_v37 = vpack.i.bf16 %v4463_v59, %v4462_v58 }
 0x623   : >> { %v2981_v0 = vsel %vm2218_vm1, %v2978_v16, %v2980_v61  ;;  %v7749_v61 = vld [vmem:[%s7664_s30 + $0x78] sm:$0xff] }
 0x628   : >> { %5226 = vrot.lane.b32.xlu2 %v5225_v22, %s5532_s27  ;;  %5216 = vrot.lane.b32.xlu1 %v5215_v57, %s5535_s22  ;;  %v3143_v22 = vrot.slane %v4459_v62, 4 }
 0x629   : >> { %3079 = vrot.lane.b32.xlu0 %v3073_v25, %s5533_s7  ;;  %v5245_v25 = vpack.i.bf16 %v3109_v29, %v3087_v14  ;;  %v4444_v29 = vld [vmem:[%s7664_s30 + $0x70] sm:$0x1f] }
 0x62a   : >> { %v3144_v57 = vsel %vm2218_vm1, %v3122_v50, %v3143_v22  ;;  %v3006_v31 = vrot.slane %v4444_v29, 4 }
 0x62b   : >> { %v5275_v60 = vpack.i.bf16 %v3144_v57, %v3122_v50 }
 0x630   : >> { %5236 = vrot.lane.b32.xlu2 %v5235_v32, %s5531_s13  ;;  %5231 = vrot.lane.b32.xlu1 %v5230_v42, %s5536_s29  ;;  %v4442_v42 = vld [vmem:[%s7664_s30 + $0x60] sm:$0xff] }
 0x631   : >> { %3093 = vrot.lane.b32.xlu0 %v3087_v14, %s5532_s27  ;;  %v2979_v14 = vsel %vm2218_vm1, %v2977_v15, %v2978_v16 }
 0x632   : >> { %v5260_v24 = vpack.i.bf16 %v2981_v0, %v2979_v14  ;;  %v5310_v14 = vpack.i.bf16 %v7674_v6, %v7749_v61 }
 0x638   : >> { %5246 = vrot.lane.b32.xlu2 %v5245_v25, %s5534_s1  ;;  %5241 = vrot.lane.b32.xlu1 %v5240_v38, %s5537_s3  ;;  %v3003_v25 = vrot.slane %v4442_v42, 4 }
 0x639   : >> { %3103 = vrot.lane.b32.xlu0 %v4454_v10, %s5531_s13  ;;  %v3157_v10 = vrot.slane %v4463_v59, 4  ;;  %s5544_s13 = smov 120  }
 0x63b   : >> { %v3158_v32 = vsel %vm2218_vm1, %v3156_v51, %v3157_v10 }
 0x63c   : >> { %v5285_v21 = vpack.i.bf16 %v3158_v32, %v3156_v51 }
 0x640   : >> { %5256 = vrot.lane.b32.xlu2 %v5255_v41, %s5530_s12  ;;  %5251 = vrot.lane.b32.xlu1 %v5250_v30, %s5538_s26  ;;  %v3178_v41 = vrot.slane %v4464_v28, 4 }
 0x641   : >> { %3114 = vrot.lane.b32.xlu0 %v3108_v20, %s5534_s1  ;;  %v4443_v20 = vld [vmem:[%s7664_s30 + $0x68] sm:$0xff]  ;;  %s4518_s30 = sshll.u32 %s5441_s23, 4  ;;  %s8313_s1 = scalar_lea.vmem %s8204_s17, %s5694_s6 }
 0x642   : >> { %v5280_v12 = vpack.i.bf16 %v4443_v20, %v4442_v42  ;;  %v3004_v38 = vrot.slane %v4443_v20, 4  ;;  %v3179_v30 = vsel %vm2218_vm1, %v3157_v10, %v3178_v41  ;;  %v5300_v16 = vpack.i.bf16 %v4444_v29, %v4443_v20  ;;  %s2840_s23 = sadd.s32 1, %s5441_s23  }
 0x643   : >> { %v5305_v15 = vpack.i.bf16 %v3179_v30, %v3157_v10  ;;  %p2837_p7 = scmp.ge.s32.totalorder %s2840_s23, 5  }
 0x644   : >> { %v3007_v40 = vsel %vm2218_vm1, %v3004_v38, %v3006_v31 }
 0x648   : >> { %5266 = vrot.lane.b32.xlu2 %v5265_v36, %s5535_s22  ;;  %5261 = vrot.lane.b32.xlu1 %v5260_v24, %s5539_s24 }
 0x649   : >> { %3128 = vrot.lane.b32.xlu0 %v3122_v50, %s5530_s12  ;;  %v3005_v50 = vsel %vm2218_vm1, %v3003_v25, %v3004_v38  ;;  %s5543_s12 = smov 112  }
 0x64a   : >> { %v5290_v23 = vpack.i.bf16 %v3007_v40, %v3005_v50 }
 0x650   : >> { %5276 = vrot.lane.b32.xlu2 %v5275_v60, %s5536_s29  ;;  %5271 = vrot.lane.b32.xlu1 %v5270_v19, %s5540_s25 }
 0x651   : >> { %3138 = vrot.lane.b32.xlu0 %v4459_v62, %s5535_s22  ;;  %s3356_s22 = scalar_lea.vmem %s8313_s1, %s4518_s30 }
 0x658   : >> { %5286 = vrot.lane.b32.xlu2 %v5285_v21, %s5537_s3  ;;  %5281 = vrot.lane.b32.xlu1 %v5280_v12, %s5541_s0 }
 0x659   : >> { %3149 = vrot.lane.b32.xlu0 %v3143_v22, %s5536_s29  ;;  %s4016_s29 = scalar_lea.vmem [#allocation6], %s4518_s30  ;;  %s8008_s30 = smov (%p2837_p7), 0  }
 0x660   : >> { %5296 = vrot.lane.b32.xlu2 %v5295_v37, %s5538_s26  ;;  %5291 = vrot.lane.b32.xlu1 %v5290_v23, %s5542_s20 }
 0x661   : >> { %3163 = vrot.lane.b32.xlu0 %v3157_v10, %s5537_s3 }
 0x668   : >> { %5306 = vrot.lane.b32.xlu2 %v5305_v15, %s5539_s24  ;;  %5301 = vrot.lane.b32.xlu1 %v5300_v16, %s5543_s12 }
 0x669   : >> { %3173 = vrot.lane.b32.xlu0 %v4464_v28, %s5538_s26 }
 0x670   : >> { %5311 = vrot.lane.b32.xlu1 %v5310_v14, %s5544_s13  ;;  %s8317_s13 = sld [smem:[#allocation18_spill]] (%p2837_p7) }
 0x671   : >> { %3184 = vrot.lane.b32.xlu0 %v3178_v41, %s5539_s24  ;;  %s8316_s24 = sld [smem:[#allocation16_spill]] (%p2837_p7) }
 0x672   : >> { %v5202_v0 = vpop.permute.xlu2 %5201 }
 0x673   : >> { %v5204_v31 = vunpack.i.h.bf16 %v5202_v0  ;;  %v5203_v50 = vunpack.i.l.bf16 %v5202_v0 }
 0x67a   : >> { %v7754_v62 = vpop.permute.xlu2 %5221 }
 0x682   : >> { %v7756_v36 = vpop.permute.xlu2 %5226 }
 0x68a   : >> { %v5197_v24 = vpop.permute.xlu1 %5196  ;;  %v7758_v57 = vpop.permute.xlu2 %5236 }
 0x68b   : >> { %v5192_v22 = vpop.permute.xlu0 %5191  ;;  %v5199_v32 = vunpack.i.h.bf16 %v5197_v24  ;;  %v5198_v42 = vunpack.i.l.bf16 %v5197_v24  ;;  %v4496_v24 = vor.u32 %v7596_v4, %v7591_v3 }
 0x68c   : >> { %v5194_v51 = vunpack.i.h.bf16 %v5192_v22  ;;  %v5193_v10 = vunpack.i.l.bf16 %v5192_v22 }
 0x68d   : >> { %3321 = vmatpush.bf16.msra.mxu0 %v4496_v24 }
 0x692   : >> { %v5212_v58 = vpop.permute.xlu1 %5211  ;;  %v7778_v30 = vpop.permute.xlu2 %5246 }
 0x693   : >> { %v5207_v59 = vpop.permute.xlu0 %5206  ;;  %v5214_v21 = vunpack.i.h.bf16 %v5212_v58  ;;  %v5213_v12 = vunpack.i.l.bf16 %v5212_v58 }
 0x694   : >> { %v5209_v60 = vunpack.i.h.bf16 %v5207_v59  ;;  %v5208_v19 = vunpack.i.l.bf16 %v5207_v59  ;;  %v4492_v59 = vor.u32 %v8293_v2, %v8292_v1 }
 0x696   : >> { %v3029_v20 = vsel %vm751_vm3, %v7670_v13, %v5209_v60  ;;  %v3028_v29 = vsel %vm751_vm3, %v7682_v33, %v5208_v19  ;;  %3322 = vmatpush.bf16.msra.mxu0 %v4492_v59  ;;  %v4488_v60 = vor.u32 %v7576_v46, %v7571_v45  ;;  %v3287_v19 = vunpack.c.l.b16 %v7651_v55 }
 0x697   : >> { %v3032_v25 = vsel %vm8286_vm2, %v3029_v20, %v5194_v51  ;;  %v3031_v38 = vsel %vm8287_vm12, %v3028_v29, %v5193_v10  ;;  %v4484_v29 = vor.u32 %v7566_v44, %v7561_v43  ;;  %vm8297_vm12 = vmmov %vm8289_vm0 }
 0x698   : >> { %v3035_v40 = vsel %vm8288_vm8, %v3032_v25, %v5199_v32  ;;  %v3034_v28 = vsel %vm8289_vm0, %v3031_v38, %v5198_v42  ;;  %v3301_v10 = vpack.c.b16 %v3287_v19, %v3287_v19  ;;  %v4512_v25 = vor.u32 %v7636_v52, %v7631_v49 }
 0x699   : >> { %v3037_v37 = vsel %vm8290_vm10, %v3034_v28, %v5213_v12  ;;  %v3038_v23 = vsel %vm8291_vm6, %v3035_v40, %v5214_v21  ;;  %v4516_v21 = vor.u32 %v7646_v54, %v7641_v53  ;;  %v4480_v12 = vor.u32 %v7556_v11, %v7551_v18  ;;  %vm8294_vm6 = vmmov %vm8286_vm2 }
 0x69a   : >> { %v7770_v13 = vpop.permute.xlu1 %5216  ;;  %v7773_v33 = vsel %vm1982_vm13, %v3037_v37, %v5203_v50  ;;  %v7776_v41 = vsel %vm1982_vm13, %v3038_v23, %v5204_v31  ;;  %v7786_v0 = vpop.permute.xlu2 %5256  ;;  %3323 = vmatpush.bf16.msra.mxu0 %v4488_v60  ;;  %v3319_v42 = vsel %vm2218_vm1, %v3301_v10, 0  ;;  %v4476_v40 = vor.u32 %v7546_v26, %v7541_v27  ;;  %vm8295_vm10 = vmmov %vm8286_vm2  ;;  %v8001_v27 = vld [vmem:[%s8316_s24 + $0x20] sm:$0xf] (%p2837_p7) }
 0x69b   : >> { %v7780_v15 = vpop.permute.xlu0 %3079  ;;  %3337 = vmatpush.bf16.msra.mxu1 %v3319_v42  ;;  %v4508_v28 = vor.u32 %v7626_v48, %v7621_v47  ;;  %v4472_v37 = vor.u32 %v7536_v63, %v7531_v35  ;;  %v4504_v23 = vor.u32 %v7616_v9, %v7611_v8  ;;  %v5224_v19 = vunpack.i.h.bf16 %v7754_v62  ;;  %vm8296_vm2 = vmmov %vm8289_vm0  ;;  %v7991_v35 = vld [vmem:[%s8316_s24 + $0x18] sm:$0xf] (%p2837_p7)  ;;  %v7996_v63 = vld [vmem:[%s8316_s24 + $0x18] sm:$0xf0] (%p2837_p7) }
 0x69c   : >> { %v5223_v10 = vunpack.i.l.bf16 %v7754_v62  ;;  %v4468_v42 = vor.u32 %v7526_v17, %v7521_v34  ;;  %v5239_v62 = vunpack.i.h.bf16 %v7758_v57  ;;  %vm8298_vm8 = vcmask 261120   ;;  %v7981_v34 = vld [vmem:[%s8316_s24 + $0x10] sm:$0xf] (%p2837_p7)  ;;  %v7986_v17 = vld [vmem:[%s8316_s24 + $0x10] sm:$0xf0] (%p2837_p7) }
 0x69d   : >> { %vm8299_vm0 = vmmov %vm8298_vm8  ;;  %v8006_v26 = vld [vmem:[%s8317_s13] sm:$0x1] (%p2837_p7) }
 0x69e   : >> { %3324 = vmatpush.bf16.msra.mxu0 %v4484_v29  ;;  %v4500_v29 = vor.u32 %v7606_v7, %v7601_v5 }
 0x69f   : >> { %3338 = vmatpush.bf16.msra.mxu1 %v4516_v21  ;;  %v5229_v21 = vunpack.i.h.bf16 %v7756_v36 }
 0x6a2   : >> { %v7782_v16 = vpop.permute.xlu1 %5231  ;;  %v7799_v51 = vpop.permute.xlu2 %5266  ;;  %3325 = vmatpush.bf16.msra.mxu0 %v4480_v12  ;;  %v5228_v12 = vunpack.i.l.bf16 %v7756_v36  ;;  %v5249_v36 = vunpack.i.h.bf16 %v7778_v30 }
 0x6a3   : >> { %v7784_v14 = vpop.permute.xlu0 %3093  ;;  %3339 = vmatpush.bf16.msra.mxu1 %v4512_v25  ;;  %v3190_v25 = vsel %vm751_vm3, %v7674_v6, %v5224_v19  ;;  %v5248_v6 = vunpack.i.l.bf16 %v7778_v30 }
 0x6a6   : >> { %3326 = vmatpush.bf16.msra.mxu0 %v4476_v40  ;;  %v3189_v40 = vsel %vm751_vm3, %v7749_v61, %v5223_v10 }
 0x6a7   : >> { %3340 = vmatpush.bf16.msra.mxu1 %v4508_v28  ;;  %v5238_v28 = vunpack.i.l.bf16 %v7758_v57  ;;  %v5258_v57 = vunpack.i.l.bf16 %v7786_v0 }
 0x6aa   : >> { %v7790_v22 = vpop.permute.xlu1 %5241  ;;  %v7814_v38 = vpop.permute.xlu2 %5276  ;;  %3327 = vmatpush.bf16.msra.mxu0 %v4472_v37 }
 0x6ab   : >> { %v7792_v58 = vpop.permute.xlu0 %3103  ;;  %3341 = vmatpush.bf16.msra.mxu1 %v4504_v23  ;;  %v3192_v23 = vsel %vm8294_vm6, %v3189_v40, %v5228_v12  ;;  %v5268_v40 = vunpack.i.l.bf16 %v7799_v51 }
 0x6ac   : >> { %v3195_v61 = vsel %vm8296_vm2, %v3192_v23, %v5238_v28  ;;  %v5269_v28 = vunpack.i.h.bf16 %v7799_v51  ;;  %v5233_v23 = vunpack.i.l.bf16 %v7782_v16  ;;  %v5278_v51 = vunpack.i.l.bf16 %v7814_v38 }
 0x6ad   : >> { %v3198_v2 = vsel %vm8298_vm8, %v3195_v61, %v5248_v6  ;;  %v5279_v61 = vunpack.i.h.bf16 %v7814_v38  ;;  %vm8303_vm8 = vmmov %vm8299_vm0 }
 0x6ae   : >> { %3328 = vmatpush.bf16.msra.mxu0 %v4468_v42  ;;  %v3193_v42 = vsel %vm8295_vm10, %v3190_v25, %v5229_v21  ;;  %v5218_v21 = vunpack.i.l.bf16 %v7770_v13  ;;  %v5219_v25 = vunpack.i.h.bf16 %v7770_v13  ;;  %v3191_v13 = vsel %vm751_vm3, %v7679_v39, %v7780_v15  ;;  %vm8300_vm10 = vmmov %vm8296_vm2 }
 0x6af   : >> { %3342 = vmatpush.bf16.msra.mxu1 %v4500_v29  ;;  %v3196_v10 = vsel %vm8297_vm12, %v3193_v42, %v5239_v62  ;;  %v5259_v29 = vunpack.i.h.bf16 %v7786_v0  ;;  %v5234_v62 = vunpack.i.h.bf16 %v7782_v16  ;;  %v3201_v0 = vsel %vm1982_vm13, %v3198_v2, %v5258_v57 }
 0x6b0   : >> { %v3199_v12 = vsel %vm8299_vm0, %v3196_v10, %v5249_v36  ;;  %v3043_v6 = vsel %vm1985_vm14, %v7773_v33, %v5218_v21  ;;  %v5243_v10 = vunpack.i.l.bf16 %v7790_v22  ;;  %v3044_v16 = vsel %vm1985_vm14, %v7776_v41, %v5219_v25 }
 0x6b1   : >> { %v3202_v36 = vsel %vm1982_vm13, %v3199_v12, %v5259_v29  ;;  %v3204_v2 = vsel %vm1985_vm14, %v3201_v0, %v5268_v40  ;;  %v3194_v29 = vsel %vm8294_vm6, %v3191_v13, %v7784_v14  ;;  %v5244_v57 = vunpack.i.h.bf16 %v7790_v22 }
 0x6b2   : >> { %v7801_v32 = vpop.permute.xlu1 %5251  ;;  %v7830_v59 = vpop.permute.xlu2 %5286  ;;  %v3205_v39 = vsel %vm1985_vm14, %v3202_v36, %v5269_v28  ;;  %v3046_v33 = vsel %vm1988_vm15, %v3043_v6, %v5233_v23  ;;  %v3047_v15 = vsel %vm1988_vm15, %v3044_v16, %v5234_v62  ;;  %v3197_v21 = vsel %vm8300_vm10, %v3194_v29, %v7792_v58 }
 0x6b3   : >> { %v7804_v20 = vpop.permute.xlu0 %3114  ;;  %v5288_v38 = vunpack.i.l.bf16 %v7830_v59  ;;  %v5289_v41 = vunpack.i.h.bf16 %v7830_v59  ;;  %v5254_v25 = vunpack.i.h.bf16 %v7801_v32  ;;  %v5253_v14 = vunpack.i.l.bf16 %v7801_v32 }
 0x6b4   : >> { %v3207_v22 = vsel %vm1988_vm15, %v3204_v2, %v5278_v51  ;;  %v3208_v40 = vsel %vm1988_vm15, %v3205_v39, %v5279_v61  ;;  %vm8301_vm2 = vcmask 523264   ;;  %v3200_v0 = vsel %vm8303_vm8, %v3197_v21, %v7804_v20 }
 0x6b5   : >> { %v3048_v28 = vsel %vm8301_vm2, %v3046_v33, %v5243_v10  ;;  %vm8302_vm12 = vmmov %vm8301_vm2  ;;  %vm8306_vm10 = vcmask 588800  }
 0x6b6   : >> { %v3049_v62 = vsel %vm8302_vm12, %v3047_v15, %v5244_v57  ;;  %vm8304_vm0 = vmmov %vm8301_vm2  ;;  %v3051_v10 = vsel %vm8306_vm10, %v3048_v28, %v5253_v14 }
 0x6b7   : >> { %v3210_v59 = vsel %vm8304_vm0, %v3207_v22, %v5288_v38  ;;  %vm8305_vm6 = vmmov %vm8304_vm0 }
 0x6b8   : >> { %v3211_v61 = vsel %vm8305_vm6, %v3208_v40, %v5289_v41  ;;  %vm8307_vm2 = vmmov %vm8306_vm10  ;;  %vm8311_vm10 = vcmask 982016  }
 0x6b9   : >> { %v3052_v2 = vsel %vm8307_vm2, %v3049_v62, %v5254_v25  ;;  %vm8308_vm12 = vmmov %vm8307_vm2 }
 0x6ba   : >> { %v7816_v31 = vpop.permute.xlu1 %5261  ;;  %v5297_v19 = vpop.permute.xlu2 %5296  ;;  %vm8309_vm8 = vmmov %vm8307_vm2 }
 0x6bb   : >> { %v7818_v50 = vpop.permute.xlu0 %3128  ;;  %v5298_v23 = vunpack.i.l.bf16 %v5297_v19  ;;  %v5299_v36 = vunpack.i.h.bf16 %v5297_v19  ;;  %v5264_v6 = vunpack.i.h.bf16 %v7816_v31  ;;  %v5263_v32 = vunpack.i.l.bf16 %v7816_v31  ;;  %vm8310_vm6 = vmmov %vm8307_vm2 }
 0x6bc   : >> { %v3203_v20 = vsel %vm1982_vm13, %v3200_v0, %v7818_v50  ;;  %vm8312_vm2 = vmmov %vm8311_vm10 }
 0x6bd   : >> { %v3213_v19 = vsel %vm8308_vm12, %v3210_v59, %v5298_v23  ;;  %v3214_v31 = vsel %vm8309_vm8, %v3211_v61, %v5299_v36  ;;  %v3055_v21 = vsel %vm1996_vm7, %v3052_v2, %v5264_v6 }
 0x6c2   : >> { %v7828_v24 = vpop.permute.xlu1 %5271  ;;  %v5307_v12 = vpop.permute.xlu2 %5306 }
 0x6c3   : >> { %v7832_v60 = vpop.permute.xlu0 %3138  ;;  %v5308_v58 = vunpack.i.l.bf16 %v5307_v12  ;;  %v5309_v51 = vunpack.i.h.bf16 %v5307_v12  ;;  %v5273_v29 = vunpack.i.l.bf16 %v7828_v24  ;;  %v5274_v57 = vunpack.i.h.bf16 %v7828_v24 }
 0x6c4   : >> { %v3054_v12 = vsel %vm1996_vm7, %v3051_v10, %v5263_v32  ;;  %v3206_v25 = vsel %vm1985_vm14, %v3203_v20, %v7832_v60 }
 0x6c5   : >> { %v3216_v33 = vsel %vm1996_vm7, %v3213_v19, %v5308_v58  ;;  %v3217_v50 = vsel %vm1996_vm7, %v3214_v31, %v5309_v51  ;;  %v3057_v24 = vsel %vm1999_vm11, %v3054_v12, %v5273_v29 }
 0x6c6   : >> { %v3222_v40 = vrot.slane %v3216_v33, 4  ;;  %v3223_v62 = vrot.slane %v3217_v50, 4 }
 0x6c8   : >> { %v3224_v20 = vsel %vm2218_vm1, %v3222_v40, %v3223_v62  ;;  %v7966_v40 = vld [vmem:[%s8316_s24] sm:$0xf0] (%p2837_p7) }
 0x6ca   : >> { %v7848_v37 = vpop.permute.xlu1 %5281 }
 0x6cb   : >> { %v7852_v1 = vpop.permute.xlu0 %3149  ;;  %v5283_v39 = vunpack.i.l.bf16 %v7848_v37  ;;  %v5284_v15 = vunpack.i.h.bf16 %v7848_v37  ;;  %v3058_v37 = vsel %vm1999_vm11, %v3055_v21, %v5274_v57  ;;  %v3232_v57 = vperm.slane %v7656_v56, 0 }
 0x6cc   : >> { %v3209_v23 = vsel %vm1988_vm15, %v3206_v25, %v7852_v1 }
 0x6cd   : >> { %v3060_v28 = vsel %vm2002_vm9, %v3057_v24, %v5283_v39  ;;  %v3061_v0 = vsel %vm2002_vm9, %v3058_v37, %v5284_v15  ;;  %v7971_v37 = vld [vmem:[%s8316_s24 + $0x8] sm:$0xf] (%p2837_p7) }
 0x6d2   : >> { %v7865_v30 = vpop.permute.xlu1 %5291 }
 0x6d3   : >> { %v7870_v42 = vpop.permute.xlu0 %3163  ;;  %v5293_v38 = vunpack.i.l.bf16 %v7865_v30  ;;  %v5294_v41 = vunpack.i.h.bf16 %v7865_v30 }
 0x6d4   : >> { %v3212_v36 = vsel %vm8304_vm0, %v3209_v23, %v7870_v42  ;;  %vm8314_vm0 = vcmask 61440  }
 0x6d5   : >> { %v3063_v30 = vsel %vm2005_vm4, %v3060_v28, %v5293_v38  ;;  %v3064_v60 = vsel %vm2005_vm4, %v3061_v0, %v5294_v41  ;;  %v7976_v28 = vld [vmem:[%s8316_s24 + $0x8] sm:$0xf0] (%p2837_p7) }
 0x6da   : >> { %v5302_v13 = vpop.permute.xlu1 %5301 }
 0x6db   : >> { %v3174_v16 = vpop.permute.xlu0 %3173  ;;  %v5304_v14 = vunpack.i.h.bf16 %v5302_v13  ;;  %v5303_v22 = vunpack.i.l.bf16 %v5302_v13 }
 0x6dc   : >> { %v3215_v13 = vsel %vm8310_vm6, %v3212_v36, %v3174_v16  ;;  %vm8315_vm6 = vmmov %vm8314_vm0 }
 0x6dd   : >> { %v3066_v1 = vsel %vm2008_vm5, %v3063_v30, %v5303_v22  ;;  %v3067_v61 = vsel %vm2008_vm5, %v3064_v60, %v5304_v14  ;;  %v7961_v22 = vld [vmem:[%s8316_s24] sm:$0xf] (%p2837_p7) }
 0x6e2   : >> { %v5312_v58 = vpop.permute.xlu1 %5311 }
 0x6e3   : >> { %v5314_v59 = vunpack.i.h.bf16 %v5312_v58  ;;  %v5313_v6 = vunpack.i.l.bf16 %v5312_v58  ;;  %v3185_v32 = vpop.permute.xlu0 %3184 }
 0x6e4   : >> { %v3218_v51 = vsel %vm1996_vm7, %v3215_v13, %v3185_v32 }
 0x6e5   : >> { %v3225_v10 = vrot.slane %v3218_v51, 4  ;;  %v3069_v2 = vsel %vm8311_vm10, %v3066_v1, %v5313_v6  ;;  %v3070_v42 = vsel %vm8312_vm2, %v3067_v61, %v5314_v59 }
 0x6e6   : >> { %v3229_v29 = vpack.c.bf16 %v3070_v42, %v3069_v2 }
 0x6e7   : >> { %v3226_v16 = vsel %vm2218_vm1, %v3223_v62, %v3225_v10 }
 0x6e8   : >> { %3329 = vmatmul.bf16.vlgmr.msra.gmra.mxu0 %v3229_v29  ;;  %v3230_v19 = vpack.c.bf16 %v3226_v16, %v3224_v20 }
 0x6ea   : >> { %4517 = vmatmul.msk.bf16.vlgmr.msra.gmra.mxu1 %vm1999_vm11, %v3230_v19 }
 0x765   : >> { %v3330_v39 = vpop.f32.mrf.mxu0 }
 0x766   : >> { %v3331_v31 = vadd.f32 %v3330_v39, %v3232_v57 }
 0x767   : >> { %v3344_v33 = vpop.f32.mrf.mxu1 }
 0x768   : >> { %v3345_v15 = vadd.f32 %v3344_v33, %v3331_v31 }
 0x76a   : >> { %vm3349_vm12 = vcmp.ge.f32.partialorder %v3345_v15, 0.0  ;;  %v3351_v38 = vmul.f32 0.2, %v3345_v15 }
 0x76c   : >> { %v3353_v12 = vsel %vm3349_vm12, %v3345_v15, %v3351_v38 }
 0x76d   : >> { %3357 = vst.msk [vmem:[%s3356_s22] sm:$0xff] %vm751_vm3, %v3353_v12  ;;  %v3332_v21 = vpop.f32.mrf.mxu0 }
 0x76e   : >> { %4520 = vst.msk [vmem:[%s4016_s29 + $0x11] sm:$0xff] %vm751_vm3, %v3353_v12  ;;  %v3333_v50 = vadd.f32 %v3332_v21, %v3232_v57 }
 0x76f   : >> { %v3346_v41 = vpop.f32.mrf.mxu1 }
 0x770   : >> { %v3347_v24 = vadd.f32 %v3346_v41, %v3333_v50 }
 0x772   : >> { %vm3350_vm8 = vcmp.ge.f32.partialorder %v3347_v24, 0.0  ;;  %v3352_v25 = vmul.f32 0.2, %v3347_v24  ;;  %2839 = sbr.rel (!%p2837_p7) target bundleno = 1551 (0x60f), region = 327 }
 0x774   : >> { %v3354_v14 = vsel %vm3350_vm8, %v3347_v24, %v3352_v25 }
 0x775   : >> { %3358 = vst.msk [vmem:[%s3356_s22 + $0x8] sm:$0x1f] %vm8314_vm0, %v3354_v14 }
 0x776   : >> { %4521 = vst.msk [vmem:[%s4016_s29 + $0x19] sm:$0x1f] %vm8315_vm6, %v3354_v14 }
 0x777 LB: >> { %s8014_s23 = sshll.u32 %s5445_s30, 4  ;;  %vm8318_vm9 = vcmask 1046528   ;;  %s5545_s7 = smov 24   ;;  %vm8320_vm5 = vcmask 1045504   ;;  %v3511_v1 = vunpack.c.l.b16 %v8001_v27  ;;  %v4544_v2 = vor.u32 %v7996_v63, %v7991_v35  ;;  %s5445_s30 = sphi %s8008_s30, %s3379_s30  }
 0x778   : >> { %s3381_s27 = scalar_lea.vmem [#allocation6], %s8014_s23  ;;  %vm8319_vm4 = vmmov %vm8318_vm9  ;;  %s5546_s1 = smov 8   ;;  %v4540_v42 = vor.u32 %v7986_v17, %v7981_v34  ;;  %v4536_v29 = vor.u32 %v7976_v28, %v7971_v37  ;;  %v4532_v20 = vor.u32 %v7966_v40, %v7961_v22  ;;  %vm8324_vm2 = vcmask 130048  }
 0x779   : >> { %vm8321_vm7 = vmmov %vm8320_vm5  ;;  %s5547_s22 = smov 40   ;;  %s5548_s29 = smov 32   ;;  %v3516_v61 = vpack.c.b16 %v3511_v1, %v3511_v1  ;;  %vm8326_vm8 = vcmask 195584   ;;  %vm8328_vm6 = vcmask 261120  }
 0x77a   : >> { %vm8322_vm11 = vmmov %vm8320_vm5  ;;  %s5549_s3 = smov 16   ;;  %s5550_s26 = smov 48  }
 0x77b   : >> { %vm8323_vm10 = vmmov %vm8319_vm4  ;;  %s5551_s25 = smov 64   ;;  %s5552_s0 = smov 56   ;;  %v3527_v10 = vsel %vm2218_vm1, %v3516_v61, 0 }
 0x77c   : >> { %3532 = vmatpush.bf16.msra.mxu0 %v3527_v10  ;;  %vm8325_vm12 = vmmov %vm8324_vm2  ;;  %s8333_s13 = scalar_lea.vmem %s8205_s18, %s5694_s6  ;;  %s3379_s30 = sadd.s32 1, %s5445_s30  }
 0x77d   : >> { %v8017_v18 = vld [vmem:[%s3381_s27] sm:$0xff]  ;;  %v8019_v11 = vld [vmem:[%s3381_s27 + $0x8] sm:$0x7f]  ;;  %v4524_v43 = vld [vmem:[%s3381_s27 + $0x10] sm:$0xff]  ;;  %p3376_p8 = scmp.ge.s32.totalorder %s3379_s30, 5  }
 0x77e   : >> { %v3397_v44 = vrot.slane %v8017_v18, 1  ;;  %v3398_v45 = vrot.slane %v8019_v11, 1  ;;  %v4525_v46 = vld [vmem:[%s3381_s27 + $0x18] sm:$0x7f]  ;;  %v3424_v3 = vrot.slane %v4524_v43, 1  ;;  %v3407_v8 = vrot.slane %v8017_v18, 2  ;;  %vm8327_vm0 = vmmov %vm8326_vm8 }
 0x77f   : >> { %v5315_v4 = vpack.i.bf16 %v4525_v46, %v4524_v43  ;;  %v3425_v5 = vrot.slane %v4525_v46, 1  ;;  %v3408_v9 = vrot.slane %v8019_v11, 2  ;;  %v3433_v47 = vrot.slane %v4524_v43, 2  ;;  %v4527_v53 = vld [vmem:[%s3381_s27 + $0x20] sm:$0xff]  ;;  %v4528_v54 = vld [vmem:[%s3381_s27 + $0x28] sm:$0x7f]  ;;  %s3549_s27 = scalar_lea.vmem %s8333_s13, %s8014_s23 }
 0x780   : >> { %v3399_v7 = vsel %vm8318_vm9, %v3397_v44, %v3398_v45  ;;  %v3434_v52 = vrot.slane %v4525_v46, 2  ;;  %v3459_v0 = vrot.slane %v4527_v53, 2  ;;  %v3460_v30 = vrot.slane %v4528_v54, 2  ;;  %3533 = vmatpush.bf16.msra.mxu0 %v4544_v2  ;;  %vm8329_vm9 = vmmov %vm8328_vm6  ;;  %v8120_v17 = vld [vmem:[#allocation8] sm:$0x1] (%p3376_p8) }
 0x781   : >> { %v5320_v48 = vpack.i.bf16 %v3398_v45, %v3399_v7  ;;  %5316 = vrot.lane.b32.xlu1 %v5315_v4, %s5545_s7  ;;  %v3426_v49 = vsel %vm8319_vm4, %v3424_v3, %v3425_v5  ;;  %v3409_v55 = vsel %vm8320_vm5, %v3407_v8, %v3408_v9  ;;  %v3450_v58 = vrot.slane %v4527_v53, 1  ;;  %s4029_s7 = scalar_lea.vmem [#allocation7], %s8014_s23  ;;  %s8336_s23 = sld [smem:[#allocation17_spill]] (%p3376_p8) }
 0x782   : >> { %v3435_v56 = vsel %vm8321_vm7, %v3433_v47, %v3434_v52  ;;  %v5330_v23 = vpack.i.bf16 %v3425_v5, %v3426_v49  ;;  %v5325_v36 = vpack.i.bf16 %v3408_v9, %v3409_v55  ;;  %v3451_v60 = vrot.slane %v4528_v54, 1 }
 0x783   : >> { %5321 = vrot.lane.b32.xlu0 %v5320_v48, %s5546_s1  ;;  %v5335_v62 = vpack.i.bf16 %v3434_v52, %v3435_v56  ;;  %v3461_v13 = vsel %vm8322_vm11, %v3459_v0, %v3460_v30  ;;  %v5340_v59 = vpack.i.bf16 %v4528_v54, %v4527_v53  ;;  %vm8330_vm4 = vcmask 523264  }
 0x784   : >> { %v3452_v6 = vsel %vm8323_vm10, %v3450_v58, %v3451_v60  ;;  %v5350_v32 = vpack.i.bf16 %v3460_v30, %v3461_v13  ;;  %3534 = vmatpush.bf16.msra.mxu0 %v4540_v42  ;;  %vm8331_vm5 = vmmov %vm8330_vm4  ;;  %vm8332_vm7 = vcmask 588800  }
 0x785   : >> { %5336 = vrot.lane.b32.xlu2 %v5335_v62, %s5547_s22  ;;  %v5345_v51 = vpack.i.bf16 %v3451_v60, %v3452_v6  ;;  %v3492_v60 = vperm.slane %v8006_v26, 0 }
 0x787   : > { %v8078_v2 = vld [vmem:[%s8336_s23] sm:$0xf] (%p3376_p8)  ;;  %v8083_v42 = vld [vmem:[%s8336_s23] sm:$0xf0] (%p3376_p8)  ;;  %v8098_v22 = vld [vmem:[%s8336_s23 + $0x10] sm:$0xf] (%p3376_p8) }
 0x788   : >> { %3535 = vmatpush.bf16.msra.mxu0 %v4536_v29  ;;  %v8088_v29 = vld [vmem:[%s8336_s23 + $0x8] sm:$0xf] (%p3376_p8)  ;;  %v8103_v40 = vld [vmem:[%s8336_s23 + $0x10] sm:$0xf0] (%p3376_p8)  ;;  %v8108_v37 = vld [vmem:[%s8336_s23 + $0x18] sm:$0xf] (%p3376_p8) }
 0x789   : >> { %5331 = vrot.lane.b32.xlu1 %v5330_v23, %s5548_s29  ;;  %v8113_v28 = vld [vmem:[%s8336_s23 + $0x18] sm:$0xf0] (%p3376_p8)  ;;  %v8118_v34 = vld [vmem:[%s8336_s23 + $0x20] sm:$0xf] (%p3376_p8) }
 0x78b   : >> { %5326 = vrot.lane.b32.xlu0 %v5325_v36, %s5549_s3 }
 0x78c   : >> { %3536 = vmatpush.bf16.msra.mxu0 %v4532_v20  ;;  %v8093_v20 = vld [vmem:[%s8336_s23 + $0x8] sm:$0xf0] (%p3376_p8) }
 0x78d   : >> { %5341 = vrot.lane.b32.xlu2 %v5340_v59, %s5550_s26 }
 0x791   : >> { %5351 = vrot.lane.b32.xlu1 %v5350_v32, %s5551_s25  ;;  %s8122_s25 = smov (%p3376_p8), 0  }
 0x793   : >> { %5346 = vrot.lane.b32.xlu0 %v5345_v51, %s5552_s0 }
 0x7df   : >> { %v5337_v57 = vpop.permute.xlu2 %5336 }
 0x7e0   : >> { %v5339_v4 = vunpack.i.h.bf16 %v5337_v57  ;;  %v5338_v5 = vunpack.i.l.bf16 %v5337_v57 }
 0x7e7   : >> { %v5342_v45 = vpop.permute.xlu2 %5341 }
 0x7e8   : >> { %v5344_v8 = vunpack.i.h.bf16 %v5342_v45  ;;  %v5343_v9 = vunpack.i.l.bf16 %v5342_v45 }
 0x7f3   : >> { %v5317_v16 = vpop.permute.xlu1 %5316 }
 0x7f4   : >> { %v5319_v25 = vunpack.i.h.bf16 %v5317_v16  ;;  %v5318_v14 = vunpack.i.l.bf16 %v5317_v16 }
 0x7f5   : >> { %v5322_v19 = vpop.permute.xlu0 %5321 }
 0x7f6   : >> { %v5324_v39 = vunpack.i.h.bf16 %v5322_v19  ;;  %v5323_v31 = vunpack.i.l.bf16 %v5322_v19 }
 0x7f8   : >> { %v3469_v41 = vsel %vm751_vm3, %v8019_v11, %v5324_v39  ;;  %v3468_v24 = vsel %vm751_vm3, %v8017_v18, %v5323_v31 }
 0x7fb   : >> { %v5332_v33 = vpop.permute.xlu1 %5331 }
 0x7fc   : >> { %v5334_v21 = vunpack.i.h.bf16 %v5332_v33  ;;  %v5333_v50 = vunpack.i.l.bf16 %v5332_v33 }
 0x7fd   : >> { %v5327_v15 = vpop.permute.xlu0 %5326 }
 0x7fe   : >> { %v5329_v38 = vunpack.i.h.bf16 %v5327_v15  ;;  %v5328_v12 = vunpack.i.l.bf16 %v5327_v15 }
 0x800   : >> { %v3471_v43 = vsel %vm8324_vm2, %v3468_v24, %v5328_v12  ;;  %v3472_v44 = vsel %vm8325_vm12, %v3469_v41, %v5329_v38  ;;  %vm8334_vm2 = vcmask 61440  }
 0x801   : >> { %v3474_v46 = vsel %vm8326_vm8, %v3471_v43, %v5318_v14  ;;  %v3475_v3 = vsel %vm8327_vm0, %v3472_v44, %v5319_v25  ;;  %vm8335_vm12 = vmmov %vm8334_vm2 }
 0x802   : >> { %v3477_v7 = vsel %vm8328_vm6, %v3474_v46, %v5333_v50  ;;  %v3478_v11 = vsel %vm8329_vm9, %v3475_v3, %v5334_v21 }
 0x803   : >> { %v5352_v18 = vpop.permute.xlu1 %5351  ;;  %v3480_v47 = vsel %vm1982_vm13, %v3477_v7, %v5338_v5  ;;  %v3481_v48 = vsel %vm1982_vm13, %v3478_v11, %v5339_v4 }
 0x804   : >> { %v5354_v52 = vunpack.i.h.bf16 %v5352_v18  ;;  %v5353_v53 = vunpack.i.l.bf16 %v5352_v18  ;;  %v3483_v56 = vsel %vm1985_vm14, %v3480_v47, %v5343_v9  ;;  %v3484_v23 = vsel %vm1985_vm14, %v3481_v48, %v5344_v8 }
 0x805   : >> { %v5347_v49 = vpop.permute.xlu0 %5346 }
 0x806   : >> { %v5349_v54 = vunpack.i.h.bf16 %v5347_v49  ;;  %v5348_v55 = vunpack.i.l.bf16 %v5347_v49 }
 0x808   : >> { %v3486_v62 = vsel %vm1988_vm15, %v3483_v56, %v5348_v55  ;;  %v3487_v0 = vsel %vm1988_vm15, %v3484_v23, %v5349_v54 }
 0x809   : >> { %v3488_v30 = vsel %vm8330_vm4, %v3486_v62, %v5353_v53  ;;  %v3489_v36 = vsel %vm8331_vm5, %v3487_v0, %v5354_v52 }
 0x80a   : >> { %v3490_v58 = vpack.c.bf16 %v3489_v36, %v3488_v30 }
 0x80c   : >> { %4545 = vmatmul.msk.bf16.vlgmr.msra.gmra.mxu0 %vm8332_vm7, %v3490_v58 }
 0x889   : >> { %v3538_v13 = vpop.f32.mrf.mxu0 }
 0x88a   : >> { %v3539_v59 = vadd.f32 %v3538_v13, %v3492_v60 }
 0x88c   : >> { %vm3543_vm11 = vcmp.ge.f32.partialorder %v3539_v59, 0.0  ;;  %v3545_v6 = vmul.f32 0.2, %v3539_v59 }
 0x88e   : >> { %v3547_v32 = vsel %vm3543_vm11, %v3539_v59, %v3545_v6 }
 0x88f   : >> { %3550 = vst.msk [vmem:[%s3549_s27] sm:$0xff] %vm751_vm3, %v3547_v32 }
 0x890   : >> { %4547 = vst.msk [vmem:[%s4029_s7 + $0x11] sm:$0xff] %vm751_vm3, %v3547_v32 }
 0x891   : >> { %v3540_v51 = vpop.f32.mrf.mxu0 }
 0x892   : >> { %v3541_v1 = vadd.f32 %v3540_v51, %v3492_v60 }
 0x894   : >> { %vm3544_vm10 = vcmp.ge.f32.partialorder %v3541_v1, 0.0  ;;  %v3546_v61 = vmul.f32 0.2, %v3541_v1  ;;  %3378 = sbr.rel (!%p3376_p8) target bundleno = 1911 (0x777), region = 338 }
 0x896   : >> { %v3548_v10 = vsel %vm3544_vm10, %v3541_v1, %v3546_v61 }
 0x897   : >> { %3551 = vst.msk [vmem:[%s3549_s27 + $0x8] sm:$0x1f] %vm8334_vm2, %v3548_v10 }
 0x898   : >> { %4548 = vst.msk [vmem:[%s4029_s7 + $0x19] sm:$0x1f] %vm8335_vm12, %v3548_v10 }
 0x899 LB: >> { %s4549_s0 = sshll.u32 %s5449_s25, 4  ;;  %vm8337_vm8 = vcmask 1046528   ;;  %s5553_s30 = smov 24   ;;  %vm8339_vm6 = vcmask 1045504   ;;  %v3702_v48 = vunpack.c.l.b16 %v8118_v34  ;;  %v4571_v53 = vor.u32 %v8113_v28, %v8108_v37  ;;  %s5449_s25 = sphi %s8122_s25, %s3570_s25  }
 0x89a   : >> { %s3572_s20 = scalar_lea.vmem [#allocation7], %s4549_s0  ;;  %vm8338_vm0 = vmmov %vm8337_vm8  ;;  %s5554_s12 = smov 8   ;;  %v4567_v54 = vor.u32 %v8103_v40, %v8098_v22  ;;  %v4563_v55 = vor.u32 %v8093_v20, %v8088_v29  ;;  %v4559_v56 = vor.u32 %v8083_v42, %v8078_v2  ;;  %vm8343_vm7 = vcmask 130048  }
 0x89b   : >> { %vm8340_vm9 = vmmov %vm8339_vm6  ;;  %s5555_s13 = smov 40   ;;  %s5556_s27 = smov 32   ;;  %v3707_v49 = vpack.c.b16 %v3702_v48, %v3702_v48  ;;  %vm8345_vm10 = vcmask 195584   ;;  %vm8347_vm12 = vcmask 261120  }
 0x89c   : >> { %vm8341_vm4 = vmmov %vm8339_vm6  ;;  %s5557_s7 = smov 16   ;;  %s5558_s1 = smov 48  }
 0x89d   : >> { %vm8342_vm5 = vmmov %vm8338_vm0  ;;  %s5559_s22 = smov 64   ;;  %s5560_s29 = smov 56   ;;  %v3718_v52 = vsel %vm2218_vm1, %v3707_v49, 0 }
 0x89e   : >> { %3723 = vmatpush.bf16.msra.mxu0 %v3718_v52  ;;  %vm8344_vm11 = vmmov %vm8343_vm7  ;;  %s3570_s25 = sadd.s32 1, %s5449_s25  }
 0x89f   : >> { %v8130_v35 = vld [vmem:[%s3572_s20] sm:$0xff]  ;;  %v8132_v63 = vld [vmem:[%s3572_s20 + $0x8] sm:$0x7f]  ;;  %v4551_v27 = vld [vmem:[%s3572_s20 + $0x10] sm:$0xff]  ;;  %p3567_p9 = scmp.ge.s32.totalorder %s3570_s25, 5  }
 0x8a0   : >> { %v3588_v26 = vrot.slane %v8130_v35, 1  ;;  %v3589_v16 = vrot.slane %v8132_v63, 1  ;;  %v4552_v19 = vld [vmem:[%s3572_s20 + $0x18] sm:$0x7f]  ;;  %v3615_v57 = vrot.slane %v4551_v27, 1  ;;  %v3598_v15 = vrot.slane %v8130_v35, 2  ;;  %vm8346_vm2 = vmmov %vm8345_vm10 }
 0x8a1   : >> { %v5355_v39 = vpack.i.bf16 %v4552_v19, %v4551_v27  ;;  %v3616_v31 = vrot.slane %v4552_v19, 1  ;;  %v3599_v38 = vrot.slane %v8132_v63, 2  ;;  %v3624_v12 = vrot.slane %v4551_v27, 2  ;;  %v4554_v24 = vld [vmem:[%s3572_s20 + $0x20] sm:$0xff]  ;;  %v4555_v25 = vld [vmem:[%s3572_s20 + $0x28] sm:$0x7f]  ;;  %s8352_s20 = scalar_lea.vmem %s8206_s19, %s5694_s6 }
 0x8a2   : >> { %v3590_v33 = vsel %vm8337_vm8, %v3588_v26, %v3589_v16  ;;  %v3625_v41 = vrot.slane %v4552_v19, 2  ;;  %v3650_v46 = vrot.slane %v4554_v24, 2  ;;  %v3651_v3 = vrot.slane %v4555_v25, 2  ;;  %3724 = vmatpush.bf16.msra.mxu0 %v4571_v53  ;;  %vm8348_vm8 = vmmov %vm8347_vm12 }
 0x8a3   : >> { %v5360_v21 = vpack.i.bf16 %v3589_v16, %v3590_v33  ;;  %5356 = vrot.lane.b32.xlu1 %v5355_v39, %s5553_s30  ;;  %v3617_v50 = vsel %vm8338_vm0, %v3615_v57, %v3616_v31  ;;  %v3600_v14 = vsel %vm8339_vm6, %v3598_v15, %v3599_v38  ;;  %v3641_v5 = vrot.slane %v4554_v24, 1  ;;  %s3734_s30 = scalar_lea.vmem %s8352_s20, %s4549_s0 }
 0x8a4   : >> { %v3626_v43 = vsel %vm8340_vm9, %v3624_v12, %v3625_v41  ;;  %v5370_v44 = vpack.i.bf16 %v3616_v31, %v3617_v50  ;;  %v5365_v4 = vpack.i.bf16 %v3599_v38, %v3600_v14  ;;  %v3642_v7 = vrot.slane %v4555_v25, 1 }
 0x8a5   : >> { %5361 = vrot.lane.b32.xlu0 %v5360_v21, %s5554_s12  ;;  %v5375_v45 = vpack.i.bf16 %v3625_v41, %v3626_v43  ;;  %v3652_v11 = vsel %vm8341_vm4, %v3650_v46, %v3651_v3  ;;  %v5380_v8 = vpack.i.bf16 %v4555_v25, %v4554_v24  ;;  %vm8349_vm0 = vcmask 523264  }
 0x8a6   : >> { %v3643_v9 = vsel %vm8342_vm5, %v3641_v5, %v3642_v7  ;;  %v5390_v18 = vpack.i.bf16 %v3651_v3, %v3652_v11  ;;  %3725 = vmatpush.bf16.msra.mxu0 %v4567_v54  ;;  %vm8350_vm6 = vmmov %vm8349_vm0  ;;  %vm8351_vm9 = vcmask 588800   ;;  %vm3735_vm4 = vcmask 7168  }
 0x8a7   : >> { %5376 = vrot.lane.b32.xlu2 %v5375_v45, %s5555_s13  ;;  %v5385_v47 = vpack.i.bf16 %v3642_v7, %v3643_v9  ;;  %v3683_v7 = vperm.slane %v8120_v17, 0  ;;  %vm3737_vm5 = vcmask 4096  }
 0x8aa   : >> { %3726 = vmatpush.bf16.msra.mxu0 %v4563_v55 }
 0x8ab   : >> { %5371 = vrot.lane.b32.xlu1 %v5370_v44, %s5556_s27 }
 0x8ad   : >> { %5366 = vrot.lane.b32.xlu0 %v5365_v4, %s5557_s7 }
 0x8ae   : >> { %3727 = vmatpush.bf16.msra.mxu0 %v4559_v56 }
 0x8af   : >> { %5381 = vrot.lane.b32.xlu2 %v5380_v8, %s5558_s1 }
 0x8b3   : >> { %5391 = vrot.lane.b32.xlu1 %v5390_v18, %s5559_s22 }
 0x8b5   : >> { %5386 = vrot.lane.b32.xlu0 %v5385_v47, %s5560_s29 }
 0x901   : >> { %v5377_v0 = vpop.permute.xlu2 %5376 }
 0x902   : >> { %v5379_v39 = vunpack.i.h.bf16 %v5377_v0  ;;  %v5378_v31 = vunpack.i.l.bf16 %v5377_v0 }
 0x909   : >> { %v5382_v16 = vpop.permute.xlu2 %5381 }
 0x90a   : >> { %v5384_v15 = vunpack.i.h.bf16 %v5382_v16  ;;  %v5383_v38 = vunpack.i.l.bf16 %v5382_v16 }
 0x915   : >> { %v5357_v23 = vpop.permute.xlu1 %5356 }
 0x916   : >> { %v5359_v61 = vunpack.i.h.bf16 %v5357_v23  ;;  %v5358_v10 = vunpack.i.l.bf16 %v5357_v23 }
 0x917   : >> { %v5362_v62 = vpop.permute.xlu0 %5361 }
 0x918   : >> { %v5364_v30 = vunpack.i.h.bf16 %v5362_v62  ;;  %v5363_v36 = vunpack.i.l.bf16 %v5362_v62 }
 0x91a   : >> { %v3660_v51 = vsel %vm751_vm3, %v8132_v63, %v5364_v30  ;;  %v3659_v1 = vsel %vm751_vm3, %v8130_v35, %v5363_v36 }
 0x91d   : >> { %v5372_v58 = vpop.permute.xlu1 %5371 }
 0x91e   : >> { %v5374_v6 = vunpack.i.h.bf16 %v5372_v58  ;;  %v5373_v32 = vunpack.i.l.bf16 %v5372_v58 }
 0x91f   : >> { %v5367_v60 = vpop.permute.xlu0 %5366 }
 0x920   : >> { %v5369_v13 = vunpack.i.h.bf16 %v5367_v60  ;;  %v5368_v59 = vunpack.i.l.bf16 %v5367_v60 }
 0x922   : >> { %v3662_v27 = vsel %vm8343_vm7, %v3659_v1, %v5368_v59  ;;  %v3663_v26 = vsel %vm8344_vm11, %v3660_v51, %v5369_v13 }
 0x923   : >> { %v3665_v19 = vsel %vm8345_vm10, %v3662_v27, %v5358_v10  ;;  %v3666_v57 = vsel %vm8346_vm2, %v3663_v26, %v5359_v61 }
 0x924   : >> { %v3668_v33 = vsel %vm8347_vm12, %v3665_v19, %v5373_v32  ;;  %v3669_v63 = vsel %vm8348_vm8, %v3666_v57, %v5374_v6 }
 0x925   : >> { %v5392_v35 = vpop.permute.xlu1 %5391  ;;  %v3671_v12 = vsel %vm1982_vm13, %v3668_v33, %v5378_v31  ;;  %v3672_v21 = vsel %vm1982_vm13, %v3669_v63, %v5379_v39 }
 0x926   : >> { %v5394_v41 = vunpack.i.h.bf16 %v5392_v35  ;;  %v5393_v24 = vunpack.i.l.bf16 %v5392_v35  ;;  %v3674_v43 = vsel %vm1985_vm14, %v3671_v12, %v5383_v38  ;;  %v3675_v44 = vsel %vm1985_vm14, %v3672_v21, %v5384_v15 }
 0x927   : >> { %v5387_v50 = vpop.permute.xlu0 %5386 }
 0x928   : >> { %v5389_v25 = vunpack.i.h.bf16 %v5387_v50  ;;  %v5388_v14 = vunpack.i.l.bf16 %v5387_v50 }
 0x92a   : >> { %v3677_v45 = vsel %vm1988_vm15, %v3674_v43, %v5388_v14  ;;  %v3678_v46 = vsel %vm1988_vm15, %v3675_v44, %v5389_v25 }
 0x92b   : >> { %v3679_v3 = vsel %vm8349_vm0, %v3677_v45, %v5393_v24  ;;  %v3680_v4 = vsel %vm8350_vm6, %v3678_v46, %v5394_v41 }
 0x92c   : >> { %v3681_v5 = vpack.c.bf16 %v3680_v4, %v3679_v3 }
 0x92e   : >> { %4572 = vmatmul.msk.bf16.vlgmr.msra.gmra.mxu0 %vm8351_vm9, %v3681_v5 }
 0x9ab   : >> { %v3729_v11 = vpop.f32.mrf.mxu0 }
 0x9ac   : >> { %v3730_v8 = vadd.f32 %v3729_v11, %v3683_v7 }
 0x9ae   : >> { %3736 = vst.msk [vmem:[%s3734_s30] sm:$0xff] %vm3735_vm4, %v3730_v8 }
 0x9b2   : > { %3569 = sbr.rel (!%p3567_p9) target bundleno = 2201 (0x899), region = 349 }
 0x9b3   : >> { %v3731_v9 = vpop.f32.mrf.mxu0 }
 0x9b4   : >> { %v3732_v18 = vadd.f32 %v3731_v9, %v3683_v7 }
 0x9b6   : >> { %3738 = vst.msk [vmem:[%s3734_s30 + $0x8] sm:$0x1f] %vm3737_vm5, %v3732_v18 }
 0x9b7 PF: > { %s8353_s12 = sld [smem:[#allocation9_spill]] }
 0x9bd   : > { %s32_s20 = sadd.s32 1, %s8353_s12  }
 0x9be   : > { %p29_p10 = scmp.ge.s32.totalorder %s32_s20, 4  }
 0x9c0   :  { %31 = sbr.rel (!%p29_p10) target bundleno = 8 (0x8), region = 360 }

</bundles_post_ra>
